<compile_context>
chip_gen: v6e
topology: v6e:2x2x1
jax: 0.10.0
libtpu: 0.0.40
codegen_flags: <defaults>
</compile_context>

<pallas_src>
import functools

import jax
import jax.numpy as jnp
from jax.experimental import pallas as pl
from jax.experimental.pallas import tpu as pltpu

IN_FEATURES = 9216
HIDDEN = 128
OUT_FEATURES = 2


def _domain_classifier_kernel(x_ref, w1_ref, b1_ref, w2_ref, b2_ref, out_ref):
    """Grid = (batch tiles,).  Full K per tile; w1 resident in VMEM.

    linear1 (bf16 MXU inputs, f32 accumulation) -> +b1 -> ReLU ->
    dropout(identity, eval mode) -> linear2 -> +b2.
    """
    x = x_ref[...].astype(jnp.bfloat16)          # in-kernel cast, no HBM pass
    h = jnp.dot(x, w1_ref[...], preferred_element_type=jnp.float32)
    h = jnp.maximum(h + b1_ref[...], 0.0)        # + b1, ReLU
    # Dropout(0.5) in eval mode == identity.
    y = jnp.dot(h, w2_ref[...], preferred_element_type=jnp.float32)
    out_ref[...] = (y + b2_ref[...]).astype(out_ref.dtype)


def _pick_tb(B):
    """Largest batch tile <= 256 that divides B and yields >= 2 grid points.

    >= 2 tiles lets the 'parallel' batch axis use both v7x TensorCores; the
    256 cap keeps the f32 x tile + resident bf16 w1 near ~24 MB of VMEM
    (double-buffered), safe on every generation with the 32 MiB limit below.
    Falls back to the whole batch (single tile) for awkward B.
    """
    if B <= 8:
        return B
    for cand in (256, 128, 64, 32, 16, 8):
        if cand <= B // 2 and B % cand == 0:
            return cand
    return B


@functools.partial(jax.jit, static_argnames=("tb",))
def domain_classifier_forward(x, w1, b1, w2, b2, *, tb=None):
    B, K = x.shape
    assert K == IN_FEATURES

    if tb is None:
        tb = _pick_tb(B)
    assert B % tb == 0, f"batch {B} must be divisible by batch tile {tb}"

    # w1 is the only bf16 stream (MXU native input); everything else f32.
    w1 = w1.astype(jnp.bfloat16)
    b1 = b1.astype(jnp.float32)
    w2 = w2.astype(jnp.float32)
    b2 = b2.astype(jnp.float32)

    grid = (B // tb,)

    return pl.pallas_call(
        _domain_classifier_kernel,
        out_shape=jax.ShapeDtypeStruct((B, OUT_FEATURES), jnp.float32),
        grid_spec=pltpu.PrefetchScalarGridSpec(
            num_scalar_prefetch=0,
            grid=grid,
            in_specs=[
                pl.BlockSpec((tb, K), lambda b: (b, 0)),                  # x
                pl.BlockSpec((K, HIDDEN), lambda b: (0, 0)),              # w1 (resident)
                pl.BlockSpec((1, HIDDEN), lambda b: (0, 0)),              # b1
                pl.BlockSpec((HIDDEN, OUT_FEATURES), lambda b: (0, 0)),   # w2
                pl.BlockSpec((1, OUT_FEATURES), lambda b: (0, 0)),        # b2
            ],
            out_specs=pl.BlockSpec((tb, OUT_FEATURES), lambda b: (b, 0)),
        ),
        compiler_params=pltpu.CompilerParams(
            # batch tiles are independent -> megacore sharding on v7x.
            dimension_semantics=("parallel",),
            # Explicit: covers the ~24 MB tb=256 footprint; v5e's scoped
            # default is only 16 MiB, v6e/v7x default is 32 MiB.
            vmem_limit_bytes=32 * 1024 * 1024,
        ),
    )(x, w1, b1, w2, b2)


def init_params(key):
    """Deterministic synthetic parameters matching nn.Linear shapes.

    PyTorch stores Linear weight as [out, in]; we keep the transposed
    [in, out] layout so the kernel computes y = x @ w + b.  w1 is stored in
    bf16 (it is MXU input and VMEM-resident); biases and w2 stay f32.
    """
    k1, k2, k3, k4 = jax.random.split(key, 4)
    bound1 = 1.0 / (IN_FEATURES ** 0.5)
    bound2 = 1.0 / (HIDDEN ** 0.5)
    w1 = jax.random.uniform(k1, (IN_FEATURES, HIDDEN), jnp.float32,
                            -bound1, bound1).astype(jnp.bfloat16)
    b1 = jax.random.uniform(k2, (1, HIDDEN), jnp.float32, -bound1, bound1)
    w2 = jax.random.uniform(k3, (HIDDEN, OUT_FEATURES), jnp.float32,
                            -bound2, bound2)
    b2 = jax.random.uniform(k4, (1, OUT_FEATURES), jnp.float32,
                            -bound2, bound2)
    return w1, b1, w2, b2


def reference_forward(x, w1, b1, w2, b2):
    h = jnp.maximum(x @ w1 + b1, 0.0)    # linear1 + relu (dropout = identity)
    return h @ w2 + b2                   # linear2


if __name__ == "__main__":
    key = jax.random.PRNGKey(0)
    kx, kp = jax.random.split(key)

    # Small test batch; _pick_tb gives tb=32 -> 2 batch tiles (both v7x TCs).
    B = 64
    x = jax.random.normal(kx, (B, IN_FEATURES), jnp.float32)
    w1, b1, w2, b2 = init_params(kp)

    out = domain_classifier_forward(x, w1, b1, w2, b2)
    out = jax.block_until_ready(out)

    # Reference with the same bf16 quantization of the matmul inputs (the only
    # remaining difference is f32 accumulation order on the MXU).
    x_q = x.astype(jnp.bfloat16).astype(jnp.float32)
    w1_q = w1.astype(jnp.float32)
    ref = reference_forward(x_q, w1_q, b1, w2, b2)

    assert out.shape == (B, OUT_FEATURES)
    assert jnp.allclose(out, ref, atol=2e-3, rtol=2e-3), (
        f"mismatch: max abs err {jnp.max(jnp.abs(out - ref))}"
    )

    print("KERNEL_OK")
</pallas_src>

<mosaic_0001>
module attributes {stable_mosaic.version = 11 : i64} {
  func.func @_domain_classifier_kernel(%arg0: i32, %arg1: memref<32x9216xf32, #tpu.memory_space<vmem>>, %arg2: memref<9216x128xbf16, #tpu.memory_space<vmem>>, %arg3: memref<1x128xf32, #tpu.memory_space<vmem>>, %arg4: memref<128x2xf32, #tpu.memory_space<vmem>>, %arg5: memref<1x2xf32, #tpu.memory_space<vmem>>, %arg6: memref<32x2xf32, #tpu.memory_space<vmem>>) attributes {dimension_semantics = [#tpu.dimension_semantics<parallel>], iteration_bounds = array<i64: 2>, scalar_prefetch = 0 : i64, scratch_operands = 0 : i64, tpu.core_type = #tpu.core_type<tc>, window_params = [{transform_indices = @transform_0, window_bounds = array<i64: 32, 9216>}, {pipeline_mode = #tpu.pipeline_mode<synchronous>, transform_indices = @transform_1, window_bounds = array<i64: 9216, 128>}, {pipeline_mode = #tpu.pipeline_mode<synchronous>, transform_indices = @transform_2, window_bounds = array<i64: 1, 128>}, {pipeline_mode = #tpu.pipeline_mode<synchronous>, transform_indices = @transform_3, window_bounds = array<i64: 128, 2>}, {pipeline_mode = #tpu.pipeline_mode<synchronous>, transform_indices = @transform_4, window_bounds = array<i64: 1, 2>}, {transform_indices = @transform_5, window_bounds = array<i64: 32, 2>}]} {
    %c0 = arith.constant 0 : index
    %c0_0 = arith.constant 0 : index
    %0 = vector.load %arg1[%c0, %c0_0] : memref<32x9216xf32, #tpu.memory_space<vmem>>, vector<32x9216xf32>
    %1 = arith.truncf %0 : vector<32x9216xf32> to vector<32x9216xbf16>
    %c0_1 = arith.constant 0 : index
    %c0_2 = arith.constant 0 : index
    %2 = vector.load %arg2[%c0_1, %c0_2] : memref<9216x128xbf16, #tpu.memory_space<vmem>>, vector<9216x128xbf16>
    %cst = arith.constant dense<0.000000e+00> : vector<32x128xf32>
    %3 = tpu.matmul %1, %2, %cst {dimension_numbers = #tpu.dot_dimension_numbers<[1], [0], [0], [1], [0, 0, 1, 1], [], []>} : vector<32x9216xbf16>, vector<9216x128xbf16>, vector<32x128xf32> -> vector<32x128xf32>
    %c0_3 = arith.constant 0 : index
    %c0_4 = arith.constant 0 : index
    %4 = vector.load %arg3[%c0_3, %c0_4] : memref<1x128xf32, #tpu.memory_space<vmem>>, vector<1x128xf32>
    %5 = vector.broadcast %4 : vector<1x128xf32> to vector<32x128xf32>
    %6 = arith.addf %3, %5 : vector<32x128xf32>
    %cst_5 = arith.constant 0.000000e+00 : f32
    %7 = vector.broadcast %cst_5 : f32 to vector<32x128xf32>
    %8 = arith.maximumf %6, %7 : vector<32x128xf32>
    %c0_6 = arith.constant 0 : index
    %c0_7 = arith.constant 0 : index
    %9 = vector.load %arg4[%c0_6, %c0_7] : memref<128x2xf32, #tpu.memory_space<vmem>>, vector<128x2xf32>
    %cst_8 = arith.constant dense<0.000000e+00> : vector<32x2xf32>
    %10 = tpu.matmul %8, %9, %cst_8 {dimension_numbers = #tpu.dot_dimension_numbers<[1], [0], [0], [1], [0, 0, 1, 1], [], []>} : vector<32x128xf32>, vector<128x2xf32>, vector<32x2xf32> -> vector<32x2xf32>
    %c0_9 = arith.constant 0 : index
    %c0_10 = arith.constant 0 : index
    %11 = vector.load %arg5[%c0_9, %c0_10] : memref<1x2xf32, #tpu.memory_space<vmem>>, vector<1x2xf32>
    %12 = vector.broadcast %11 : vector<1x2xf32> to vector<32x2xf32>
    %13 = arith.addf %10, %12 : vector<32x2xf32>
    %c0_11 = arith.constant 0 : index
    %c0_12 = arith.constant 0 : index
    %14 = vector.load %arg6[%c0_11, %c0_12] : memref<32x2xf32, #tpu.memory_space<vmem>>, vector<32x2xf32>
    tpu.vector_store %arg6[%c0_11, %c0_12], %13 {strides = array<i32>} : memref<32x2xf32, #tpu.memory_space<vmem>>, vector<32x2xf32>,
    return
  }
  func.func @transform_0(%arg0: i32) -> (i32, i32) {
    %c0_i32 = arith.constant 0 : i32
    %c0_i32_0 = arith.constant 0 : i32
    return %arg0, %c0_i32 : i32, i32
  }
  func.func @transform_1(%arg0: i32) -> (i32, i32) {
    %c0_i32 = arith.constant 0 : i32
    %c0_i32_0 = arith.constant 0 : i32
    %c0_i32_1 = arith.constant 0 : i32
    return %c0_i32, %c0_i32_0 : i32, i32
  }
  func.func @transform_2(%arg0: i32) -> (i32, i32) {
    %c0_i32 = arith.constant 0 : i32
    %c0_i32_0 = arith.constant 0 : i32
    %c0_i32_1 = arith.constant 0 : i32
    return %c0_i32, %c0_i32_0 : i32, i32
  }
  func.func @transform_3(%arg0: i32) -> (i32, i32) {
    %c0_i32 = arith.constant 0 : i32
    %c0_i32_0 = arith.constant 0 : i32
    %c0_i32_1 = arith.constant 0 : i32
    return %c0_i32, %c0_i32_0 : i32, i32
  }
  func.func @transform_4(%arg0: i32) -> (i32, i32) {
    %c0_i32 = arith.constant 0 : i32
    %c0_i32_0 = arith.constant 0 : i32
    %c0_i32_1 = arith.constant 0 : i32
    return %c0_i32, %c0_i32_0 : i32, i32
  }
  func.func @transform_5(%arg0: i32) -> (i32, i32) {
    %c0_i32 = arith.constant 0 : i32
    %c0_i32_0 = arith.constant 0 : i32
    return %arg0, %c0_i32 : i32, i32
  }
}

</mosaic_0001>

<bundles_post_ra>
// kernel: domain_classifier_forward.1
= control target key start
LH: loop header
LB: loop body
LE: loop exit
PB: predicated region body
PF: predicated region fallthrough
CT: control target
= control target key end

     0   :  { %10 = vsyncpa [#allocation3], 0  ;;  %s10656_s0 = inlined_call_operand.hbm [shape: f32[64,9216], index: 0, kind: input, shape index: {}]   ;;  %s10657_s1 = inlined_call_operand.hbm [shape: bf16[9216,128], index: 1, kind: input, shape index: {}]   ;;  %s10658_s2 = inlined_call_operand.hbm [shape: f32[1,128], index: 2, kind: input, shape index: {}]   ;;  %s10659_s3 = inlined_call_operand.vmem [shape: f32[128,2], index: 3, kind: input, shape index: {}]   ;;  %s10660_s4 = inlined_call_operand.hbm [shape: f32[1,2], index: 4, kind: input, shape index: {}]   ;;  %s10661_s5 = inlined_call_operand.vmem [shape: f32[64,2], index: 5, kind: output, shape index: {}]  }
   0x1   :  { %12 = vsyncpa [#allocation3 + $0x1], 0 }
   0x2   :  { %13 = vsyncpa [#allocation5], 0 }
   0x3   :  { %14 = vsyncpa [#allocation8], 0  ;;  %s9848_s18 = smov 0   ;;  %s9850_s19 = smov 0  }
   0x4   :  { %s9852_s20 = smov 0   ;;  %s9854_s21 = smov 0  }
   0x5 LB: > { %s7313_s22 = sadd.s32 4294967295, %s9808_s21   ;;  %p40_p0 = scmp.ne.s32.totalorder %s9800_s19, %s9796_s18  ;;  %s9808_s21 = sphi %s9854_s21, %s10709_s21   ;;  %s9804_s20 = sphi %s9852_s20, %s10708_s20   ;;  %s9800_s19 = sphi %s9850_s19, %s10707_s19   ;;  %s9796_s18 = sphi %s9848_s18, %s10706_s18  }
   0x6   : > { %p9870_p1 = scmp.eq.s32.totalorder %s7313_s22, 0  ;;  %p7315_p2 = scmp.ge.s32.totalorder %s9808_s21, 1 }
   0x7   : > { %p161_p3 = scmp.lt.s32.totalorder %s9808_s21, 3  ;;  %s9810_s26 = smov [#allocation4]  }
   0x8   : > { %s10666_s23 = scalar_select %p9870_p1, 1, 0 }
   0x9   : > { %p9878_p4 = por %p9870_p1, %p40_p0  ;;  %p9882_p5 = pnand %p7315_p2, %p161_p3 }
   0xa   : > { %s173_s27 = sshll.u32 %s9810_s26, 4  ;;  %s9811_s29 = smov [#allocation6]   ;;  %s174_s27 = int_to_ptr.vmem [resolvable:$true] %s173_s27 }
   0xb   : > { %s10667_s24 = scalar_select %p9878_p4, 1, 0 }
   0xc   : > { %s10668_s25 = scalar_select %p9882_p5, 1, 0 }
   0xd   : > { %p9024_p6 = pneg %p9882_p5  ;;  %s187_s30 = sshll.u32 %s9811_s29, 4  ;;  %s188_s30 = int_to_ptr.vmem [resolvable:$true] %s187_s30 }
   0xe   : > { %s9812_s6 = smov [#allocation7]   ;;  %s9671_s8 = scalar_lea.vmem %s174_s27, 73728 }
   0xf   : > { %p9890_p7 = pnand %p9024_p6, %p9870_p1  ;;  %s201_s7 = sshll.u32 %s9812_s6, 4  ;;  %s202_s7 = int_to_ptr.vmem [resolvable:$true] %s201_s7 }
  0x10   : > { %p9672_p9 = scmp.ne.s32.totalorder %s174_s27, %s9671_s8  ;;  %p9679_p12 = scmp.lt.s32.totalorder %s174_s27, %s174_s27 }
  0x11   : > { %p9662_p8 = pneg %p9890_p7  ;;  %p9680_p13 = scmp.lt.s32.totalorder %s9671_s8, %s9671_s8 }
  0x13   : > { %p9674_p10 = pnand %p9672_p9, %p9662_p8  ;;  %p9681_p0 = por %p9680_p13, %p9679_p12 }
  0x15   : > { %p9675_p11 = pneg %p9674_p10 }
  0x17   : > { %p9682_p2 = pnand %p9681_p0, %p9675_p11 }
  0x19   : > { %9685 = shalt.err (!%p9682_p2)
}
  0x1a   : > { %s9813_s9 = smov 64   ;;  %s9814_s10 = smov 4  }
  0x1b   : > { %9027 = dma.hbm_to_vmem [thread:$0]  (!%p9890_p7), %s10657_s1, 73728, %s174_s27, [#allocation5], %s9813_s9, %s9813_s9, %s9814_s10  }
  0x1c   : > { %s9697_s13 = scalar_lea.vmem %s188_s30, 16  ;;  %s9704_s14 = scalar_lea.vmem %s188_s30, 32 }
  0x1d   : > { %p9698_p3 = scmp.ne.s32.totalorder %s188_s30, %s9697_s13  ;;  %p9705_p10 = scmp.lt.s32.totalorder %s188_s30, %s188_s30 }
  0x1e   : > { %p9706_p12 = scmp.lt.s32.totalorder %s9704_s14, %s9697_s13 }
  0x1f   : > { %p9700_p6 = pnand %p9698_p3, %p9662_p8 }
  0x20   : > { %p9707_p11 = por %p9706_p12, %p9705_p10 }
  0x21   : > { %p9701_p9 = pneg %p9700_p6 }
  0x23   : > { %p9708_p13 = pnand %p9707_p11, %p9701_p9 }
  0x25   : > { %9711 = shalt.err (!%p9708_p13)
}
  0x26   : > { %9030 = dma.hbm_to_vmem [thread:$0]  (!%p9890_p7), %s10658_s2, 16, %s188_s30, [#allocation5]  }
  0x27   : > { %s9723_s17 = scalar_lea.vmem %s202_s7, 16  ;;  %s9730_s18 = scalar_lea.vmem %s202_s7, 32 }
  0x28   : > { %p9724_p0 = scmp.ne.s32.totalorder %s202_s7, %s9723_s17  ;;  %p9731_p6 = scmp.lt.s32.totalorder %s202_s7, %s202_s7 }
  0x29   : > { %p9732_p1 = scmp.lt.s32.totalorder %s9730_s18, %s9723_s17 }
  0x2a   : > { %p9726_p2 = pnand %p9724_p0, %p9662_p8 }
  0x2b   : > { %p9733_p10 = por %p9732_p1, %p9731_p6 }
  0x2c   : > { %p9727_p3 = pneg %p9726_p2 }
  0x2e   : > { %p9734_p9 = pnand %p9733_p10, %p9727_p3 }
  0x30   : > { %9737 = shalt.err (!%p9734_p9)
}
  0x31   : > { %9033 = dma.hbm_to_vmem [thread:$0]  (!%p9890_p7), %s10660_s4, 16, %s202_s7, [#allocation8]  }
  0x32   : > { %s9921_s29 = sadd.s32 1, %s9808_s21   ;;  %s27_s6 = sadd.s32 1, %s9804_s20 }
  0x33   : > { %s24_s30 = ssub.s32 %s9808_s21, %s9921_s29  ;;  %p34_p8 = scmp.ne.s32.totalorder %s9804_s20, %s9800_s19 }
  0x34   : > { %p25_p1 = scmp.eq.s32.totalorder %s24_s30, 0  ;;  %p35_p12 = scmp.eq.s32.totalorder %s9808_s21, 0 }
  0x35   : > { %p9041_p11 = scmp.lt.s32.totalorder %s9808_s21, 2  ;;  %s212_s8 = sand.u32 1, %s9804_s20  }
  0x36   : > { %s9931_s28 = scalar_select %p25_p1, %s9804_s20, %s27_s6  }
  0x37   : > { %p36_p13 = por %p35_p12, %p34_p8  ;;  %s9007_s9 = smul.u32 2304, %s212_s8 }
  0x38   : > { %s9008_s10 = smul.u32 36864, %s9808_s21  ;;  %s9946_s16 = scalar_lea.sflag [#allocation3], %s212_s8 }
  0x39   : > { %p9935_p0 = pnand %p9041_p11, %p36_p13  ;;  %s216_s14 = scalar_lea.vmem [#allocation2], %s9007_s9 }
  0x3a   : > { %s9942_s13 = scalar_lea.hbm %s10656_s0, %s9008_s10  ;;  %s224_s15 = sshll.u32 %s216_s14, 4  ;;  %s9944_s15 = int_to_ptr.vmem [resolvable:$true] %s224_s15 }
  0x3b   : > { %s9738_s17 = scalar_lea.hbm %s9942_s13, 36864  ;;  %p9740_p2 = pneg %p9935_p0 }
  0x3c   : > { %p9739_p7 = scmp.ne.s32.totalorder %s9942_s13, %s9738_s17  ;;  %s9743_s27 = scalar_lea.hbm %s10656_s0, 73728 }
  0x3d   : > { %p9744_p10 = scmp.lt.s32.totalorder %s9942_s13, %s10656_s0  ;;  %p9745_p9 = scmp.lt.s32.totalorder %s9743_s27, %s9738_s17 }
  0x3e   : > { %p9741_p3 = pnand %p9740_p2, %p9739_p7 }
  0x3f   : > { %p9746_p1 = por %p9745_p9, %p9744_p10 }
  0x40   : > { %p9742_p6 = pneg %p9741_p3 }
  0x42   : > { %p9747_p8 = pnand %p9746_p1, %p9742_p6 }
  0x44   : > { %9750 = shalt.err (!%p9747_p8)
}
  0x45   : > { %s9751_s8 = scalar_lea.vmem %s9944_s15, 36864  ;;  %s9815_s9 = smov [#allocation2]  }
  0x46   : > { %p9752_p12 = scmp.ne.s32.totalorder %s9944_s15, %s9751_s8  ;;  %s9756_s10 = sshll.u32 %s9815_s9, 4  ;;  %s9757_s10 = int_to_ptr.vmem [resolvable:$false] %s9756_s10 }
  0x47   : > { %s9758_s7 = scalar_lea.vmem %s9757_s10, 73728  ;;  %p9759_p7 = scmp.lt.s32.totalorder %s9944_s15, %s9757_s10 }
  0x48   : > { %p9754_p11 = pnand %p9752_p12, %p9740_p2  ;;  %p9760_p3 = scmp.lt.s32.totalorder %s9758_s7, %s9751_s8 }
  0x4a   : > { %p9755_p13 = pneg %p9754_p11  ;;  %p9761_p4 = por %p9760_p3, %p9759_p7 }
  0x4c   : > { %p9762_p5 = pnand %p9761_p4, %p9755_p13 }
  0x4e   : > { %9765 = shalt.err (!%p9762_p5)
}
  0x4f   : > { %s9816_s12 = smov 9216   ;;  %s9817_s14 = smov 576  }
  0x50   : > { %9037 = dma.hbm_to_vmem [thread:$0]  (!%p9935_p0), %s9942_s13, 36864, %s9944_s15, %s9946_s16, %s9816_s12, %s9816_s12, %s9817_s14  }
  0x51   : > { %p10671_p2 = scmp.ne.s32.totalorder %s10668_s25, 0 }
  0x53   : > { %236 = sbr.rel (%p10671_p2) target bundleno = 1139 (0x473), region = 40 }
  0x58   : > { %s238_s17 = sand.u32 1, %s9800_s19   ;;  %p10672_p4 = scmp.ne.s32.totalorder %s10667_s24, 0 }
  0x59   : > { %s9009_s18 = smul.u32 2304, %s238_s17  ;;  %s239_s26 = scalar_lea.sflag [#allocation3], %s238_s17 }
  0x5b   : > { %s9970_s27 = scalar_lea.vmem [#allocation2], %s9009_s18 }
  0x5c   : > { %9783 = dma.done.wait (%p10672_p4), %s239_s26, 36864  }
  0x5d   : > { %9785 = vsyncadd (%p10672_p4), %s239_s26, 4294930432  ;;  %p10673_p5 = scmp.ne.s32.totalorder %s10666_s23, 0 }
  0x5f   : > { %9787 = dma.done.wait (%p10673_p5), [#allocation5], 73744  }
  0x60   : > { %9789 = vsyncadd (%p10673_p5), [#allocation5], 4294893552 }
  0x61   : > { %9791 = dma.done.wait (%p10673_p5), [#allocation8], 16  }
  0x62   : > { %9793 = vsyncadd (%p10673_p5), [#allocation8], 4294967280  ;;  %v9084_v0 = vld [vmem:[#allocation4 + $0x78] sm:$0xff]   ;;  %v9088_v4 = vld [vmem:[#allocation4 + $0x70] sm:$0xff]   ;;  %s7327_s12 = sshll.u32 %s7313_s22, 2  ;;  %vm7212_vm0 = vcmask 15360  }
  0x63   : > { %v9085_v1 = vld [vmem:[#allocation4 + $0xf8] sm:$0xff]   ;;  %7909 = vmatprep.subr.bf16.mxu0 %v9084_v0  ;;  %v9089_v5 = vld [vmem:[#allocation4 + $0xf0] sm:$0xff]   ;;  %v9092_v8 = vld [vmem:[#allocation4 + $0x68] sm:$0xff]   ;;  %p283_p0 = scmp.lt.s32.totalorder %s7327_s12, 7 }
  0x64   : > { %v9086_v2 = vld [vmem:[#allocation4 + $0x38] sm:$0xff]   ;;  %7937 = vmatprep.subr.bf16.mxu1 %v9085_v1  ;;  %v9090_v6 = vld [vmem:[#allocation4 + $0x30] sm:$0xff]   ;;  %v9093_v9 = vld [vmem:[#allocation4 + $0xe8] sm:$0xff]  }
  0x65   : > { %v9087_v3 = vld [vmem:[#allocation4 + $0xb8] sm:$0xff]   ;;  %7910 = vmatpush3.bf16.msra.mxu0 %v9086_v2  ;;  %v9091_v7 = vld [vmem:[#allocation4 + $0xb0] sm:$0xff]   ;;  %v9094_v10 = vld [vmem:[#allocation4 + $0x28] sm:$0xff]   ;;  %s10711_s12 = smov (!%p283_p0, %s7327_s12), 7 }
  0x66   : > { %7938 = vmatpush3.bf16.msra.mxu1 %v9087_v3  ;;  %7911 = vmatprep.subr.bf16.mxu0 %v9088_v4  ;;  %v9095_v11 = vld [vmem:[#allocation4 + $0xa8] sm:$0xff]   ;;  %v9096_v12 = vld [vmem:[#allocation4 + $0x60] sm:$0xff]   ;;  %v9100_v16 = vld [vmem:[#allocation4 + $0x58] sm:$0xff]   ;;  %s7328_s14 = sshll.u32 %s10711_s12, 3 }
  0x67   : > { %7939 = vmatprep.subr.bf16.mxu1 %v9089_v5  ;;  %v9097_v13 = vld [vmem:[#allocation4 + $0xe0] sm:$0xff]   ;;  %v9101_v17 = vld [vmem:[#allocation4 + $0xd8] sm:$0xff]   ;;  %v9104_v20 = vld [vmem:[#allocation4 + $0x50] sm:$0xff]   ;;  %s286_s26 = scalar_lea.vmem %s10661_s5, %s7328_s14 }
  0x68   : > { %v9098_v14 = vld [vmem:[#allocation4 + $0x20] sm:$0xff]   ;;  %v9102_v18 = vld [vmem:[#allocation4 + $0x18] sm:$0xff]   ;;  %v9105_v21 = vld [vmem:[#allocation4 + $0xd0] sm:$0xff]  }
  0x69   : > { %7912 = vmatpush3.bf16.msra.mxu0 %v9090_v6  ;;  %v9099_v15 = vld [vmem:[#allocation4 + $0xa0] sm:$0xff]   ;;  %v9103_v19 = vld [vmem:[#allocation4 + $0x98] sm:$0xff]   ;;  %v9106_v22 = vld [vmem:[#allocation4 + $0x10] sm:$0xff]  }
  0x6a   : > { %7940 = vmatpush3.bf16.msra.mxu1 %v9091_v7  ;;  %7913 = vmatprep.subr.bf16.mxu0 %v9092_v8  ;;  %v9107_v23 = vld [vmem:[#allocation4 + $0x90] sm:$0xff]   ;;  %v9108_v24 = vld [vmem:[#allocation4 + $0x48] sm:$0xff]   ;;  %v9112_v28 = vld [vmem:[#allocation4 + $0x40] sm:$0xff]  }
  0x6b   : > { %7941 = vmatprep.subr.bf16.mxu1 %v9093_v9  ;;  %v9109_v25 = vld [vmem:[#allocation4 + $0xc8] sm:$0xff]   ;;  %v9113_v29 = vld [vmem:[#allocation4 + $0xc0] sm:$0xff]   ;;  %v292_v34 = vld [vmem:[%s9970_s27 + $0x18] sm:$0xff] }
  0x6c   : > { %v9110_v26 = vld [vmem:[#allocation4 + $0x8] sm:$0xff]   ;;  %v9114_v30 = vld [vmem:[#allocation4] sm:$0xff]   ;;  %v364_v36 = vld [vmem:[%s9970_s27 + $0x258] sm:$0xff] }
  0x6d   : > { %7914 = vmatpush3.bf16.msra.mxu0 %v9094_v10  ;;  %v9111_v27 = vld [vmem:[#allocation4 + $0x88] sm:$0xff]   ;;  %v9115_v31 = vld [vmem:[#allocation4 + $0x80] sm:$0xff]   ;;  %v580_v39 = vpack.c.bf16 %v364_v36, %v292_v34  ;;  %v291_v41 = vld [vmem:[%s9970_s27 + $0x10] sm:$0xff] }
  0x6e   : > { %7942 = vmatpush3.bf16.msra.mxu1 %v9095_v11  ;;  %7915 = vmatprep.subr.bf16.mxu0 %v9096_v12  ;;  %v290_v32 = vld [vmem:[%s9970_s27 + $0x8] sm:$0xff]  ;;  %v289_v37 = vld [vmem:[%s9970_s27] sm:$0xff]  ;;  %v363_v42 = vld [vmem:[%s9970_s27 + $0x250] sm:$0xff] }
  0x6f   : > { %7943 = vmatprep.subr.bf16.mxu1 %v9097_v13  ;;  %v362_v33 = vld [vmem:[%s9970_s27 + $0x248] sm:$0xff]  ;;  %v361_v38 = vld [vmem:[%s9970_s27 + $0x240] sm:$0xff]  ;;  %v579_v43 = vpack.c.bf16 %v363_v42, %v291_v41  ;;  %v9116_v44 = vld [vmem:[#allocation4 + $0x178] sm:$0xff]   ;;  %5417 = vmatprep.mubr.bf16.mxu1 %v580_v39 }
  0x70   : > { %v578_v35 = vpack.c.bf16 %v362_v33, %v290_v32  ;;  %v577_v40 = vpack.c.bf16 %v361_v38, %v289_v37  ;;  %v9117_v45 = vld [vmem:[#allocation4 + $0x1f8] sm:$0xff]   ;;  %v9120_v48 = vld [vmem:[#allocation4 + $0x170] sm:$0xff]   ;;  %v9124_v52 = vld [vmem:[#allocation4 + $0x168] sm:$0xff]  }
  0x71   : > { %7916 = vmatpush3.bf16.msra.mxu0 %v9098_v14  ;;  %v9118_v46 = vld [vmem:[#allocation4 + $0x138] sm:$0xff]   ;;  %v9121_v49 = vld [vmem:[#allocation4 + $0x1f0] sm:$0xff]   ;;  %v9125_v53 = vld [vmem:[#allocation4 + $0x1e8] sm:$0xff]  }
  0x72   : > { %7944 = vmatpush3.bf16.msra.mxu1 %v9099_v15  ;;  %7917 = vmatprep.subr.bf16.mxu0 %v9100_v16  ;;  %v9119_v47 = vld [vmem:[#allocation4 + $0x1b8] sm:$0xff]   ;;  %v9122_v50 = vld [vmem:[#allocation4 + $0x130] sm:$0xff]   ;;  %v9126_v54 = vld [vmem:[#allocation4 + $0x128] sm:$0xff]  }
  0x73   : > { %7945 = vmatprep.subr.bf16.mxu1 %v9101_v17  ;;  %5368 = vmatprep.mubr.bf16.mxu0 %v578_v35  ;;  %v9123_v51 = vld [vmem:[#allocation4 + $0x1b0] sm:$0xff]   ;;  %v9127_v55 = vld [vmem:[#allocation4 + $0x1a8] sm:$0xff]   ;;  %v9128_v56 = vld [vmem:[#allocation4 + $0x160] sm:$0xff]  }
  0x74   : > { %v9129_v57 = vld [vmem:[#allocation4 + $0x1e0] sm:$0xff]   ;;  %v9132_v60 = vld [vmem:[#allocation4 + $0x158] sm:$0xff]   ;;  %v434_v0 = vld [vmem:[%s9970_s27 + $0x488] sm:$0xff] }
  0x75   : > { %7918 = vmatpush3.bf16.msra.mxu0 %v9102_v18  ;;  %v9130_v58 = vld [vmem:[#allocation4 + $0x120] sm:$0xff]   ;;  %v9133_v61 = vld [vmem:[#allocation4 + $0x1d8] sm:$0xff]   ;;  %v506_v1 = vld [vmem:[%s9970_s27 + $0x6c8] sm:$0xff] }
  0x76   : > { %7946 = vmatpush3.bf16.msra.mxu1 %v9103_v19  ;;  %7919 = vmatprep.subr.bf16.mxu0 %v9104_v20  ;;  %v9131_v59 = vld [vmem:[#allocation4 + $0x1a0] sm:$0xff]   ;;  %v9134_v62 = vld [vmem:[#allocation4 + $0x118] sm:$0xff]   ;;  %v650_v4 = vpack.c.bf16 %v506_v1, %v434_v0  ;;  %v9136_v9 = vld [vmem:[#allocation4 + $0x150] sm:$0xff]  }
  0x77   : > { %7947 = vmatprep.subr.bf16.mxu1 %v9105_v21  ;;  %v9135_v63 = vld [vmem:[#allocation4 + $0x198] sm:$0xff]   ;;  %v433_v2 = vld [vmem:[%s9970_s27 + $0x480] sm:$0xff]  ;;  %v9137_v10 = vld [vmem:[#allocation4 + $0x1d0] sm:$0xff]  }
  0x78   : > { %v505_v3 = vld [vmem:[%s9970_s27 + $0x6c0] sm:$0xff]  ;;  %v436_v6 = vld [vmem:[%s9970_s27 + $0x498] sm:$0xff]  ;;  %v435_v11 = vld [vmem:[%s9970_s27 + $0x490] sm:$0xff] }
  0x79   : > { %7920 = vmatpush3.bf16.msra.mxu0 %v9106_v22  ;;  %v649_v5 = vpack.c.bf16 %v505_v3, %v433_v2  ;;  %v508_v7 = vld [vmem:[%s9970_s27 + $0x6d8] sm:$0xff]  ;;  %v507_v12 = vld [vmem:[%s9970_s27 + $0x6d0] sm:$0xff]  ;;  %v9140_v16 = vld [vmem:[#allocation4 + $0x148] sm:$0xff]  }
  0x7a   : > { %7948 = vmatpush3.bf16.msra.mxu1 %v9107_v23  ;;  %7921 = vmatprep.subr.bf16.mxu0 %v9108_v24  ;;  %v652_v8 = vpack.c.bf16 %v508_v7, %v436_v6  ;;  %v651_v13 = vpack.c.bf16 %v507_v12, %v435_v11  ;;  %v9138_v14 = vld [vmem:[#allocation4 + $0x110] sm:$0xff]   ;;  %v9141_v17 = vld [vmem:[#allocation4 + $0x1c8] sm:$0xff]   ;;  %v9144_v20 = vld [vmem:[#allocation4 + $0x140] sm:$0xff]  }
  0x7b   : > { %7949 = vmatprep.subr.bf16.mxu1 %v9109_v25  ;;  %v9139_v15 = vld [vmem:[#allocation4 + $0x190] sm:$0xff]   ;;  %v9142_v18 = vld [vmem:[#allocation4 + $0x108] sm:$0xff]   ;;  %v9145_v21 = vld [vmem:[#allocation4 + $0x1c0] sm:$0xff]  }
  0x7c   : > { %v9143_v19 = vld [vmem:[#allocation4 + $0x188] sm:$0xff]   ;;  %v9146_v22 = vld [vmem:[#allocation4 + $0x100] sm:$0xff]   ;;  %v295_v32 = vld [vmem:[%s9970_s27 + $0x30] sm:$0xff] }
  0x7d   : > { %7922 = vmatpush3.bf16.msra.mxu0 %v9110_v26  ;;  %v9147_v23 = vld [vmem:[#allocation4 + $0x180] sm:$0xff]   ;;  %v294_v24 = vld [vmem:[%s9970_s27 + $0x28] sm:$0xff]  ;;  %v367_v33 = vld [vmem:[%s9970_s27 + $0x270] sm:$0xff] }
  0x7e   : > { %7950 = vmatpush3.bf16.msra.mxu1 %v9111_v27  ;;  %7923 = vmatprep.subr.bf16.mxu0 %v9112_v28  ;;  %v366_v25 = vld [vmem:[%s9970_s27 + $0x268] sm:$0xff]  ;;  %v296_v27 = vld [vmem:[%s9970_s27 + $0x38] sm:$0xff]  ;;  %v583_v35 = vpack.c.bf16 %v367_v33, %v295_v32  ;;  %v9153_v41 = vld [vmem:[#allocation4 + $0x2f0] sm:$0xff]  }
  0x7f   : > { %7951 = vmatprep.subr.bf16.mxu1 %v9113_v29  ;;  %v582_v26 = vpack.c.bf16 %v366_v25, %v294_v24  ;;  %v368_v28 = vld [vmem:[%s9970_s27 + $0x278] sm:$0xff]  ;;  %v293_v29 = vld [vmem:[%s9970_s27 + $0x20] sm:$0xff]  ;;  %v9154_v42 = vld [vmem:[#allocation4 + $0x230] sm:$0xff]  }
  0x80   : > { %v9148_v36 = vld [vmem:[#allocation4 + $0x278] sm:$0xff]   ;;  %v9170_v6 = vld [vmem:[#allocation4 + $0x210] sm:$0xff]   ;;  %v9175_v11 = vld [vmem:[#allocation4 + $0x288] sm:$0xff]  }
  0x81   : > { %7924 = vmatpush3.bf16.msra.mxu0 %v9114_v30  ;;  %v584_v30 = vpack.c.bf16 %v368_v28, %v296_v27  ;;  %v9149_v37 = vld [vmem:[#allocation4 + $0x2f8] sm:$0xff]   ;;  %v9171_v7 = vld [vmem:[#allocation4 + $0x290] sm:$0xff]   ;;  %v9176_v12 = vld [vmem:[#allocation4 + $0x240] sm:$0xff]  }
  0x82   : > { %7952 = vmatpush3.bf16.msra.mxu1 %v9115_v31  ;;  %7965 = vmatprep.subr.bf16.mxu0 %v9116_v44  ;;  %v365_v31 = vld [vmem:[%s9970_s27 + $0x260] sm:$0xff]  ;;  %v9150_v38 = vld [vmem:[#allocation4 + $0x238] sm:$0xff]   ;;  %v438_v44 = vld [vmem:[%s9970_s27 + $0x4a8] sm:$0xff] }
  0x83   : > { %7993 = vmatprep.subr.bf16.mxu1 %v9117_v45  ;;  %v581_v34 = vpack.c.bf16 %v365_v31, %v293_v29  ;;  %v9151_v39 = vld [vmem:[#allocation4 + $0x2b8] sm:$0xff]   ;;  %v510_v45 = vld [vmem:[%s9970_s27 + $0x6e8] sm:$0xff]  ;;  %v299_v24 = vld [vmem:[%s9970_s27 + $0x50] sm:$0xff] }
  0x84   : > { %5369 = vmatmul.mubr.bf16.vlgmr.msra.gmra.mxu0 %v577_v40  ;;  %v9152_v40 = vld [vmem:[#allocation4 + $0x270] sm:$0xff]   ;;  %v9164_v0 = vld [vmem:[#allocation4 + $0x258] sm:$0xff]  }
  0x85   : > { %5418 = vmatmul.mubr.bf16.vlgmr.msra.gmra.mxu1 %v579_v43  ;;  %7966 = vmatpush3.bf16.msra.mxu0 %v9118_v46  ;;  %v9155_v43 = vld [vmem:[#allocation4 + $0x2b0] sm:$0xff]   ;;  %v437_v46 = vld [vmem:[%s9970_s27 + $0x4a0] sm:$0xff]  ;;  %v9165_v1 = vld [vmem:[#allocation4 + $0x2d8] sm:$0xff]  }
  0x86   : > { %7994 = vmatpush3.bf16.msra.mxu1 %v9119_v47  ;;  %7967 = vmatprep.subr.bf16.mxu0 %v9120_v48  ;;  %v654_v47 = vpack.c.bf16 %v510_v45, %v438_v44  ;;  %v509_v48 = vld [vmem:[%s9970_s27 + $0x6e0] sm:$0xff]  ;;  %v9166_v2 = vld [vmem:[#allocation4 + $0x218] sm:$0xff]   ;;  %v9184_v32 = vld [vmem:[#allocation4 + $0x370] sm:$0xff]  }
  0x87   : > { %7995 = vmatprep.subr.bf16.mxu1 %v9121_v49  ;;  %5376 = vmatprep.mubr.bf16.mxu0 %v650_v4  ;;  %v653_v49 = vpack.c.bf16 %v509_v48, %v437_v46  ;;  %v9167_v3 = vld [vmem:[#allocation4 + $0x298] sm:$0xff]   ;;  %v9168_v4 = vld [vmem:[#allocation4 + $0x250] sm:$0xff]   ;;  %v9191_v48 = vld [vmem:[#allocation4 + $0x3a8] sm:$0xff]  }
  0x88   : > { %5425 = vmatprep.mubr.bf16.mxu1 %v652_v8  ;;  %v9172_v8 = vld [vmem:[#allocation4 + $0x248] sm:$0xff]   ;;  %v9180_v28 = vld [vmem:[#allocation4 + $0x378] sm:$0xff]   ;;  %v9185_v33 = vld [vmem:[#allocation4 + $0x3f0] sm:$0xff]  }
  0x89   : > { %7968 = vmatpush3.bf16.msra.mxu0 %v9122_v50  ;;  %v9156_v50 = vld [vmem:[#allocation4 + $0x268] sm:$0xff]   ;;  %v9181_v29 = vld [vmem:[#allocation4 + $0x3f8] sm:$0xff]  }
  0x8a   : > { %7996 = vmatpush3.bf16.msra.mxu1 %v9123_v51  ;;  %7969 = vmatprep.subr.bf16.mxu0 %v9124_v52  ;;  %v9157_v51 = vld [vmem:[#allocation4 + $0x2e8] sm:$0xff]   ;;  %v440_v52 = vld [vmem:[%s9970_s27 + $0x4b8] sm:$0xff] }
  0x8b   : > { %7997 = vmatprep.subr.bf16.mxu1 %v9125_v53  ;;  %v512_v53 = vld [vmem:[%s9970_s27 + $0x6f8] sm:$0xff] }
  0x8c   : > { %5377 = vmatmul.mubr.bf16.gmra.mxu0 %v649_v5  ;;  %v9169_v5 = vld [vmem:[#allocation4 + $0x2d0] sm:$0xff]   ;;  %v9183_v31 = vld [vmem:[#allocation4 + $0x3b8] sm:$0xff]  }
  0x8d   : > { %7970 = vmatpush3.bf16.msra.mxu0 %v9126_v54  ;;  %5426 = vmatmul.mubr.bf16.gmra.mxu1 %v651_v13  ;;  %v656_v54 = vpack.c.bf16 %v512_v53, %v440_v52  ;;  %v9177_v13 = vld [vmem:[#allocation4 + $0x2c0] sm:$0xff]   ;;  %v444_v44 = vld [vmem:[%s9970_s27 + $0x4d8] sm:$0xff] }
  0x8e   : > { %7998 = vmatpush3.bf16.msra.mxu1 %v9127_v55  ;;  %7971 = vmatprep.subr.bf16.mxu0 %v9128_v56  ;;  %v9158_v55 = vld [vmem:[#allocation4 + $0x228] sm:$0xff]   ;;  %v516_v45 = vld [vmem:[%s9970_s27 + $0x718] sm:$0xff]  ;;  %v9192_v52 = vld [vmem:[#allocation4 + $0x360] sm:$0xff]  }
  0x8f   : > { %7999 = vmatprep.subr.bf16.mxu1 %v9129_v57  ;;  %5466 = vmatprep.mubr.bf16.mxu0 %v582_v26  ;;  %v9159_v56 = vld [vmem:[#allocation4 + $0x2a8] sm:$0xff]   ;;  %v439_v57 = vld [vmem:[%s9970_s27 + $0x4b0] sm:$0xff]  ;;  %v660_v46 = vpack.c.bf16 %v516_v45, %v444_v44  ;;  %v9193_v53 = vld [vmem:[#allocation4 + $0x3e0] sm:$0xff]  }
  0x90   : > { %5515 = vmatprep.mubr.bf16.mxu1 %v584_v30  ;;  %v371_v26 = vld [vmem:[%s9970_s27 + $0x290] sm:$0xff]  ;;  %v9182_v30 = vld [vmem:[#allocation4 + $0x338] sm:$0xff]   ;;  %v9224_v44 = vld [vmem:[#allocation4 + $0x460] sm:$0xff]  }
  0x91   : > { %7972 = vmatpush3.bf16.msra.mxu0 %v9130_v58  ;;  %v511_v58 = vld [vmem:[%s9970_s27 + $0x6f0] sm:$0xff]  ;;  %v587_v27 = vpack.c.bf16 %v371_v26, %v299_v24  ;;  %v9225_v45 = vld [vmem:[#allocation4 + $0x4e0] sm:$0xff]  }
  0x92   : > { %8000 = vmatpush3.bf16.msra.mxu1 %v9131_v59  ;;  %7973 = vmatprep.subr.bf16.mxu0 %v9132_v60  ;;  %v655_v59 = vpack.c.bf16 %v511_v58, %v439_v57  ;;  %v9160_v60 = vld [vmem:[#allocation4 + $0x260] sm:$0xff]   ;;  %v9197_v57 = vld [vmem:[#allocation4 + $0x3d8] sm:$0xff]   ;;  %v9216_v24 = vld [vmem:[#allocation4 + $0x470] sm:$0xff]  }
  0x93   : > { %8001 = vmatprep.subr.bf16.mxu1 %v9133_v61  ;;  %v9161_v61 = vld [vmem:[#allocation4 + $0x2e0] sm:$0xff]   ;;  %v9198_v58 = vld [vmem:[#allocation4 + $0x318] sm:$0xff]   ;;  %v9218_v26 = vld [vmem:[#allocation4 + $0x430] sm:$0xff]  }
  0x95   : > { %7974 = vmatpush3.bf16.msra.mxu0 %v9134_v62  ;;  %v9162_v62 = vld [vmem:[#allocation4 + $0x220] sm:$0xff]  }
  0x96   : > { %8002 = vmatpush3.bf16.msra.mxu1 %v9135_v63  ;;  %7975 = vmatprep.subr.bf16.mxu0 %v9136_v9  ;;  %v9163_v63 = vld [vmem:[#allocation4 + $0x2a0] sm:$0xff]   ;;  %v9173_v9 = vld [vmem:[#allocation4 + $0x2c8] sm:$0xff]  }
  0x97   : > { %8003 = vmatprep.subr.bf16.mxu1 %v9137_v10  ;;  %v9174_v10 = vld [vmem:[#allocation4 + $0x208] sm:$0xff]  }
  0x99   : > { %7976 = vmatpush3.bf16.msra.mxu0 %v9138_v14  ;;  %v9178_v14 = vld [vmem:[#allocation4 + $0x200] sm:$0xff]  }
  0x9a   : > { %8004 = vmatpush3.bf16.msra.mxu1 %v9139_v15  ;;  %7977 = vmatprep.subr.bf16.mxu0 %v9140_v16  ;;  %v9179_v15 = vld [vmem:[#allocation4 + $0x280] sm:$0xff]   ;;  %v298_v16 = vld [vmem:[%s9970_s27 + $0x48] sm:$0xff] }
  0x9b   : > { %8005 = vmatprep.subr.bf16.mxu1 %v9141_v17  ;;  %v370_v17 = vld [vmem:[%s9970_s27 + $0x288] sm:$0xff] }
  0x9d   : > { %7978 = vmatpush3.bf16.msra.mxu0 %v9142_v18  ;;  %v300_v18 = vld [vmem:[%s9970_s27 + $0x58] sm:$0xff] }
  0x9e   : > { %8006 = vmatpush3.bf16.msra.mxu1 %v9143_v19  ;;  %7979 = vmatprep.subr.bf16.mxu0 %v9144_v20  ;;  %v372_v19 = vld [vmem:[%s9970_s27 + $0x298] sm:$0xff]  ;;  %v586_v20 = vpack.c.bf16 %v370_v17, %v298_v16  ;;  %v303_v17 = vld [vmem:[%s9970_s27 + $0x70] sm:$0xff] }
  0x9f   : > { %8007 = vmatprep.subr.bf16.mxu1 %v9145_v21  ;;  %v588_v21 = vpack.c.bf16 %v372_v19, %v300_v18  ;;  %v375_v18 = vld [vmem:[%s9970_s27 + $0x2b0] sm:$0xff] }
  0xa0   : > { %v591_v19 = vpack.c.bf16 %v375_v18, %v303_v17  ;;  %v9249_v17 = vld [vmem:[#allocation4 + $0x5f0] sm:$0xff]  }
  0xa1   : > { %7980 = vmatpush3.bf16.msra.mxu0 %v9146_v22  ;;  %v297_v22 = vld [vmem:[%s9970_s27 + $0x40] sm:$0xff]  ;;  %v9250_v18 = vld [vmem:[#allocation4 + $0x530] sm:$0xff]  }
  0xa2   : > { %8008 = vmatpush3.bf16.msra.mxu1 %v9147_v23  ;;  %8021 = vmatprep.subr.bf16.mxu0 %v9148_v36  ;;  %v369_v23 = vld [vmem:[%s9970_s27 + $0x280] sm:$0xff]  ;;  %v442_v36 = vld [vmem:[%s9970_s27 + $0x4c8] sm:$0xff] }
  0xa3   : > { %8049 = vmatprep.subr.bf16.mxu1 %v9149_v37  ;;  %v585_v25 = vpack.c.bf16 %v369_v23, %v297_v22  ;;  %v514_v37 = vld [vmem:[%s9970_s27 + $0x708] sm:$0xff]  ;;  %v9214_v22 = vld [vmem:[#allocation4 + $0x438] sm:$0xff]  }
  0xa4   : > { %5467 = vmatmul.mubr.bf16.vlgmr.msra.gmra.mxu0 %v581_v34  ;;  %v9186_v34 = vld [vmem:[#allocation4 + $0x330] sm:$0xff]   ;;  %v9215_v23 = vld [vmem:[#allocation4 + $0x4b8] sm:$0xff]  }
  0xa5   : > { %5516 = vmatmul.mubr.bf16.vlgmr.msra.gmra.mxu1 %v583_v35  ;;  %8022 = vmatpush3.bf16.msra.mxu0 %v9150_v38  ;;  %v9187_v35 = vld [vmem:[#allocation4 + $0x3b0] sm:$0xff]   ;;  %v658_v38 = vpack.c.bf16 %v514_v37, %v442_v36  ;;  %v448_v36 = vld [vmem:[%s9970_s27 + $0x4f8] sm:$0xff] }
  0xa6   : > { %8050 = vmatpush3.bf16.msra.mxu1 %v9151_v39  ;;  %8023 = vmatprep.subr.bf16.mxu0 %v9152_v40  ;;  %v441_v39 = vld [vmem:[%s9970_s27 + $0x4c0] sm:$0xff]  ;;  %v520_v37 = vld [vmem:[%s9970_s27 + $0x738] sm:$0xff] }
  0xa7   : > { %8051 = vmatprep.subr.bf16.mxu1 %v9153_v41  ;;  %5474 = vmatprep.mubr.bf16.mxu0 %v654_v47  ;;  %v513_v40 = vld [vmem:[%s9970_s27 + $0x700] sm:$0xff]  ;;  %v9190_v47 = vld [vmem:[#allocation4 + $0x328] sm:$0xff]  }
  0xa8   : > { %5523 = vmatprep.mubr.bf16.mxu1 %v656_v54  ;;  %v657_v41 = vpack.c.bf16 %v513_v40, %v441_v39  ;;  %v9194_v54 = vld [vmem:[#allocation4 + $0x320] sm:$0xff]   ;;  %v9222_v39 = vld [vmem:[#allocation4 + $0x428] sm:$0xff]  }
  0xa9   : > { %8024 = vmatpush3.bf16.msra.mxu0 %v9154_v42  ;;  %v9188_v42 = vld [vmem:[#allocation4 + $0x368] sm:$0xff]  }
  0xaa   : > { %8052 = vmatpush3.bf16.msra.mxu1 %v9155_v43  ;;  %8025 = vmatprep.subr.bf16.mxu0 %v9156_v50  ;;  %v9189_v43 = vld [vmem:[#allocation4 + $0x3e8] sm:$0xff]   ;;  %v515_v50 = vld [vmem:[%s9970_s27 + $0x710] sm:$0xff] }
  0xab   : > { %8053 = vmatprep.subr.bf16.mxu1 %v9157_v51  ;;  %v9223_v40 = vld [vmem:[#allocation4 + $0x4a8] sm:$0xff]  }
  0xac   : > { %5475 = vmatmul.mubr.bf16.gmra.mxu0 %v653_v49  ;;  %v443_v49 = vld [vmem:[%s9970_s27 + $0x4d0] sm:$0xff] }
  0xad   : > { %8026 = vmatpush3.bf16.msra.mxu0 %v9158_v55  ;;  %5524 = vmatmul.mubr.bf16.gmra.mxu1 %v655_v59  ;;  %v659_v51 = vpack.c.bf16 %v515_v50, %v443_v49  ;;  %v9195_v55 = vld [vmem:[#allocation4 + $0x3a0] sm:$0xff]   ;;  %v9199_v59 = vld [vmem:[#allocation4 + $0x398] sm:$0xff]  }
  0xae   : > { %8054 = vmatpush3.bf16.msra.mxu1 %v9159_v56  ;;  %8027 = vmatprep.subr.bf16.mxu0 %v9160_v60  ;;  %v9196_v56 = vld [vmem:[#allocation4 + $0x358] sm:$0xff]   ;;  %v9200_v60 = vld [vmem:[#allocation4 + $0x350] sm:$0xff]  }
  0xaf   : > { %8055 = vmatprep.subr.bf16.mxu1 %v9161_v61  ;;  %5564 = vmatprep.mubr.bf16.mxu0 %v586_v20  ;;  %v9201_v61 = vld [vmem:[#allocation4 + $0x3d0] sm:$0xff]   ;;  %v9212_v20 = vld [vmem:[#allocation4 + $0x478] sm:$0xff]  }
  0xb0   : > { %5613 = vmatprep.mubr.bf16.mxu1 %v588_v21  ;;  %v9213_v21 = vld [vmem:[#allocation4 + $0x4f8] sm:$0xff]  }
  0xb1   : > { %8028 = vmatpush3.bf16.msra.mxu0 %v9162_v62  ;;  %v9202_v62 = vld [vmem:[#allocation4 + $0x310] sm:$0xff]   ;;  %v9229_v49 = vld [vmem:[#allocation4 + $0x4d8] sm:$0xff]  }
  0xb2   : > { %8056 = vmatpush3.bf16.msra.mxu1 %v9163_v63  ;;  %8029 = vmatprep.subr.bf16.mxu0 %v9164_v0  ;;  %v9203_v63 = vld [vmem:[#allocation4 + $0x390] sm:$0xff]   ;;  %v9204_v0 = vld [vmem:[#allocation4 + $0x348] sm:$0xff]   ;;  %v9230_v50 = vld [vmem:[#allocation4 + $0x418] sm:$0xff]  }
  0xb3   : > { %8057 = vmatprep.subr.bf16.mxu1 %v9165_v1  ;;  %v9205_v1 = vld [vmem:[#allocation4 + $0x3c8] sm:$0xff]  }
  0xb5   : > { %8030 = vmatpush3.bf16.msra.mxu0 %v9166_v2  ;;  %v9206_v2 = vld [vmem:[#allocation4 + $0x308] sm:$0xff]  }
  0xb6   : > { %8058 = vmatpush3.bf16.msra.mxu1 %v9167_v3  ;;  %8031 = vmatprep.subr.bf16.mxu0 %v9168_v4  ;;  %v9207_v3 = vld [vmem:[#allocation4 + $0x388] sm:$0xff]   ;;  %v9208_v4 = vld [vmem:[#allocation4 + $0x340] sm:$0xff]  }
  0xb7   : > { %8059 = vmatprep.subr.bf16.mxu1 %v9169_v5  ;;  %v9209_v5 = vld [vmem:[#allocation4 + $0x3c0] sm:$0xff]  }
  0xb9   : > { %8032 = vmatpush3.bf16.msra.mxu0 %v9170_v6  ;;  %v9210_v6 = vld [vmem:[#allocation4 + $0x300] sm:$0xff]  }
  0xba   : > { %8060 = vmatpush3.bf16.msra.mxu1 %v9171_v7  ;;  %8033 = vmatprep.subr.bf16.mxu0 %v9172_v8  ;;  %v9211_v7 = vld [vmem:[#allocation4 + $0x380] sm:$0xff]   ;;  %v302_v8 = vld [vmem:[%s9970_s27 + $0x68] sm:$0xff] }
  0xbb   : > { %8061 = vmatprep.subr.bf16.mxu1 %v9173_v9  ;;  %v374_v9 = vld [vmem:[%s9970_s27 + $0x2a8] sm:$0xff] }
  0xbd   : > { %8034 = vmatpush3.bf16.msra.mxu0 %v9174_v10  ;;  %v304_v10 = vld [vmem:[%s9970_s27 + $0x78] sm:$0xff] }
  0xbe   : > { %8062 = vmatpush3.bf16.msra.mxu1 %v9175_v11  ;;  %8035 = vmatprep.subr.bf16.mxu0 %v9176_v12  ;;  %v590_v11 = vpack.c.bf16 %v374_v9, %v302_v8  ;;  %v376_v12 = vld [vmem:[%s9970_s27 + $0x2b8] sm:$0xff]  ;;  %v307_v8 = vld [vmem:[%s9970_s27 + $0x90] sm:$0xff] }
  0xbf   : > { %8063 = vmatprep.subr.bf16.mxu1 %v9177_v13  ;;  %v301_v13 = vld [vmem:[%s9970_s27 + $0x60] sm:$0xff]  ;;  %v379_v9 = vld [vmem:[%s9970_s27 + $0x2d0] sm:$0xff] }
  0xc1   : > { %8036 = vmatpush3.bf16.msra.mxu0 %v9178_v14  ;;  %v373_v14 = vld [vmem:[%s9970_s27 + $0x2a0] sm:$0xff] }
  0xc2   : > { %8064 = vmatpush3.bf16.msra.mxu1 %v9179_v15  ;;  %8077 = vmatprep.subr.bf16.mxu0 %v9180_v28  ;;  %v592_v15 = vpack.c.bf16 %v376_v12, %v304_v10  ;;  %v589_v16 = vpack.c.bf16 %v373_v14, %v301_v13  ;;  %v446_v28 = vld [vmem:[%s9970_s27 + $0x4e8] sm:$0xff]  ;;  %v9244_v12 = vld [vmem:[#allocation4 + $0x578] sm:$0xff]  }
  0xc3   : > { %8105 = vmatprep.subr.bf16.mxu1 %v9181_v29  ;;  %v518_v29 = vld [vmem:[%s9970_s27 + $0x728] sm:$0xff]  ;;  %v9245_v13 = vld [vmem:[#allocation4 + $0x5f8] sm:$0xff]  }
  0xc4   : > { %5565 = vmatmul.mubr.bf16.vlgmr.msra.gmra.mxu0 %v585_v25  ;;  %v9217_v25 = vld [vmem:[#allocation4 + $0x4f0] sm:$0xff]   ;;  %v9246_v14 = vld [vmem:[#allocation4 + $0x538] sm:$0xff]  }
  0xc5   : > { %5614 = vmatmul.mubr.bf16.vlgmr.msra.gmra.mxu1 %v587_v27  ;;  %8078 = vmatpush3.bf16.msra.mxu0 %v9182_v30  ;;  %v9219_v27 = vld [vmem:[#allocation4 + $0x4b0] sm:$0xff]   ;;  %v445_v30 = vld [vmem:[%s9970_s27 + $0x4e0] sm:$0xff] }
  0xc6   : > { %8106 = vmatpush3.bf16.msra.mxu1 %v9183_v31  ;;  %8079 = vmatprep.subr.bf16.mxu0 %v9184_v32  ;;  %v517_v31 = vld [vmem:[%s9970_s27 + $0x720] sm:$0xff]  ;;  %v662_v32 = vpack.c.bf16 %v518_v29, %v446_v28  ;;  %v452_v28 = vld [vmem:[%s9970_s27 + $0x518] sm:$0xff] }
  0xc7   : > { %8107 = vmatprep.subr.bf16.mxu1 %v9185_v33  ;;  %5572 = vmatprep.mubr.bf16.mxu0 %v658_v38  ;;  %v661_v33 = vpack.c.bf16 %v517_v31, %v445_v30  ;;  %v664_v38 = vpack.c.bf16 %v520_v37, %v448_v36  ;;  %v524_v29 = vld [vmem:[%s9970_s27 + $0x758] sm:$0xff]  ;;  %v9254_v31 = vld [vmem:[#allocation4 + $0x528] sm:$0xff]   ;;  %v9256_v36 = vld [vmem:[#allocation4 + $0x560] sm:$0xff]  }
  0xc8   : > { %5621 = vmatprep.mubr.bf16.mxu1 %v660_v46  ;;  %v9226_v46 = vld [vmem:[#allocation4 + $0x420] sm:$0xff]   ;;  %v668_v30 = vpack.c.bf16 %v524_v29, %v452_v28  ;;  %v9286_v29 = vld [vmem:[#allocation4 + $0x628] sm:$0xff]  }
  0xc9   : > { %8080 = vmatpush3.bf16.msra.mxu0 %v9186_v34  ;;  %v9220_v34 = vld [vmem:[#allocation4 + $0x468] sm:$0xff]   ;;  %v9257_v37 = vld [vmem:[#allocation4 + $0x5e0] sm:$0xff]  }
  0xca   : > { %8108 = vmatpush3.bf16.msra.mxu1 %v9187_v35  ;;  %8081 = vmatprep.subr.bf16.mxu0 %v9188_v42  ;;  %v9221_v35 = vld [vmem:[#allocation4 + $0x4e8] sm:$0xff]   ;;  %v519_v42 = vld [vmem:[%s9970_s27 + $0x730] sm:$0xff] }
  0xcb   : > { %8109 = vmatprep.subr.bf16.mxu1 %v9189_v43 }
  0xcc   : > { %5573 = vmatmul.mubr.bf16.gmra.mxu0 %v657_v41  ;;  %v447_v41 = vld [vmem:[%s9970_s27 + $0x4f0] sm:$0xff] }
  0xcd   : > { %8082 = vmatpush3.bf16.msra.mxu0 %v9190_v47  ;;  %5622 = vmatmul.mubr.bf16.gmra.mxu1 %v659_v51  ;;  %v663_v43 = vpack.c.bf16 %v519_v42, %v447_v41  ;;  %v9227_v47 = vld [vmem:[#allocation4 + $0x4a0] sm:$0xff]   ;;  %v9231_v51 = vld [vmem:[#allocation4 + $0x498] sm:$0xff]  }
  0xce   : > { %8110 = vmatpush3.bf16.msra.mxu1 %v9191_v48  ;;  %8083 = vmatprep.subr.bf16.mxu0 %v9192_v52  ;;  %v9228_v48 = vld [vmem:[#allocation4 + $0x458] sm:$0xff]   ;;  %v9232_v52 = vld [vmem:[#allocation4 + $0x450] sm:$0xff]  }
  0xcf   : > { %8111 = vmatprep.subr.bf16.mxu1 %v9193_v53  ;;  %5662 = vmatprep.mubr.bf16.mxu0 %v590_v11  ;;  %v9233_v53 = vld [vmem:[#allocation4 + $0x4d0] sm:$0xff]   ;;  %v595_v11 = vpack.c.bf16 %v379_v9, %v307_v8  ;;  %v9261_v41 = vld [vmem:[#allocation4 + $0x5d8] sm:$0xff]  }
  0xd0   : > { %5711 = vmatprep.mubr.bf16.mxu1 %v592_v15  ;;  %v9247_v15 = vld [vmem:[#allocation4 + $0x5b8] sm:$0xff]   ;;  %v9280_v8 = vld [vmem:[#allocation4 + $0x670] sm:$0xff]  }
  0xd1   : > { %8084 = vmatpush3.bf16.msra.mxu0 %v9194_v54  ;;  %v9234_v54 = vld [vmem:[#allocation4 + $0x410] sm:$0xff]   ;;  %v9262_v42 = vld [vmem:[#allocation4 + $0x518] sm:$0xff]  }
  0xd2   : > { %8112 = vmatpush3.bf16.msra.mxu1 %v9195_v55  ;;  %8085 = vmatprep.subr.bf16.mxu0 %v9196_v56  ;;  %v9235_v55 = vld [vmem:[#allocation4 + $0x490] sm:$0xff]   ;;  %v9236_v56 = vld [vmem:[#allocation4 + $0x448] sm:$0xff]  }
  0xd3   : > { %8113 = vmatprep.subr.bf16.mxu1 %v9197_v57  ;;  %v9237_v57 = vld [vmem:[#allocation4 + $0x4c8] sm:$0xff]   ;;  %v9281_v9 = vld [vmem:[#allocation4 + $0x6f0] sm:$0xff]  }
  0xd5   : > { %8086 = vmatpush3.bf16.msra.mxu0 %v9198_v58  ;;  %v9238_v58 = vld [vmem:[#allocation4 + $0x408] sm:$0xff]  }
  0xd6   : > { %8114 = vmatpush3.bf16.msra.mxu1 %v9199_v59  ;;  %8087 = vmatprep.subr.bf16.mxu0 %v9200_v60  ;;  %v9239_v59 = vld [vmem:[#allocation4 + $0x488] sm:$0xff]   ;;  %v9240_v60 = vld [vmem:[#allocation4 + $0x440] sm:$0xff]  }
  0xd7   : > { %8115 = vmatprep.subr.bf16.mxu1 %v9201_v61  ;;  %v9241_v61 = vld [vmem:[#allocation4 + $0x4c0] sm:$0xff]  }
  0xd9   : > { %8088 = vmatpush3.bf16.msra.mxu0 %v9202_v62  ;;  %v9242_v62 = vld [vmem:[#allocation4 + $0x400] sm:$0xff]  }
  0xda   : > { %8116 = vmatpush3.bf16.msra.mxu1 %v9203_v63  ;;  %8089 = vmatprep.subr.bf16.mxu0 %v9204_v0  ;;  %v9243_v63 = vld [vmem:[#allocation4 + $0x480] sm:$0xff]   ;;  %v306_v0 = vld [vmem:[%s9970_s27 + $0x88] sm:$0xff] }
  0xdb   : > { %8117 = vmatprep.subr.bf16.mxu1 %v9205_v1  ;;  %v378_v1 = vld [vmem:[%s9970_s27 + $0x2c8] sm:$0xff] }
  0xdd   : > { %8090 = vmatpush3.bf16.msra.mxu0 %v9206_v2  ;;  %v594_v2 = vpack.c.bf16 %v378_v1, %v306_v0  ;;  %v311_v0 = vld [vmem:[%s9970_s27 + $0xb0] sm:$0xff] }
  0xde   : > { %8118 = vmatpush3.bf16.msra.mxu1 %v9207_v3  ;;  %8091 = vmatprep.subr.bf16.mxu0 %v9208_v4  ;;  %v308_v3 = vld [vmem:[%s9970_s27 + $0x98] sm:$0xff] }
  0xdf   : > { %8119 = vmatprep.subr.bf16.mxu1 %v9209_v5  ;;  %v380_v4 = vld [vmem:[%s9970_s27 + $0x2d8] sm:$0xff]  ;;  %v305_v5 = vld [vmem:[%s9970_s27 + $0x80] sm:$0xff] }
  0xe1   : > { %8092 = vmatpush3.bf16.msra.mxu0 %v9210_v6  ;;  %v596_v6 = vpack.c.bf16 %v380_v4, %v308_v3  ;;  %v9276_v4 = vld [vmem:[#allocation4 + $0x678] sm:$0xff]  }
  0xe2   : > { %8120 = vmatpush3.bf16.msra.mxu1 %v9211_v7  ;;  %8133 = vmatprep.subr.bf16.mxu0 %v9212_v20  ;;  %v377_v7 = vld [vmem:[%s9970_s27 + $0x2c0] sm:$0xff]  ;;  %v450_v20 = vld [vmem:[%s9970_s27 + $0x508] sm:$0xff] }
  0xe3   : > { %8161 = vmatprep.subr.bf16.mxu1 %v9213_v21  ;;  %v593_v10 = vpack.c.bf16 %v377_v7, %v305_v5  ;;  %v522_v21 = vld [vmem:[%s9970_s27 + $0x748] sm:$0xff]  ;;  %v9277_v5 = vld [vmem:[#allocation4 + $0x6f8] sm:$0xff]  }
  0xe4   : > { %5663 = vmatmul.mubr.bf16.vlgmr.msra.gmra.mxu0 %v589_v16  ;;  %v9248_v16 = vld [vmem:[#allocation4 + $0x570] sm:$0xff]   ;;  %v9279_v7 = vld [vmem:[#allocation4 + $0x6b8] sm:$0xff]  }
  0xe5   : > { %5712 = vmatmul.mubr.bf16.vlgmr.msra.gmra.mxu1 %v591_v19  ;;  %8134 = vmatpush3.bf16.msra.mxu0 %v9214_v22  ;;  %v9251_v19 = vld [vmem:[#allocation4 + $0x5b0] sm:$0xff]   ;;  %v449_v22 = vld [vmem:[%s9970_s27 + $0x500] sm:$0xff] }
  0xe6   : > { %8162 = vmatpush3.bf16.msra.mxu1 %v9215_v23  ;;  %8135 = vmatprep.subr.bf16.mxu0 %v9216_v24  ;;  %v666_v23 = vpack.c.bf16 %v522_v21, %v450_v20  ;;  %v521_v24 = vld [vmem:[%s9970_s27 + $0x740] sm:$0xff]  ;;  %v9284_v21 = vld [vmem:[#allocation4 + $0x668] sm:$0xff]  }
  0xe7   : > { %8163 = vmatprep.subr.bf16.mxu1 %v9217_v25  ;;  %5670 = vmatprep.mubr.bf16.mxu0 %v662_v32  ;;  %v665_v25 = vpack.c.bf16 %v521_v24, %v449_v22  ;;  %v9255_v32 = vld [vmem:[#allocation4 + $0x5a8] sm:$0xff]  }
  0xe8   : > { %5719 = vmatprep.mubr.bf16.mxu1 %v664_v38  ;;  %v9258_v38 = vld [vmem:[#allocation4 + $0x520] sm:$0xff]   ;;  %v9285_v24 = vld [vmem:[#allocation4 + $0x6e8] sm:$0xff]  }
  0xe9   : > { %8136 = vmatpush3.bf16.msra.mxu0 %v9218_v26  ;;  %v9252_v26 = vld [vmem:[#allocation4 + $0x568] sm:$0xff]  }
  0xea   : > { %8164 = vmatpush3.bf16.msra.mxu1 %v9219_v27  ;;  %8137 = vmatprep.subr.bf16.mxu0 %v9220_v34  ;;  %v9253_v27 = vld [vmem:[#allocation4 + $0x5e8] sm:$0xff]   ;;  %v523_v34 = vld [vmem:[%s9970_s27 + $0x750] sm:$0xff] }
  0xeb   : > { %8165 = vmatprep.subr.bf16.mxu1 %v9221_v35 }
  0xec   : > { %5671 = vmatmul.mubr.bf16.gmra.mxu0 %v661_v33  ;;  %v451_v33 = vld [vmem:[%s9970_s27 + $0x510] sm:$0xff] }
  0xed   : > { %8138 = vmatpush3.bf16.msra.mxu0 %v9222_v39  ;;  %5720 = vmatmul.mubr.bf16.gmra.mxu1 %v663_v43  ;;  %v667_v35 = vpack.c.bf16 %v523_v34, %v451_v33  ;;  %v9259_v39 = vld [vmem:[#allocation4 + $0x5a0] sm:$0xff]   ;;  %v9263_v43 = vld [vmem:[#allocation4 + $0x598] sm:$0xff]  }
  0xee   : > { %8166 = vmatpush3.bf16.msra.mxu1 %v9223_v40  ;;  %8139 = vmatprep.subr.bf16.mxu0 %v9224_v44  ;;  %v9260_v40 = vld [vmem:[#allocation4 + $0x558] sm:$0xff]   ;;  %v9264_v44 = vld [vmem:[#allocation4 + $0x550] sm:$0xff]   ;;  %v9288_v34 = vld [vmem:[#allocation4 + $0x660] sm:$0xff]  }
  0xef   : > { %8167 = vmatprep.subr.bf16.mxu1 %v9225_v45  ;;  %5760 = vmatprep.mubr.bf16.mxu0 %v594_v2  ;;  %v9265_v45 = vld [vmem:[#allocation4 + $0x5d0] sm:$0xff]  }
  0xf0   : > { %5809 = vmatprep.mubr.bf16.mxu1 %v596_v6  ;;  %v383_v2 = vld [vmem:[%s9970_s27 + $0x2f0] sm:$0xff]  ;;  %v9278_v6 = vld [vmem:[#allocation4 + $0x638] sm:$0xff]  }
  0xf1   : > { %8140 = vmatpush3.bf16.msra.mxu0 %v9226_v46  ;;  %v9266_v46 = vld [vmem:[#allocation4 + $0x510] sm:$0xff]   ;;  %v599_v3 = vpack.c.bf16 %v383_v2, %v311_v0  ;;  %v386_v0 = vld [vmem:[%s9970_s27 + $0x308] sm:$0xff] }
  0xf2   : > { %8168 = vmatpush3.bf16.msra.mxu1 %v9227_v47  ;;  %8141 = vmatprep.subr.bf16.mxu0 %v9228_v48  ;;  %v9267_v47 = vld [vmem:[#allocation4 + $0x590] sm:$0xff]   ;;  %v9268_v48 = vld [vmem:[#allocation4 + $0x548] sm:$0xff]  }
  0xf3   : > { %8169 = vmatprep.subr.bf16.mxu1 %v9229_v49  ;;  %v9269_v49 = vld [vmem:[#allocation4 + $0x5c8] sm:$0xff]  }
  0xf5   : > { %8142 = vmatpush3.bf16.msra.mxu0 %v9230_v50  ;;  %v9270_v50 = vld [vmem:[#allocation4 + $0x508] sm:$0xff]  }
  0xf6   : > { %8170 = vmatpush3.bf16.msra.mxu1 %v9231_v51  ;;  %8143 = vmatprep.subr.bf16.mxu0 %v9232_v52  ;;  %v9271_v51 = vld [vmem:[#allocation4 + $0x588] sm:$0xff]   ;;  %v9272_v52 = vld [vmem:[#allocation4 + $0x540] sm:$0xff]  }
  0xf7   : > { %8171 = vmatprep.subr.bf16.mxu1 %v9233_v53  ;;  %v9273_v53 = vld [vmem:[#allocation4 + $0x5c0] sm:$0xff]  }
  0xf9   : > { %8144 = vmatpush3.bf16.msra.mxu0 %v9234_v54  ;;  %v9274_v54 = vld [vmem:[#allocation4 + $0x500] sm:$0xff]  }
  0xfa   : > { %8172 = vmatpush3.bf16.msra.mxu1 %v9235_v55  ;;  %8145 = vmatprep.subr.bf16.mxu0 %v9236_v56  ;;  %v9275_v55 = vld [vmem:[#allocation4 + $0x580] sm:$0xff]   ;;  %v310_v56 = vld [vmem:[%s9970_s27 + $0xa8] sm:$0xff] }
  0xfb   : > { %8173 = vmatprep.subr.bf16.mxu1 %v9237_v57  ;;  %v382_v57 = vld [vmem:[%s9970_s27 + $0x2e8] sm:$0xff] }
  0xfd   : > { %8146 = vmatpush3.bf16.msra.mxu0 %v9238_v58  ;;  %v312_v58 = vld [vmem:[%s9970_s27 + $0xb8] sm:$0xff] }
  0xfe   : > { %8174 = vmatpush3.bf16.msra.mxu1 %v9239_v59  ;;  %8147 = vmatprep.subr.bf16.mxu0 %v9240_v60  ;;  %v384_v59 = vld [vmem:[%s9970_s27 + $0x2f8] sm:$0xff]  ;;  %v598_v60 = vpack.c.bf16 %v382_v57, %v310_v56  ;;  %v9305_v56 = vld [vmem:[#allocation4 + $0x6c0] sm:$0xff]  }
  0xff   : > { %8175 = vmatprep.subr.bf16.mxu1 %v9241_v61  ;;  %v600_v61 = vpack.c.bf16 %v384_v59, %v312_v58  ;;  %v9306_v58 = vld [vmem:[#allocation4 + $0x600] sm:$0xff]  }
 0x101   : > { %8148 = vmatpush3.bf16.msra.mxu0 %v9242_v62  ;;  %v309_v62 = vld [vmem:[%s9970_s27 + $0xa0] sm:$0xff] }
 0x102   : > { %8176 = vmatpush3.bf16.msra.mxu1 %v9243_v63  ;;  %8189 = vmatprep.subr.bf16.mxu0 %v9244_v12  ;;  %v381_v63 = vld [vmem:[%s9970_s27 + $0x2e0] sm:$0xff]  ;;  %v9283_v12 = vld [vmem:[#allocation4 + $0x6b0] sm:$0xff]  }
 0x103   : > { %8217 = vmatprep.subr.bf16.mxu1 %v9245_v13  ;;  %v597_v1 = vpack.c.bf16 %v381_v63, %v309_v62  ;;  %v454_v13 = vld [vmem:[%s9970_s27 + $0x528] sm:$0xff] }
 0x104   : > { %5761 = vmatmul.mubr.bf16.vlgmr.msra.gmra.mxu0 %v593_v10  ;;  %v9282_v10 = vld [vmem:[#allocation4 + $0x630] sm:$0xff]   ;;  %v314_v63 = vld [vmem:[%s9970_s27 + $0xc8] sm:$0xff] }
 0x105   : > { %5810 = vmatmul.mubr.bf16.vlgmr.msra.gmra.mxu1 %v595_v11  ;;  %8190 = vmatpush3.bf16.msra.mxu0 %v9246_v14  ;;  %v526_v14 = vld [vmem:[%s9970_s27 + $0x768] sm:$0xff] }
 0x106   : > { %8218 = vmatpush3.bf16.msra.mxu1 %v9247_v15  ;;  %8191 = vmatprep.subr.bf16.mxu0 %v9248_v16  ;;  %v670_v16 = vpack.c.bf16 %v526_v14, %v454_v13 }
 0x107   : > { %8219 = vmatprep.subr.bf16.mxu1 %v9249_v17  ;;  %5768 = vmatprep.mubr.bf16.mxu0 %v666_v23  ;;  %v453_v17 = vld [vmem:[%s9970_s27 + $0x520] sm:$0xff] }
 0x108   : > { %5817 = vmatprep.mubr.bf16.mxu1 %v668_v30  ;;  %v9287_v30 = vld [vmem:[#allocation4 + $0x6a8] sm:$0xff]  }
 0x109   : > { %8192 = vmatpush3.bf16.msra.mxu0 %v9250_v18  ;;  %v525_v18 = vld [vmem:[%s9970_s27 + $0x760] sm:$0xff] }
 0x10a   : > { %8220 = vmatpush3.bf16.msra.mxu1 %v9251_v19  ;;  %8193 = vmatprep.subr.bf16.mxu0 %v9252_v26  ;;  %v669_v20 = vpack.c.bf16 %v525_v18, %v453_v17  ;;  %v9309_v18 = vld [vmem:[#allocation4 + $0x7f8] sm:$0xff]  }
 0x10b   : > { %8221 = vmatprep.subr.bf16.mxu1 %v9253_v27  ;;  %v528_v27 = vld [vmem:[%s9970_s27 + $0x778] sm:$0xff] }
 0x10c   : > { %5769 = vmatmul.mubr.bf16.gmra.mxu0 %v665_v25  ;;  %v456_v25 = vld [vmem:[%s9970_s27 + $0x538] sm:$0xff] }
 0x10d   : > { %8194 = vmatpush3.bf16.msra.mxu0 %v9254_v31  ;;  %5818 = vmatmul.mubr.bf16.gmra.mxu1 %v667_v35  ;;  %v672_v28 = vpack.c.bf16 %v528_v27, %v456_v25  ;;  %v455_v31 = vld [vmem:[%s9970_s27 + $0x530] sm:$0xff]  ;;  %v9289_v35 = vld [vmem:[#allocation4 + $0x6e0] sm:$0xff]  }
 0x10e   : > { %8222 = vmatpush3.bf16.msra.mxu1 %v9255_v32  ;;  %8195 = vmatprep.subr.bf16.mxu0 %v9256_v36  ;;  %v527_v32 = vld [vmem:[%s9970_s27 + $0x770] sm:$0xff]  ;;  %v9290_v36 = vld [vmem:[#allocation4 + $0x620] sm:$0xff]  }
 0x10f   : > { %8223 = vmatprep.subr.bf16.mxu1 %v9257_v37  ;;  %5858 = vmatprep.mubr.bf16.mxu0 %v598_v60  ;;  %v671_v33 = vpack.c.bf16 %v527_v32, %v455_v31  ;;  %v9291_v37 = vld [vmem:[#allocation4 + $0x6a0] sm:$0xff]   ;;  %v9313_v32 = vld [vmem:[#allocation4 + $0x7f0] sm:$0xff]  }
 0x110   : > { %5907 = vmatprep.mubr.bf16.mxu1 %v600_v61  ;;  %v9307_v61 = vld [vmem:[#allocation4 + $0x680] sm:$0xff]  }
 0x111   : > { %8196 = vmatpush3.bf16.msra.mxu0 %v9258_v38  ;;  %v9292_v38 = vld [vmem:[#allocation4 + $0x658] sm:$0xff]  }
 0x112   : > { %8224 = vmatpush3.bf16.msra.mxu1 %v9259_v39  ;;  %8197 = vmatprep.subr.bf16.mxu0 %v9260_v40  ;;  %v9293_v39 = vld [vmem:[#allocation4 + $0x6d8] sm:$0xff]  }
 0x113   : > { %8225 = vmatprep.subr.bf16.mxu1 %v9261_v41  ;;  %v9294_v40 = vld [vmem:[#allocation4 + $0x618] sm:$0xff]  }
 0x114   : > { %v9295_v41 = vld [vmem:[#allocation4 + $0x698] sm:$0xff]  }
 0x115   : > { %8198 = vmatpush3.bf16.msra.mxu0 %v9262_v42  ;;  %v9296_v42 = vld [vmem:[#allocation4 + $0x650] sm:$0xff]  }
 0x116   : > { %8226 = vmatpush3.bf16.msra.mxu1 %v9263_v43  ;;  %8199 = vmatprep.subr.bf16.mxu0 %v9264_v44  ;;  %v9297_v43 = vld [vmem:[#allocation4 + $0x6d0] sm:$0xff]  }
 0x117   : > { %8227 = vmatprep.subr.bf16.mxu1 %v9265_v45  ;;  %v9298_v45 = vld [vmem:[#allocation4 + $0x610] sm:$0xff]  }
 0x119   : > { %8200 = vmatpush3.bf16.msra.mxu0 %v9266_v46  ;;  %v9299_v46 = vld [vmem:[#allocation4 + $0x690] sm:$0xff]  }
 0x11a   : > { %8228 = vmatpush3.bf16.msra.mxu1 %v9267_v47  ;;  %8201 = vmatprep.subr.bf16.mxu0 %v9268_v48  ;;  %v9300_v47 = vld [vmem:[#allocation4 + $0x648] sm:$0xff]  }
 0x11b   : > { %8229 = vmatprep.subr.bf16.mxu1 %v9269_v49  ;;  %v9301_v49 = vld [vmem:[#allocation4 + $0x6c8] sm:$0xff]  }
 0x11d   : > { %8202 = vmatpush3.bf16.msra.mxu0 %v9270_v50 }
 0x11e   : > { %8230 = vmatpush3.bf16.msra.mxu1 %v9271_v51  ;;  %8203 = vmatprep.subr.bf16.mxu0 %v9272_v52  ;;  %v9302_v51 = vld [vmem:[#allocation4 + $0x608] sm:$0xff]  }
 0x11f   : > { %8231 = vmatprep.subr.bf16.mxu1 %v9273_v53  ;;  %v9303_v52 = vld [vmem:[#allocation4 + $0x688] sm:$0xff]  }
 0x121   : > { %8204 = vmatpush3.bf16.msra.mxu0 %v9274_v54  ;;  %v9304_v54 = vld [vmem:[#allocation4 + $0x640] sm:$0xff]  }
 0x122   : > { %8232 = vmatpush3.bf16.msra.mxu1 %v9275_v55  ;;  %8245 = vmatprep.subr.bf16.mxu0 %v9276_v4  ;;  %v388_v4 = vld [vmem:[%s9970_s27 + $0x318] sm:$0xff] }
 0x123   : > { %8273 = vmatprep.subr.bf16.mxu1 %v9277_v5  ;;  %v313_v5 = vld [vmem:[%s9970_s27 + $0xc0] sm:$0xff] }
 0x124   : > { %5859 = vmatmul.mubr.bf16.vlgmr.msra.gmra.mxu0 %v597_v1  ;;  %v316_v1 = vld [vmem:[%s9970_s27 + $0xd8] sm:$0xff] }
 0x125   : > { %5908 = vmatmul.mubr.bf16.vlgmr.msra.gmra.mxu1 %v599_v3  ;;  %8246 = vmatpush3.bf16.msra.mxu0 %v9278_v6  ;;  %v602_v3 = vpack.c.bf16 %v386_v0, %v314_v63  ;;  %v385_v6 = vld [vmem:[%s9970_s27 + $0x300] sm:$0xff] }
 0x126   : > { %8274 = vmatpush3.bf16.msra.mxu1 %v9279_v7  ;;  %8247 = vmatprep.subr.bf16.mxu0 %v9280_v8 }
 0x127   : > { %8275 = vmatprep.subr.bf16.mxu1 %v9281_v9  ;;  %5866 = vmatprep.mubr.bf16.mxu0 %v670_v16  ;;  %v604_v9 = vpack.c.bf16 %v388_v4, %v316_v1 }
 0x128   : > { %5915 = vmatprep.mubr.bf16.mxu1 %v672_v28  ;;  %v9312_v28 = vld [vmem:[#allocation4 + $0x770] sm:$0xff]  }
 0x129   : > { %8248 = vmatpush3.bf16.msra.mxu0 %v9282_v10  ;;  %v601_v10 = vpack.c.bf16 %v385_v6, %v313_v5  ;;  %v9322_v6 = vld [vmem:[#allocation4 + $0x720] sm:$0xff]  }
 0x12a   : > { %8276 = vmatpush3.bf16.msra.mxu1 %v9283_v12  ;;  %8249 = vmatprep.subr.bf16.mxu0 %v9284_v21  ;;  %v387_v12 = vld [vmem:[%s9970_s27 + $0x310] sm:$0xff] }
 0x12b   : > { %8277 = vmatprep.subr.bf16.mxu1 %v9285_v24  ;;  %v7329_v24 = vld [vmem:[#allocation6] ss:$0 sm:$0xff] }
 0x12c   : > { %5867 = vmatmul.mubr.bf16.gmra.mxu0 %v669_v20  ;;  %v9310_v20 = vld [vmem:[#allocation4 + $0x738] sm:$0xff]  }
 0x12d   : > { %8250 = vmatpush3.bf16.msra.mxu0 %v9286_v29  ;;  %5916 = vmatmul.mubr.bf16.gmra.mxu1 %v671_v33 }
 0x12e   : > { %8278 = vmatpush3.bf16.msra.mxu1 %v9287_v30  ;;  %8251 = vmatprep.subr.bf16.mxu0 %v9288_v34  ;;  %v9314_v34 = vld [vmem:[#allocation4 + $0x730] sm:$0xff]  }
 0x12f   : > { %8279 = vmatprep.subr.bf16.mxu1 %v9289_v35  ;;  %5956 = vmatprep.mubr.bf16.mxu0 %v602_v3  ;;  %v9321_v3 = vld [vmem:[#allocation4 + $0x7e0] sm:$0xff]  }
 0x130   : > { %6005 = vmatprep.mubr.bf16.mxu1 %v604_v9 }
 0x131   : > { %8252 = vmatpush3.bf16.msra.mxu0 %v9290_v36 }
 0x132   : > { %8280 = vmatpush3.bf16.msra.mxu1 %v9291_v37  ;;  %8253 = vmatprep.subr.bf16.mxu0 %v9292_v38 }
 0x133   : > { %8281 = vmatprep.subr.bf16.mxu1 %v9293_v39 }
 0x135   : > { %8254 = vmatpush3.bf16.msra.mxu0 %v9294_v40  ;;  %v458_v40 = vld [vmem:[%s9970_s27 + $0x548] sm:$0xff] }
 0x136   : > { %8282 = vmatpush3.bf16.msra.mxu1 %v9295_v41  ;;  %8255 = vmatprep.subr.bf16.mxu0 %v9296_v42  ;;  %v530_v41 = vld [vmem:[%s9970_s27 + $0x788] sm:$0xff]  ;;  %v457_v42 = vld [vmem:[%s9970_s27 + $0x540] sm:$0xff] }
 0x137   : > { %8283 = vmatprep.subr.bf16.mxu1 %v9297_v43  ;;  %v529_v43 = vld [vmem:[%s9970_s27 + $0x780] sm:$0xff] }
 0x139   : > { %8256 = vmatpush3.bf16.msra.mxu0 %v9298_v45 }
 0x13a   : > { %8284 = vmatpush3.bf16.msra.mxu1 %v9299_v46  ;;  %8257 = vmatprep.subr.bf16.mxu0 %v9300_v47  ;;  %v673_v46 = vpack.c.bf16 %v529_v43, %v457_v42  ;;  %v9316_v47 = vld [vmem:[#allocation4 + $0x768] sm:$0xff]   ;;  %v320_v43 = vld [vmem:[%s9970_s27 + $0xf8] sm:$0xff] }
 0x13b   : > { %8285 = vmatprep.subr.bf16.mxu1 %v9301_v49  ;;  %v318_v42 = vld [vmem:[%s9970_s27 + $0xe8] sm:$0xff] }
 0x13d   : > { %8258 = vmatpush3.bf16.msra.mxu0 %v9302_v51  ;;  %v460_v51 = vld [vmem:[%s9970_s27 + $0x558] sm:$0xff] }
 0x13e   : > { %8286 = vmatpush3.bf16.msra.mxu1 %v9303_v52  ;;  %8259 = vmatprep.subr.bf16.mxu0 %v9304_v54  ;;  %v532_v52 = vld [vmem:[%s9970_s27 + $0x798] sm:$0xff] }
 0x13f   : > { %8287 = vmatprep.subr.bf16.mxu1 %v9305_v56  ;;  %v9318_v56 = vld [vmem:[#allocation4 + $0x728] sm:$0xff]  }
 0x141   : > { %8260 = vmatpush3.bf16.msra.mxu0 %v9306_v58  ;;  %v9319_v58 = vld [vmem:[#allocation4 + $0x7a8] sm:$0xff]  }
 0x142   : > { %8288 = vmatpush3.bf16.msra.mxu1 %v9307_v61  ;;  %v459_v61 = vld [vmem:[%s9970_s27 + $0x550] sm:$0xff] }
 0x143   : > { %8329 = vmatprep.subr.bf16.mxu1 %v9309_v18 }
 0x144   : > { %v7925_v11 = vpop.f32.mrf.mxu0  ;;  %5957 = vmatmul.mubr.bf16.vlgmr.msra.gmra.mxu0 %v601_v10  ;;  %v9324_v10 = vld [vmem:[#allocation4 + $0x758] sm:$0xff]  }
 0x145   : > { %v7953_v15 = vpop.f32.mrf.mxu1 }
 0x146   : > { %v7926_v19 = vpop.f32.mrf.mxu0 }
 0x147   : > { %v10076_v22 = vadd.f32 %v7926_v19, %v7925_v11  ;;  %v7954_v23 = vpop.f32.mrf.mxu1  ;;  %v315_v11 = vld [vmem:[%s9970_s27 + $0xd0] sm:$0xff] }
 0x148   : > { %v10079_v26 = vadd.f32 %v7954_v23, %v7953_v15  ;;  %v7928_v44 = vpop.f32.mrf.mxu0  ;;  %v603_v14 = vpack.c.bf16 %v387_v12, %v315_v11  ;;  %v9308_v15 = vld [vmem:[#allocation4 + $0x778] sm:$0xff]  }
 0x149   : > { %v7956_v48 = vpop.f32.mrf.mxu1  ;;  %8301 = vmatprep.subr.bf16.mxu0 %v9308_v15  ;;  %v9311_v23 = vld [vmem:[#allocation4 + $0x7b8] sm:$0xff]   ;;  %v5371_v27 = vadd.f32 %v10076_v22, %v7329_v24  ;;  %v9315_v22 = vld [vmem:[#allocation4 + $0x7b0] sm:$0xff]  }
 0x14a   : > { %v7929_v50 = vpop.f32.mrf.mxu0  ;;  %6006 = vmatmul.mubr.bf16.vlgmr.msra.gmra.mxu1 %v603_v14  ;;  %8302 = vmatpush3.bf16.msra.mxu0 %v9310_v20  ;;  %v9325_v12 = vld [vmem:[#allocation4 + $0x7d8] sm:$0xff]  }
 0x14b   : > { %v7957_v55 = vpop.f32.mrf.mxu1  ;;  %v7930_v16 = vadd.f32 %v7929_v50, %v7928_v44  ;;  %8330 = vmatpush3.bf16.msra.mxu1 %v9311_v23  ;;  %v5420_v33 = vadd.f32 %v10079_v26, %v5371_v27  ;;  %8303 = vmatprep.subr.bf16.mxu0 %v9312_v28  ;;  %v674_v26 = vpack.c.bf16 %v530_v41, %v458_v40  ;;  %v9317_v50 = vld [vmem:[#allocation4 + $0x7e8] sm:$0xff]   ;;  %v9326_v14 = vld [vmem:[#allocation4 + $0x718] sm:$0xff]   ;;  %v9331_v28 = vld [vmem:[#allocation4 + $0x790] sm:$0xff]  }
 0x14c   : > { %v7931_v53 = vpop.f32.mrf.mxu0  ;;  %v7958_v25 = vadd.f32 %v7957_v55, %v7956_v48  ;;  %8331 = vmatprep.subr.bf16.mxu1 %v9313_v32  ;;  %v676_v55 = vpack.c.bf16 %v532_v52, %v460_v51  ;;  %v9338_v40 = vld [vmem:[#allocation4 + $0x700] sm:$0xff]   ;;  %v391_v51 = vld [vmem:[%s9970_s27 + $0x330] sm:$0xff] }
 0x14d   : > { %v7959_v60 = vpop.f32.mrf.mxu1  ;;  %v5374_v29 = vadd.f32 %v7930_v16, %v7329_v24  ;;  %5964 = vmatprep.mubr.bf16.mxu0 %v674_v26  ;;  %v9327_v16 = vld [vmem:[#allocation4 + $0x798] sm:$0xff]   ;;  %v9339_v41 = vld [vmem:[#allocation4 + $0x780] sm:$0xff]   ;;  %v390_v26 = vld [vmem:[%s9970_s27 + $0x328] sm:$0xff] }
 0x14e   : > { %v7932_v57 = vpop.f32.mrf.mxu0  ;;  %8304 = vmatpush3.bf16.msra.mxu0 %v9314_v34  ;;  %6013 = vmatprep.mubr.bf16.mxu1 %v676_v55  ;;  %v9342_v55 = vld [vmem:[#allocation4 + $0x838] sm:$0xff]  }
 0x14f   : > { %v7933_v59 = vadd.f32 %v7932_v57, %v7931_v53  ;;  %v7960_v2 = vpop.f32.mrf.mxu1  ;;  %v5423_v35 = vadd.f32 %v7958_v25, %v5374_v29  ;;  %8332 = vmatpush3.bf16.msra.mxu1 %v9315_v22  ;;  %5965 = vmatmul.mubr.bf16.gmra.mxu0 %v673_v46  ;;  %v9330_v25 = vld [vmem:[#allocation4 + $0x710] sm:$0xff]   ;;  %v9335_v22 = vld [vmem:[#allocation4 + $0x788] sm:$0xff]  }
 0x150   : > { %v7934_v62 = vpop.f32.mrf.mxu0  ;;  %v7961_v7 = vadd.f32 %v7960_v2, %v7959_v60  ;;  %8305 = vmatprep.subr.bf16.mxu0 %v9316_v47  ;;  %8333 = vmatprep.subr.bf16.mxu1 %v9317_v50  ;;  %v9320_v2 = vld [vmem:[#allocation4 + $0x760] sm:$0xff]  }
 0x151   : > { %v7962_v13 = vpop.f32.mrf.mxu1  ;;  %v5379_v30 = vadd.f32 %v7933_v59, %v7329_v24  ;;  %v317_v47 = vld [vmem:[%s9970_s27 + $0xe0] sm:$0xff] }
 0x152   : > { %v7935_v8 = vpop.f32.mrf.mxu0  ;;  %8306 = vmatpush3.bf16.msra.mxu0 %v9318_v56  ;;  %v9343_v56 = vld [vmem:[#allocation4 + $0x8b8] sm:$0xff]  }
 0x153   : > { %v7936_v17 = vadd.f32 %v7935_v8, %v7934_v62  ;;  %v7963_v19 = vpop.f32.mrf.mxu1  ;;  %v10094_v36 = vadd.f32 %v7961_v7, %v5379_v30  ;;  %v531_v62 = vld [vmem:[%s9970_s27 + $0x790] sm:$0xff]  ;;  %8334 = vmatpush3.bf16.msra.mxu1 %v9319_v58  ;;  %8307 = vmatprep.subr.bf16.mxu0 %v9320_v2  ;;  %v9323_v8 = vld [vmem:[#allocation4 + $0x7a0] sm:$0xff]  }
 0x154   : > { %v7964_v21 = vadd.f32 %v7963_v19, %v7962_v13  ;;  %v675_v1 = vpack.c.bf16 %v531_v62, %v459_v61  ;;  %8335 = vmatprep.subr.bf16.mxu1 %v9321_v3  ;;  %v9328_v19 = vld [vmem:[#allocation4 + $0x750] sm:$0xff]   ;;  %v462_v62 = vld [vmem:[%s9970_s27 + $0x568] sm:$0xff]  ;;  %v461_v3 = vld [vmem:[%s9970_s27 + $0x560] sm:$0xff] }
 0x155   : > { %v5382_v31 = vadd.f32 %v7936_v17, %v7329_v24  ;;  %v9345_v58 = vld [vmem:[#allocation4 + $0x8f0] sm:$0xff]  }
 0x156   : > { %6014 = vmatmul.mubr.bf16.gmra.mxu1 %v675_v1  ;;  %8308 = vmatpush3.bf16.msra.mxu0 %v9322_v6  ;;  %v9347_v61 = vld [vmem:[#allocation4 + $0x8b0] sm:$0xff]  }
 0x157   : > { %v10096_v37 = vadd.f32 %v7964_v21, %v5382_v31  ;;  %8336 = vmatpush3.bf16.msra.mxu1 %v9323_v8  ;;  %8309 = vmatprep.subr.bf16.mxu0 %v9324_v10  ;;  %v9329_v21 = vld [vmem:[#allocation4 + $0x7d0] sm:$0xff]   ;;  %v9332_v31 = vld [vmem:[#allocation4 + $0x748] sm:$0xff]  }
 0x158   : > { %8337 = vmatprep.subr.bf16.mxu1 %v9325_v12  ;;  %v464_v12 = vld [vmem:[%s9970_s27 + $0x578] sm:$0xff] }
 0x15a   : > { %8310 = vmatpush3.bf16.msra.mxu0 %v9326_v14 }
 0x15b   : > { %8338 = vmatpush3.bf16.msra.mxu1 %v9327_v16  ;;  %8311 = vmatprep.subr.bf16.mxu0 %v9328_v19  ;;  %v9350_v19 = vld [vmem:[#allocation4 + $0x828] sm:$0xff]  }
 0x15c   : > { %8339 = vmatprep.subr.bf16.mxu1 %v9329_v21  ;;  %v9351_v21 = vld [vmem:[#allocation4 + $0x8a8] sm:$0xff]  }
 0x15e   : > { %8312 = vmatpush3.bf16.msra.mxu0 %v9330_v25 }
 0x15f   : > { %8340 = vmatpush3.bf16.msra.mxu1 %v9331_v28  ;;  %8313 = vmatprep.subr.bf16.mxu0 %v9332_v31  ;;  %v9353_v31 = vld [vmem:[#allocation4 + $0x8e0] sm:$0xff]  }
 0x164   : > { %v7981_v38 = vpop.f32.mrf.mxu0 }
 0x165   : > { %v8009_v39 = vpop.f32.mrf.mxu1 }
 0x166   : > { %v7982_v44 = vpop.f32.mrf.mxu0 }
 0x167   : > { %v8010_v45 = vpop.f32.mrf.mxu1  ;;  %v7983_v48 = vadd.f32 %v7982_v44, %v7981_v38  ;;  %v9336_v38 = vld [vmem:[#allocation4 + $0x740] sm:$0xff]   ;;  %v392_v44 = vld [vmem:[%s9970_s27 + $0x338] sm:$0xff] }
 0x168   : > { %v8011_v49 = vadd.f32 %v8010_v45, %v8009_v39  ;;  %v7984_v53 = vpop.f32.mrf.mxu0  ;;  %v9337_v39 = vld [vmem:[#allocation4 + $0x7c0] sm:$0xff]   ;;  %v606_v45 = vpack.c.bf16 %v390_v26, %v318_v42  ;;  %v608_v46 = vpack.c.bf16 %v392_v44, %v320_v43  ;;  %v9358_v42 = vld [vmem:[#allocation4 + $0x818] sm:$0xff]  }
 0x169   : > { %v8012_v54 = vpop.f32.mrf.mxu1  ;;  %v5469_v57 = vadd.f32 %v7983_v48, %v5420_v33  ;;  %v9333_v33 = vld [vmem:[#allocation4 + $0x7c8] sm:$0xff]   ;;  %v389_v48 = vld [vmem:[%s9970_s27 + $0x320] sm:$0xff] }
 0x16a   : > { %v7985_v59 = vpop.f32.mrf.mxu0  ;;  %8341 = vmatprep.subr.bf16.mxu1 %v9333_v33  ;;  %v605_v50 = vpack.c.bf16 %v389_v48, %v317_v47  ;;  %6054 = vmatprep.mubr.bf16.mxu0 %v606_v45  ;;  %v9360_v45 = vld [vmem:[#allocation4 + $0x850] sm:$0xff]  }
 0x16b   : > { %v8013_v60 = vpop.f32.mrf.mxu1  ;;  %v10106_v63 = vadd.f32 %v8011_v49, %v5469_v57  ;;  %v7986_v0 = vadd.f32 %v7985_v59, %v7984_v53  ;;  %8342 = vmatpush3.bf16.msra.mxu1 %v9335_v22  ;;  %v319_v49 = vld [vmem:[%s9970_s27 + $0xf0] sm:$0xff]  ;;  %6103 = vmatprep.mubr.bf16.mxu1 %v608_v46  ;;  %v9340_v53 = vld [vmem:[#allocation4 + $0x878] sm:$0xff]  }
 0x16c   : > { %v8014_v5 = vadd.f32 %v8013_v60, %v8012_v54  ;;  %v7987_v7 = vpop.f32.mrf.mxu0  ;;  %8343 = vmatprep.subr.bf16.mxu1 %v9337_v39  ;;  %v607_v52 = vpack.c.bf16 %v391_v51, %v319_v49  ;;  %v9341_v54 = vld [vmem:[#allocation4 + $0x8f8] sm:$0xff]   ;;  %v9344_v57 = vld [vmem:[#allocation4 + $0x870] sm:$0xff]  }
 0x16d   : > { %v5472_v4 = vadd.f32 %v7986_v0, %v5423_v35  ;;  %v8015_v18 = vpop.f32.mrf.mxu1  ;;  %v9334_v35 = vld [vmem:[#allocation4 + $0x708] sm:$0xff]   ;;  %v9346_v59 = vld [vmem:[#allocation4 + $0x830] sm:$0xff]  }
 0x16e   : > { %v7988_v11 = vpop.f32.mrf.mxu0  ;;  %8314 = vmatpush3.bf16.msra.mxu0 %v9334_v35  ;;  %v534_v0 = vld [vmem:[%s9970_s27 + $0x7a8] sm:$0xff]  ;;  %v9361_v47 = vld [vmem:[#allocation4 + $0x8d0] sm:$0xff]  }
 0x16f   : > { %v10108_v9 = vadd.f32 %v8014_v5, %v5472_v4  ;;  %v7989_v13 = vadd.f32 %v7988_v11, %v7987_v7  ;;  %v8016_v23 = vpop.f32.mrf.mxu1  ;;  %8315 = vmatprep.subr.bf16.mxu0 %v9336_v38  ;;  %8344 = vmatpush3.bf16.msra.mxu1 %v9339_v41  ;;  %v678_v2 = vpack.c.bf16 %v534_v0, %v462_v62  ;;  %v533_v4 = vld [vmem:[%s9970_s27 + $0x7a0] sm:$0xff]  ;;  %v9348_v7 = vld [vmem:[#allocation4 + $0x868] sm:$0xff]   ;;  %v9356_v38 = vld [vmem:[#allocation4 + $0x858] sm:$0xff]  }
 0x170   : > { %v7990_v15 = vpop.f32.mrf.mxu0  ;;  %v8017_v27 = vadd.f32 %v8016_v23, %v8015_v18  ;;  %8385 = vmatprep.subr.bf16.mxu1 %v9341_v54  ;;  %v677_v6 = vpack.c.bf16 %v533_v4, %v461_v3  ;;  %v9349_v11 = vld [vmem:[#allocation4 + $0x8e8] sm:$0xff]   ;;  %v463_v23 = vld [vmem:[%s9970_s27 + $0x570] sm:$0xff]  ;;  %v9369_v62 = vld [vmem:[#allocation4 + $0x8c0] sm:$0xff]  }
 0x171   : > { %v5477_v17 = vadd.f32 %v7989_v13, %v10094_v36  ;;  %v8018_v30 = vpop.f32.mrf.mxu1  ;;  %v9370_v0 = vld [vmem:[#allocation4 + $0x800] sm:$0xff]   ;;  %v394_v3 = vld [vmem:[%s9970_s27 + $0x348] sm:$0xff]  ;;  %v324_v4 = vld [vmem:[%s9970_s27 + $0x118] sm:$0xff] }
 0x172   : > { %v7991_v20 = vpop.f32.mrf.mxu0  ;;  %8316 = vmatpush3.bf16.msra.mxu0 %v9338_v40  ;;  %6104 = vmatmul.mubr.bf16.vlgmr.msra.gmra.mxu1 %v607_v52  ;;  %v9357_v40 = vld [vmem:[#allocation4 + $0x8d8] sm:$0xff]   ;;  %v9363_v52 = vld [vmem:[#allocation4 + $0x890] sm:$0xff]  }
 0x173   : > { %v7992_v24 = vadd.f32 %v7991_v20, %v7990_v15  ;;  %v10112_v32 = vadd.f32 %v8017_v27, %v5477_v17  ;;  %v8019_v34 = vpop.f32.mrf.mxu1  ;;  %8357 = vmatprep.subr.bf16.mxu0 %v9340_v53  ;;  %8386 = vmatpush3.bf16.msra.mxu1 %v9343_v56  ;;  %v536_v15 = vld [vmem:[%s9970_s27 + $0x7b8] sm:$0xff] }
 0x174   : > { %v8020_v36 = vadd.f32 %v8019_v34, %v8018_v30  ;;  %8387 = vmatprep.subr.bf16.mxu1 %v9345_v58  ;;  %v680_v18 = vpack.c.bf16 %v536_v15, %v464_v12  ;;  %v9352_v30 = vld [vmem:[#allocation4 + $0x860] sm:$0xff]   ;;  %v9366_v58 = vld [vmem:[#allocation4 + $0x808] sm:$0xff]   ;;  %v323_v12 = vld [vmem:[%s9970_s27 + $0x110] sm:$0xff] }
 0x175   : > { %v5480_v29 = vadd.f32 %v7992_v24, %v10096_v37  ;;  %6055 = vmatmul.mubr.bf16.vlgmr.msra.gmra.mxu0 %v605_v50  ;;  %v535_v24 = vld [vmem:[%s9970_s27 + $0x7b0] sm:$0xff]  ;;  %v9354_v34 = vld [vmem:[#allocation4 + $0x820] sm:$0xff]   ;;  %v9372_v15 = vld [vmem:[#allocation4 + $0x978] sm:$0xff]  }
 0x176   : > { %8358 = vmatpush3.bf16.msra.mxu0 %v9342_v55  ;;  %6062 = vmatprep.mubr.bf16.mxu0 %v678_v2  ;;  %v9362_v50 = vld [vmem:[#allocation4 + $0x810] sm:$0xff]   ;;  %v9364_v55 = vld [vmem:[#allocation4 + $0x848] sm:$0xff]  }
 0x177   : > { %v10114_v37 = vadd.f32 %v8020_v36, %v5480_v29  ;;  %8359 = vmatprep.subr.bf16.mxu0 %v9344_v57  ;;  %8388 = vmatpush3.bf16.msra.mxu1 %v9347_v61  ;;  %v679_v29 = vpack.c.bf16 %v535_v24, %v463_v23  ;;  %v9355_v36 = vld [vmem:[#allocation4 + $0x8a0] sm:$0xff]   ;;  %v322_v2 = vld [vmem:[%s9970_s27 + $0x108] sm:$0xff]  ;;  %v9379_v24 = vld [vmem:[#allocation4 + $0x9b0] sm:$0xff]  }
 0x178   : > { %8389 = vmatprep.subr.bf16.mxu1 %v9349_v11  ;;  %6111 = vmatprep.mubr.bf16.mxu1 %v680_v18  ;;  %v9375_v18 = vld [vmem:[#allocation4 + $0x9b8] sm:$0xff]  }
 0x17a   : > { %8360 = vmatpush3.bf16.msra.mxu0 %v9346_v59  ;;  %6112 = vmatmul.mubr.bf16.gmra.mxu1 %v679_v29  ;;  %v538_v29 = vld [vmem:[%s9970_s27 + $0x7c8] sm:$0xff] }
 0x17b   : > { %8361 = vmatprep.subr.bf16.mxu0 %v9348_v7  ;;  %8390 = vmatpush3.bf16.msra.mxu1 %v9351_v21  ;;  %v321_v7 = vld [vmem:[%s9970_s27 + $0x100] sm:$0xff]  ;;  %v9378_v21 = vld [vmem:[#allocation4 + $0x930] sm:$0xff]  }
 0x17c   : > { %8391 = vmatprep.subr.bf16.mxu1 %v9353_v31  ;;  %v537_v31 = vld [vmem:[%s9970_s27 + $0x7c0] sm:$0xff] }
 0x17d   : > { %6063 = vmatmul.mubr.bf16.gmra.mxu0 %v677_v6  ;;  %v396_v6 = vld [vmem:[%s9970_s27 + $0x358] sm:$0xff] }
 0x17e   : > { %8362 = vmatpush3.bf16.msra.mxu0 %v9350_v19  ;;  %v9376_v19 = vld [vmem:[#allocation4 + $0x970] sm:$0xff]  }
 0x17f   : > { %8363 = vmatprep.subr.bf16.mxu0 %v9352_v30  ;;  %8392 = vmatpush3.bf16.msra.mxu1 %v9355_v36  ;;  %v465_v30 = vld [vmem:[%s9970_s27 + $0x580] sm:$0xff] }
 0x180   : > { %8393 = vmatprep.subr.bf16.mxu1 %v9357_v40 }
 0x182   : > { %8364 = vmatpush3.bf16.msra.mxu0 %v9354_v34  ;;  %v681_v34 = vpack.c.bf16 %v537_v31, %v465_v30  ;;  %v326_v30 = vld [vmem:[%s9970_s27 + $0x128] sm:$0xff] }
 0x183   : > { %8365 = vmatprep.subr.bf16.mxu0 %v9356_v38  ;;  %v398_v31 = vld [vmem:[%s9970_s27 + $0x368] sm:$0xff] }
 0x184   : > { %v8037_v60 = vpop.f32.mrf.mxu0 }
 0x185   : > { %v8065_v1 = vpop.f32.mrf.mxu1 }
 0x186   : > { %v8038_v5 = vpop.f32.mrf.mxu0  ;;  %8366 = vmatpush3.bf16.msra.mxu0 %v9358_v42  ;;  %v468_v42 = vld [vmem:[%s9970_s27 + $0x598] sm:$0xff] }
 0x187   : > { %v8039_v8 = vadd.f32 %v8038_v5, %v8037_v60  ;;  %v8066_v10 = vpop.f32.mrf.mxu1  ;;  %8367 = vmatprep.subr.bf16.mxu0 %v9360_v45  ;;  %v9367_v60 = vld [vmem:[#allocation4 + $0x888] sm:$0xff]   ;;  %v610_v5 = vpack.c.bf16 %v394_v3, %v322_v2  ;;  %v9390_v2 = vld [vmem:[#allocation4 + $0x918] sm:$0xff]  }
 0x188   : > { %v8067_v13 = vadd.f32 %v8066_v10, %v8065_v1  ;;  %v8040_v14 = vpop.f32.mrf.mxu0  ;;  %v9371_v1 = vld [vmem:[#allocation4 + $0x880] sm:$0xff]   ;;  %v612_v10 = vpack.c.bf16 %v396_v6, %v324_v4  ;;  %v9382_v45 = vld [vmem:[#allocation4 + $0x928] sm:$0xff]   ;;  %v9392_v6 = vld [vmem:[#allocation4 + $0x950] sm:$0xff]  }
 0x189   : > { %v5567_v16 = vadd.f32 %v8039_v8, %v10106_v63  ;;  %v8068_v17 = vpop.f32.mrf.mxu1  ;;  %v393_v8 = vld [vmem:[%s9970_s27 + $0x340] sm:$0xff]  ;;  %6152 = vmatprep.mubr.bf16.mxu0 %v610_v5 }
 0x18a   : > { %v8041_v20 = vpop.f32.mrf.mxu0  ;;  %8368 = vmatpush3.bf16.msra.mxu0 %v9362_v50  ;;  %v609_v11 = vpack.c.bf16 %v393_v8, %v321_v7  ;;  %6201 = vmatprep.mubr.bf16.mxu1 %v612_v10  ;;  %v9393_v8 = vld [vmem:[#allocation4 + $0x9d0] sm:$0xff]  }
 0x18b   : > { %v10133_v25 = vadd.f32 %v8067_v13, %v5567_v16  ;;  %v8042_v27 = vadd.f32 %v8041_v20, %v8040_v14  ;;  %v8069_v28 = vpop.f32.mrf.mxu1  ;;  %8369 = vmatprep.subr.bf16.mxu0 %v9364_v55  ;;  %v395_v13 = vld [vmem:[%s9970_s27 + $0x350] sm:$0xff]  ;;  %v9373_v16 = vld [vmem:[#allocation4 + $0x9f8] sm:$0xff]  }
 0x18c   : > { %v8070_v33 = vadd.f32 %v8069_v28, %v8068_v17  ;;  %v8043_v35 = vpop.f32.mrf.mxu0  ;;  %v611_v14 = vpack.c.bf16 %v395_v13, %v323_v12  ;;  %v9374_v17 = vld [vmem:[#allocation4 + $0x938] sm:$0xff]   ;;  %v9377_v20 = vld [vmem:[#allocation4 + $0x9f0] sm:$0xff]  }
 0x18d   : > { %v5570_v63 = vadd.f32 %v8042_v27, %v10108_v9  ;;  %v9359_v9 = vld [vmem:[#allocation4 + $0x898] sm:$0xff]   ;;  %v8071_v44 = vpop.f32.mrf.mxu1  ;;  %v466_v27 = vld [vmem:[%s9970_s27 + $0x588] sm:$0xff]  ;;  %v9394_v12 = vld [vmem:[#allocation4 + $0x910] sm:$0xff]  }
 0x18e   : > { %v8044_v39 = vpop.f32.mrf.mxu0  ;;  %8394 = vmatpush3.bf16.msra.mxu1 %v9359_v9  ;;  %8370 = vmatpush3.bf16.msra.mxu0 %v9366_v58 }
 0x18f   : > { %v10136_v22 = vadd.f32 %v8070_v33, %v5570_v63  ;;  %v8045_v41 = vadd.f32 %v8044_v39, %v8043_v35  ;;  %v8072_v48 = vpop.f32.mrf.mxu1  ;;  %8395 = vmatprep.subr.bf16.mxu1 %v9361_v47  ;;  %v682_v33 = vpack.c.bf16 %v538_v29, %v466_v27  ;;  %v9380_v35 = vld [vmem:[#allocation4 + $0x968] sm:$0xff]   ;;  %v9401_v27 = vld [vmem:[#allocation4 + $0x9c0] sm:$0xff]  }
 0x190   : > { %v8046_v26 = vpop.f32.mrf.mxu0  ;;  %v8073_v51 = vadd.f32 %v8072_v48, %v8071_v44  ;;  %v9381_v39 = vld [vmem:[#allocation4 + $0x9e8] sm:$0xff]   ;;  %v467_v48 = vld [vmem:[%s9970_s27 + $0x590] sm:$0xff]  ;;  %v9403_v29 = vld [vmem:[#allocation4 + $0x980] sm:$0xff]  }
 0x191   : > { %v5575_v43 = vadd.f32 %v8045_v41, %v10112_v32  ;;  %v8074_v54 = vpop.f32.mrf.mxu1  ;;  %v9365_v32 = vld [vmem:[#allocation4 + $0x8c8] sm:$0xff]  }
 0x192   : > { %v8047_v46 = vpop.f32.mrf.mxu0  ;;  %8396 = vmatpush3.bf16.msra.mxu1 %v9363_v52  ;;  %v9383_v47 = vld [vmem:[#allocation4 + $0x9a8] sm:$0xff]   ;;  %v539_v52 = vld [vmem:[%s9970_s27 + $0x7d0] sm:$0xff] }
 0x193   : > { %v8048_v49 = vadd.f32 %v8047_v46, %v8046_v26  ;;  %v10140_v56 = vadd.f32 %v8073_v51, %v5575_v43  ;;  %v8075_v57 = vpop.f32.mrf.mxu1  ;;  %8397 = vmatprep.subr.bf16.mxu1 %v9365_v32  ;;  %v540_v26 = vld [vmem:[%s9970_s27 + $0x7d8] sm:$0xff]  ;;  %v9385_v32 = vld [vmem:[#allocation4 + $0x9e0] sm:$0xff]  }
 0x194   : > { %v8076_v59 = vadd.f32 %v8075_v57, %v8074_v54  ;;  %v684_v44 = vpack.c.bf16 %v540_v26, %v468_v42  ;;  %v9384_v54 = vld [vmem:[#allocation4 + $0x960] sm:$0xff]   ;;  %v9404_v26 = vld [vmem:[#allocation4 + $0xa78] sm:$0xff]  }
 0x195   : > { %v5578_v53 = vadd.f32 %v8048_v49, %v10114_v37  ;;  %v9368_v37 = vld [vmem:[#allocation4 + $0x840] sm:$0xff]  }
 0x196   : > { %8398 = vmatpush3.bf16.msra.mxu1 %v9367_v60  ;;  %8371 = vmatprep.subr.bf16.mxu0 %v9368_v37  ;;  %v9386_v57 = vld [vmem:[#allocation4 + $0x920] sm:$0xff]   ;;  %v9388_v37 = vld [vmem:[#allocation4 + $0x958] sm:$0xff]  }
 0x197   : > { %v10142_v61 = vadd.f32 %v8076_v59, %v5578_v53  ;;  %8399 = vmatprep.subr.bf16.mxu1 %v9369_v62  ;;  %8372 = vmatpush3.bf16.msra.mxu0 %v9370_v0  ;;  %v683_v53 = vpack.c.bf16 %v539_v52, %v467_v48  ;;  %v9387_v60 = vld [vmem:[#allocation4 + $0x9a0] sm:$0xff]   ;;  %v9389_v0 = vld [vmem:[#allocation4 + $0x9d8] sm:$0xff]   ;;  %v9411_v48 = vld [vmem:[#allocation4 + $0xab0] sm:$0xff]  }
 0x198   : > { %8413 = vmatprep.subr.bf16.mxu0 %v9372_v15  ;;  %v470_v52 = vld [vmem:[%s9970_s27 + $0x5a8] sm:$0xff] }
 0x19a   : > { %8400 = vmatpush3.bf16.msra.mxu1 %v9371_v1  ;;  %6153 = vmatmul.mubr.bf16.vlgmr.msra.gmra.mxu0 %v609_v11 }
 0x19b   : > { %8441 = vmatprep.subr.bf16.mxu1 %v9373_v16  ;;  %8414 = vmatpush3.bf16.msra.mxu0 %v9374_v17  ;;  %v9396_v17 = vld [vmem:[#allocation4 + $0x948] sm:$0xff]  }
 0x19c   : > { %8415 = vmatprep.subr.bf16.mxu0 %v9376_v19  ;;  %6160 = vmatprep.mubr.bf16.mxu0 %v682_v33  ;;  %v328_v33 = vld [vmem:[%s9970_s27 + $0x138] sm:$0xff] }
 0x19d   : > { %6202 = vmatmul.mubr.bf16.vlgmr.msra.gmra.mxu1 %v611_v14  ;;  %v9395_v14 = vld [vmem:[#allocation4 + $0x990] sm:$0xff]  }
 0x19e   : > { %8442 = vmatpush3.bf16.msra.mxu1 %v9375_v18  ;;  %6209 = vmatprep.mubr.bf16.mxu1 %v684_v44  ;;  %v9407_v44 = vld [vmem:[#allocation4 + $0xab8] sm:$0xff]  }
 0x19f   : > { %8443 = vmatprep.subr.bf16.mxu1 %v9377_v20  ;;  %8416 = vmatpush3.bf16.msra.mxu0 %v9378_v21  ;;  %v9398_v20 = vld [vmem:[#allocation4 + $0x908] sm:$0xff]  }
 0x1a0   : > { %8417 = vmatprep.subr.bf16.mxu0 %v9380_v35  ;;  %v325_v35 = vld [vmem:[%s9970_s27 + $0x120] sm:$0xff] }
 0x1a2   : > { %8444 = vmatpush3.bf16.msra.mxu1 %v9379_v24  ;;  %6161 = vmatmul.mubr.bf16.gmra.mxu0 %v681_v34  ;;  %v400_v34 = vld [vmem:[%s9970_s27 + $0x378] sm:$0xff] }
 0x1a3   : > { %8445 = vmatprep.subr.bf16.mxu1 %v9381_v39  ;;  %8418 = vmatpush3.bf16.msra.mxu0 %v9382_v45  ;;  %v327_v39 = vld [vmem:[%s9970_s27 + $0x130] sm:$0xff] }
 0x1a4   : > { %v8093_v23 = vpop.f32.mrf.mxu0  ;;  %8419 = vmatprep.subr.bf16.mxu0 %v9384_v54  ;;  %v9408_v45 = vld [vmem:[#allocation4 + $0xa70] sm:$0xff]   ;;  %v469_v54 = vld [vmem:[%s9970_s27 + $0x5a0] sm:$0xff] }
 0x1a5   : > { %v8121_v28 = vpop.f32.mrf.mxu1  ;;  %6210 = vmatmul.mubr.bf16.gmra.mxu1 %v683_v53  ;;  %v542_v53 = vld [vmem:[%s9970_s27 + $0x7e8] sm:$0xff] }
 0x1a6   : > { %v8094_v63 = vpop.f32.mrf.mxu0  ;;  %8446 = vmatpush3.bf16.msra.mxu1 %v9383_v47  ;;  %v9410_v47 = vld [vmem:[#allocation4 + $0xa30] sm:$0xff]  }
 0x1a7   : > { %v8095_v36 = vadd.f32 %v8094_v63, %v8093_v23  ;;  %v8122_v38 = vpop.f32.mrf.mxu1  ;;  %8447 = vmatprep.subr.bf16.mxu1 %v9385_v32  ;;  %8420 = vmatpush3.bf16.msra.mxu0 %v9386_v57  ;;  %v9399_v23 = vld [vmem:[#allocation4 + $0x988] sm:$0xff]   ;;  %v614_v63 = vpack.c.bf16 %v398_v31, %v326_v30  ;;  %v9422_v30 = vld [vmem:[#allocation4 + $0xa18] sm:$0xff]  }
 0x1a8   : > { %v8123_v40 = vadd.f32 %v8122_v38, %v8121_v28  ;;  %v8096_v41 = vpop.f32.mrf.mxu0  ;;  %8421 = vmatprep.subr.bf16.mxu0 %v9388_v37  ;;  %v9402_v28 = vld [vmem:[#allocation4 + $0x900] sm:$0xff]  }
 0x1a9   : > { %v5665_v9 = vadd.f32 %v8095_v36, %v10133_v25  ;;  %v8124_v43 = vpop.f32.mrf.mxu1  ;;  %v616_v36 = vpack.c.bf16 %v400_v34, %v328_v33  ;;  %v397_v38 = vld [vmem:[%s9970_s27 + $0x360] sm:$0xff]  ;;  %6250 = vmatprep.mubr.bf16.mxu0 %v614_v63  ;;  %v9423_v63 = vld [vmem:[#allocation4 + $0xa98] sm:$0xff]   ;;  %v9424_v34 = vld [vmem:[#allocation4 + $0xa50] sm:$0xff]  }
 0x1aa   : > { %v8097_v46 = vpop.f32.mrf.mxu0  ;;  %8448 = vmatpush3.bf16.msra.mxu1 %v9387_v60  ;;  %v9412_v60 = vld [vmem:[#allocation4 + $0xa68] sm:$0xff]  }
 0x1ab   : > { %v10160_v49 = vadd.f32 %v8123_v40, %v5665_v9  ;;  %v8098_v50 = vadd.f32 %v8097_v46, %v8096_v41  ;;  %v8125_v51 = vpop.f32.mrf.mxu1  ;;  %8449 = vmatprep.subr.bf16.mxu1 %v9389_v0  ;;  %8422 = vmatpush3.bf16.msra.mxu0 %v9390_v2  ;;  %v399_v40 = vld [vmem:[%s9970_s27 + $0x370] sm:$0xff]  ;;  %v613_v41 = vpack.c.bf16 %v397_v38, %v325_v35  ;;  %v9405_v9 = vld [vmem:[#allocation4 + $0xaf8] sm:$0xff]   ;;  %v9413_v0 = vld [vmem:[#allocation4 + $0xae8] sm:$0xff]  }
 0x1ac   : > { %v8126_v55 = vadd.f32 %v8125_v51, %v8124_v43  ;;  %v8099_v59 = vpop.f32.mrf.mxu0  ;;  %8423 = vmatprep.subr.bf16.mxu0 %v9392_v6  ;;  %v615_v42 = vpack.c.bf16 %v399_v40, %v327_v39  ;;  %6299 = vmatprep.mubr.bf16.mxu1 %v616_v36  ;;  %v9406_v43 = vld [vmem:[#allocation4 + $0xa38] sm:$0xff]   ;;  %v9409_v46 = vld [vmem:[#allocation4 + $0xaf0] sm:$0xff]  }
 0x1ad   : > { %v5668_v25 = vadd.f32 %v8098_v50, %v10136_v22  ;;  %v9391_v22 = vld [vmem:[#allocation4 + $0x998] sm:$0xff]   ;;  %v8127_v5 = vpop.f32.mrf.mxu1  ;;  %v9425_v36 = vld [vmem:[#allocation4 + $0xad0] sm:$0xff]  }
 0x1ae   : > { %v8100_v62 = vpop.f32.mrf.mxu0  ;;  %8450 = vmatpush3.bf16.msra.mxu1 %v9391_v22  ;;  %v544_v2 = vld [vmem:[%s9970_s27 + $0x7f8] sm:$0xff]  ;;  %v9426_v40 = vld [vmem:[#allocation4 + $0xa10] sm:$0xff]  }
 0x1af   : > { %v10164_v58 = vadd.f32 %v8126_v55, %v5668_v25  ;;  %v8101_v1 = vadd.f32 %v8100_v62, %v8099_v59  ;;  %v8128_v10 = vpop.f32.mrf.mxu1  ;;  %8451 = vmatprep.subr.bf16.mxu1 %v9393_v8  ;;  %8424 = vmatpush3.bf16.msra.mxu0 %v9394_v12  ;;  %v686_v25 = vpack.c.bf16 %v542_v53, %v470_v52  ;;  %v541_v55 = vld [vmem:[%s9970_s27 + $0x7e0] sm:$0xff]  ;;  %v543_v12 = vld [vmem:[%s9970_s27 + $0x7f0] sm:$0xff] }
 0x1b0   : > { %v8102_v3 = vpop.f32.mrf.mxu0  ;;  %v8129_v13 = vadd.f32 %v8128_v10, %v8127_v5  ;;  %8425 = vmatprep.subr.bf16.mxu0 %v9396_v17  ;;  %v685_v59 = vpack.c.bf16 %v541_v55, %v469_v54  ;;  %v9414_v5 = vld [vmem:[#allocation4 + $0xa28] sm:$0xff]   ;;  %v9416_v17 = vld [vmem:[#allocation4 + $0xa60] sm:$0xff]   ;;  %v332_v55 = vld [vmem:[%s9970_s27 + $0x158] sm:$0xff] }
 0x1b1   : > { %v5673_v4 = vadd.f32 %v8101_v1, %v10140_v56  ;;  %v8130_v16 = vpop.f32.mrf.mxu1  ;;  %v9397_v56 = vld [vmem:[#allocation4 + $0x9c8] sm:$0xff]   ;;  %v472_v1 = vld [vmem:[%s9970_s27 + $0x5b8] sm:$0xff]  ;;  %v9434_v52 = vld [vmem:[#allocation4 + $0xa00] sm:$0xff]  }
 0x1b2   : > { %v8103_v7 = vpop.f32.mrf.mxu0  ;;  %8452 = vmatpush3.bf16.msra.mxu1 %v9395_v14  ;;  %v9435_v53 = vld [vmem:[#allocation4 + $0xa80] sm:$0xff]   ;;  %v330_v54 = vld [vmem:[%s9970_s27 + $0x148] sm:$0xff] }
 0x1b3   : > { %v8104_v11 = vadd.f32 %v8103_v7, %v8102_v3  ;;  %v10168_v18 = vadd.f32 %v8129_v13, %v5673_v4  ;;  %v8131_v19 = vpop.f32.mrf.mxu1  ;;  %8453 = vmatprep.subr.bf16.mxu1 %v9397_v56  ;;  %8426 = vmatpush3.bf16.msra.mxu0 %v9398_v20  ;;  %v688_v4 = vpack.c.bf16 %v544_v2, %v472_v1  ;;  %v9415_v7 = vld [vmem:[#allocation4 + $0xaa8] sm:$0xff]   ;;  %v9417_v56 = vld [vmem:[#allocation4 + $0xae0] sm:$0xff]   ;;  %v403_v1 = vld [vmem:[%s9970_s27 + $0x390] sm:$0xff] }
 0x1b4   : > { %v8132_v21 = vadd.f32 %v8131_v19, %v8130_v16 }
 0x1b5   : > { %v5676_v15 = vadd.f32 %v8104_v11, %v10142_v61  ;;  %v9400_v61 = vld [vmem:[#allocation4 + $0x940] sm:$0xff]   ;;  %v471_v11 = vld [vmem:[%s9970_s27 + $0x5b0] sm:$0xff] }
 0x1b6   : > { %8454 = vmatpush3.bf16.msra.mxu1 %v9399_v23  ;;  %8427 = vmatprep.subr.bf16.mxu0 %v9400_v61  ;;  %v687_v16 = vpack.c.bf16 %v543_v12, %v471_v11  ;;  %v9420_v61 = vld [vmem:[#allocation4 + $0xa58] sm:$0xff]   ;;  %v9443_v11 = vld [vmem:[#allocation4 + $0xbb0] sm:$0xff]   ;;  %v474_v12 = vld [vmem:[%s9970_s27 + $0x5c8] sm:$0xff] }
 0x1b7   : > { %v10170_v24 = vadd.f32 %v8132_v21, %v5676_v15  ;;  %8455 = vmatprep.subr.bf16.mxu1 %v9401_v27  ;;  %8428 = vmatpush3.bf16.msra.mxu0 %v9402_v28  ;;  %v9419_v21 = vld [vmem:[#allocation4 + $0xaa0] sm:$0xff]   ;;  %v9421_v28 = vld [vmem:[#allocation4 + $0xad8] sm:$0xff]  }
 0x1b8   : > { %8469 = vmatprep.subr.bf16.mxu0 %v9404_v26 }
 0x1ba   : > { %8456 = vmatpush3.bf16.msra.mxu1 %v9403_v29  ;;  %6251 = vmatmul.mubr.bf16.vlgmr.msra.gmra.mxu0 %v613_v41 }
 0x1bb   : > { %8497 = vmatprep.subr.bf16.mxu1 %v9405_v9  ;;  %8470 = vmatpush3.bf16.msra.mxu0 %v9406_v43  ;;  %v9428_v43 = vld [vmem:[#allocation4 + $0xa48] sm:$0xff]  }
 0x1bc   : > { %8471 = vmatprep.subr.bf16.mxu0 %v9408_v45  ;;  %6258 = vmatprep.mubr.bf16.mxu0 %v686_v25  ;;  %v402_v25 = vld [vmem:[%s9970_s27 + $0x388] sm:$0xff] }
 0x1bd   : > { %6300 = vmatmul.mubr.bf16.vlgmr.msra.gmra.mxu1 %v615_v42  ;;  %v9427_v42 = vld [vmem:[#allocation4 + $0xa90] sm:$0xff]  }
 0x1be   : > { %8498 = vmatpush3.bf16.msra.mxu1 %v9407_v44  ;;  %6307 = vmatprep.mubr.bf16.mxu1 %v688_v4  ;;  %v9438_v4 = vld [vmem:[#allocation4 + $0xb38] sm:$0xff]  }
 0x1bf   : > { %8499 = vmatprep.subr.bf16.mxu1 %v9409_v46  ;;  %8472 = vmatpush3.bf16.msra.mxu0 %v9410_v47  ;;  %v9430_v46 = vld [vmem:[#allocation4 + $0xa08] sm:$0xff]  }
 0x1c0   : > { %8473 = vmatprep.subr.bf16.mxu0 %v9412_v60  ;;  %v329_v60 = vld [vmem:[%s9970_s27 + $0x140] sm:$0xff] }
 0x1c2   : > { %8500 = vmatpush3.bf16.msra.mxu1 %v9411_v48  ;;  %6259 = vmatmul.mubr.bf16.gmra.mxu0 %v685_v59  ;;  %v9431_v48 = vld [vmem:[#allocation4 + $0xa88] sm:$0xff]  }
 0x1c3   : > { %8501 = vmatprep.subr.bf16.mxu1 %v9413_v0  ;;  %8474 = vmatpush3.bf16.msra.mxu0 %v9414_v5  ;;  %v9439_v5 = vld [vmem:[#allocation4 + $0xbb8] sm:$0xff]  }
 0x1c4   : > { %v8149_v50 = vpop.f32.mrf.mxu0  ;;  %8475 = vmatprep.subr.bf16.mxu0 %v9416_v17  ;;  %v473_v17 = vld [vmem:[%s9970_s27 + $0x5c0] sm:$0xff] }
 0x1c5   : > { %v8177_v51 = vpop.f32.mrf.mxu1  ;;  %6308 = vmatmul.mubr.bf16.gmra.mxu1 %v687_v16 }
 0x1c6   : > { %v8150_v32 = vpop.f32.mrf.mxu0  ;;  %8502 = vmatpush3.bf16.msra.mxu1 %v9415_v7  ;;  %v9441_v7 = vld [vmem:[#allocation4 + $0xbf0] sm:$0xff]  }
 0x1c7   : > { %v8178_v57 = vpop.f32.mrf.mxu1  ;;  %v8151_v37 = vadd.f32 %v8150_v32, %v8149_v50  ;;  %8503 = vmatprep.subr.bf16.mxu1 %v9417_v56  ;;  %v9432_v50 = vld [vmem:[#allocation4 + $0xa40] sm:$0xff]   ;;  %v404_v32 = vld [vmem:[%s9970_s27 + $0x398] sm:$0xff] }
 0x1c8   : > { %v8179_v62 = vadd.f32 %v8178_v57, %v8177_v51  ;;  %v8152_v3 = vpop.f32.mrf.mxu0  ;;  %v9433_v51 = vld [vmem:[#allocation4 + $0xac0] sm:$0xff]   ;;  %v618_v57 = vpack.c.bf16 %v402_v25, %v330_v54  ;;  %v620_v59 = vpack.c.bf16 %v404_v32, %v332_v55  ;;  %v9454_v54 = vld [vmem:[#allocation4 + $0xb18] sm:$0xff]  }
 0x1c9   : > { %v8180_v22 = vpop.f32.mrf.mxu1  ;;  %v5763_v6 = vadd.f32 %v8151_v37, %v10160_v49  ;;  %v9418_v49 = vld [vmem:[#allocation4 + $0xa20] sm:$0xff]   ;;  %v9455_v55 = vld [vmem:[#allocation4 + $0xb98] sm:$0xff]  }
 0x1ca   : > { %v8153_v8 = vpop.f32.mrf.mxu0  ;;  %8476 = vmatpush3.bf16.msra.mxu0 %v9418_v49  ;;  %8504 = vmatpush3.bf16.msra.mxu1 %v9419_v21  ;;  %v401_v37 = vld [vmem:[%s9970_s27 + $0x380] sm:$0xff] }
 0x1cb   : > { %v8181_v10 = vpop.f32.mrf.mxu1  ;;  %v10189_v13 = vadd.f32 %v8179_v62, %v5763_v6  ;;  %v8154_v14 = vadd.f32 %v8153_v8, %v8152_v3  ;;  %8477 = vmatprep.subr.bf16.mxu0 %v9420_v61  ;;  %8505 = vmatprep.subr.bf16.mxu1 %v9421_v28  ;;  %v331_v62 = vld [vmem:[%s9970_s27 + $0x150] sm:$0xff]  ;;  %v617_v0 = vpack.c.bf16 %v401_v37, %v329_v60  ;;  %v9436_v3 = vld [vmem:[#allocation4 + $0xb78] sm:$0xff]   ;;  %v545_v56 = vld [vmem:[%s9970_s27 + $0x800] sm:$0xff] }
 0x1cc   : > { %v8182_v15 = vadd.f32 %v8181_v10, %v8180_v22  ;;  %v8155_v20 = vpop.f32.mrf.mxu0  ;;  %6348 = vmatprep.mubr.bf16.mxu0 %v618_v57  ;;  %6397 = vmatprep.mubr.bf16.mxu1 %v620_v59  ;;  %v619_v2 = vpack.c.bf16 %v403_v1, %v331_v62  ;;  %v9437_v22 = vld [vmem:[#allocation4 + $0xbf8] sm:$0xff]   ;;  %v9440_v6 = vld [vmem:[#allocation4 + $0xb70] sm:$0xff]   ;;  %v689_v49 = vpack.c.bf16 %v545_v56, %v473_v17  ;;  %v406_v17 = vld [vmem:[%s9970_s27 + $0x3a8] sm:$0xff] }
 0x1cd   : > { %v5766_v19 = vadd.f32 %v8154_v14, %v10164_v58  ;;  %v8183_v33 = vpop.f32.mrf.mxu1  ;;  %v9442_v8 = vld [vmem:[#allocation4 + $0xb30] sm:$0xff]   ;;  %v546_v14 = vld [vmem:[%s9970_s27 + $0x808] sm:$0xff]  ;;  %v476_v28 = vld [vmem:[%s9970_s27 + $0x5d8] sm:$0xff] }
 0x1ce   : > { %v8156_v27 = vpop.f32.mrf.mxu0  ;;  %8478 = vmatpush3.bf16.msra.mxu0 %v9422_v30  ;;  %8506 = vmatpush3.bf16.msra.mxu1 %v9423_v63  ;;  %v690_v16 = vpack.c.bf16 %v546_v14, %v474_v12  ;;  %v9456_v57 = vld [vmem:[#allocation4 + $0xb50] sm:$0xff]   ;;  %v9465_v12 = vld [vmem:[#allocation4 + $0xbc0] sm:$0xff]   ;;  %v336_v56 = vld [vmem:[%s9970_s27 + $0x178] sm:$0xff] }
 0x1cf   : > { %v10192_v23 = vadd.f32 %v8182_v15, %v5766_v19  ;;  %v8157_v29 = vadd.f32 %v8156_v27, %v8155_v20  ;;  %v8184_v38 = vpop.f32.mrf.mxu1  ;;  %8479 = vmatprep.subr.bf16.mxu0 %v9424_v34  ;;  %8507 = vmatprep.subr.bf16.mxu1 %v9425_v36  ;;  %v9444_v20 = vld [vmem:[#allocation4 + $0xb68] sm:$0xff]   ;;  %v9457_v60 = vld [vmem:[#allocation4 + $0xbd0] sm:$0xff]   ;;  %v9466_v14 = vld [vmem:[#allocation4 + $0xb00] sm:$0xff]  }
 0x1d0   : > { %v8158_v31 = vpop.f32.mrf.mxu0  ;;  %v8185_v41 = vadd.f32 %v8184_v38, %v8183_v33  ;;  %v9445_v27 = vld [vmem:[#allocation4 + $0xbe8] sm:$0xff]   ;;  %v475_v38 = vld [vmem:[%s9970_s27 + $0x5d0] sm:$0xff] }
 0x1d1   : > { %v5771_v58 = vadd.f32 %v8157_v29, %v10168_v18  ;;  %v8186_v9 = vpop.f32.mrf.mxu1  ;;  %v9429_v18 = vld [vmem:[#allocation4 + $0xac8] sm:$0xff]  }
 0x1d2   : > { %v8159_v35 = vpop.f32.mrf.mxu0  ;;  %8480 = vmatpush3.bf16.msra.mxu0 %v9426_v40  ;;  %8508 = vmatpush3.bf16.msra.mxu1 %v9427_v42  ;;  %v9446_v34 = vld [vmem:[#allocation4 + $0xb28] sm:$0xff]  }
 0x1d3   : > { %v8160_v39 = vadd.f32 %v8159_v35, %v8158_v31  ;;  %v10196_v44 = vadd.f32 %v8185_v41, %v5771_v58  ;;  %v8187_v45 = vpop.f32.mrf.mxu1  ;;  %8481 = vmatprep.subr.bf16.mxu0 %v9428_v43  ;;  %8509 = vmatprep.subr.bf16.mxu1 %v9429_v18  ;;  %v548_v31 = vld [vmem:[%s9970_s27 + $0x818] sm:$0xff]  ;;  %v9447_v36 = vld [vmem:[#allocation4 + $0xba8] sm:$0xff]   ;;  %v9449_v18 = vld [vmem:[#allocation4 + $0xbe0] sm:$0xff]  }
 0x1d4   : > { %v8188_v47 = vadd.f32 %v8187_v45, %v8186_v9  ;;  %v692_v33 = vpack.c.bf16 %v548_v31, %v476_v28  ;;  %v9448_v9 = vld [vmem:[#allocation4 + $0xb60] sm:$0xff]   ;;  %v335_v28 = vld [vmem:[%s9970_s27 + $0x170] sm:$0xff]  ;;  %v9468_v31 = vld [vmem:[#allocation4 + $0xc78] sm:$0xff]  }
 0x1d5   : > { %v5774_v26 = vadd.f32 %v8160_v39, %v10170_v24  ;;  %v547_v39 = vld [vmem:[%s9970_s27 + $0x810] sm:$0xff]  ;;  %v9450_v45 = vld [vmem:[#allocation4 + $0xb20] sm:$0xff]  }
 0x1d6   : > { %8482 = vmatpush3.bf16.msra.mxu0 %v9430_v46  ;;  %8510 = vmatpush3.bf16.msra.mxu1 %v9431_v48 }
 0x1d7   : > { %v10198_v24 = vadd.f32 %v8188_v47, %v5774_v26  ;;  %8483 = vmatprep.subr.bf16.mxu0 %v9432_v50  ;;  %8511 = vmatprep.subr.bf16.mxu1 %v9433_v51  ;;  %v691_v26 = vpack.c.bf16 %v547_v39, %v475_v38  ;;  %v9451_v47 = vld [vmem:[#allocation4 + $0xba0] sm:$0xff]   ;;  %v9452_v50 = vld [vmem:[#allocation4 + $0xb58] sm:$0xff]   ;;  %v9475_v39 = vld [vmem:[#allocation4 + $0xcb0] sm:$0xff]  }
 0x1da   : > { %8484 = vmatpush3.bf16.msra.mxu0 %v9434_v52  ;;  %8512 = vmatpush3.bf16.msra.mxu1 %v9435_v53  ;;  %v9453_v52 = vld [vmem:[#allocation4 + $0xbd8] sm:$0xff]  }
 0x1db   : > { %8525 = vmatprep.subr.bf16.mxu0 %v9436_v3  ;;  %8553 = vmatprep.subr.bf16.mxu1 %v9437_v22 }
 0x1dd   : > { %6349 = vmatmul.mubr.bf16.vlgmr.msra.gmra.mxu0 %v617_v0  ;;  %6398 = vmatmul.mubr.bf16.vlgmr.msra.gmra.mxu1 %v619_v2  ;;  %v9458_v0 = vld [vmem:[#allocation4 + $0xb10] sm:$0xff]  }
 0x1de   : > { %8526 = vmatpush3.bf16.msra.mxu0 %v9438_v4  ;;  %8554 = vmatpush3.bf16.msra.mxu1 %v9439_v5  ;;  %v9459_v2 = vld [vmem:[#allocation4 + $0xb90] sm:$0xff]   ;;  %v9460_v4 = vld [vmem:[#allocation4 + $0xb48] sm:$0xff]  }
 0x1df   : > { %8527 = vmatprep.subr.bf16.mxu0 %v9440_v6  ;;  %8555 = vmatprep.subr.bf16.mxu1 %v9441_v7  ;;  %v9462_v7 = vld [vmem:[#allocation4 + $0xb08] sm:$0xff]  }
 0x1e0   : > { %6356 = vmatprep.mubr.bf16.mxu0 %v690_v16  ;;  %6405 = vmatprep.mubr.bf16.mxu1 %v692_v33  ;;  %v334_v16 = vld [vmem:[%s9970_s27 + $0x168] sm:$0xff]  ;;  %v9471_v33 = vld [vmem:[#allocation4 + $0xcb8] sm:$0xff]  }
 0x1e2   : > { %8528 = vmatpush3.bf16.msra.mxu0 %v9442_v8  ;;  %8556 = vmatpush3.bf16.msra.mxu1 %v9443_v11 }
 0x1e3   : > { %8529 = vmatprep.subr.bf16.mxu0 %v9444_v20  ;;  %8557 = vmatprep.subr.bf16.mxu1 %v9445_v27  ;;  %v333_v20 = vld [vmem:[%s9970_s27 + $0x160] sm:$0xff] }
 0x1e4   : > { %v8205_v10 = vpop.f32.mrf.mxu0 }
 0x1e5   : > { %v8233_v15 = vpop.f32.mrf.mxu1  ;;  %6357 = vmatmul.mubr.bf16.gmra.mxu0 %v689_v49  ;;  %6406 = vmatmul.mubr.bf16.gmra.mxu1 %v691_v26  ;;  %v408_v49 = vld [vmem:[%s9970_s27 + $0x3b8] sm:$0xff]  ;;  %v550_v26 = vld [vmem:[%s9970_s27 + $0x828] sm:$0xff] }
 0x1e6   : > { %v8206_v19 = vpop.f32.mrf.mxu0  ;;  %8530 = vmatpush3.bf16.msra.mxu0 %v9446_v34  ;;  %8558 = vmatpush3.bf16.msra.mxu1 %v9447_v36  ;;  %v9472_v34 = vld [vmem:[#allocation4 + $0xc70] sm:$0xff]  }
 0x1e7   : > { %v8207_v21 = vadd.f32 %v8206_v19, %v8205_v10  ;;  %v8234_v61 = vpop.f32.mrf.mxu1  ;;  %8531 = vmatprep.subr.bf16.mxu0 %v9448_v9  ;;  %8559 = vmatprep.subr.bf16.mxu1 %v9449_v18  ;;  %v9463_v10 = vld [vmem:[#allocation4 + $0xb88] sm:$0xff]   ;;  %v622_v19 = vpack.c.bf16 %v406_v17, %v334_v16  ;;  %v9474_v36 = vld [vmem:[#allocation4 + $0xc30] sm:$0xff]   ;;  %v477_v9 = vld [vmem:[%s9970_s27 + $0x5e0] sm:$0xff] }
 0x1e8   : > { %v8235_v29 = vadd.f32 %v8234_v61, %v8233_v15  ;;  %v8208_v30 = vpop.f32.mrf.mxu0  ;;  %v9467_v15 = vld [vmem:[#allocation4 + $0xb80] sm:$0xff]   ;;  %v624_v61 = vpack.c.bf16 %v408_v49, %v336_v56  ;;  %v9486_v16 = vld [vmem:[#allocation4 + $0xc18] sm:$0xff]   ;;  %v9488_v49 = vld [vmem:[#allocation4 + $0xc50] sm:$0xff]  }
 0x1e9   : > { %v5861_v63 = vadd.f32 %v8207_v21, %v10189_v13  ;;  %v8236_v58 = vpop.f32.mrf.mxu1  ;;  %v405_v21 = vld [vmem:[%s9970_s27 + $0x3a0] sm:$0xff]  ;;  %6446 = vmatprep.mubr.bf16.mxu0 %v622_v19 }
 0x1ea   : > { %v8209_v35 = vpop.f32.mrf.mxu0  ;;  %8532 = vmatpush3.bf16.msra.mxu0 %v9450_v45  ;;  %8560 = vmatpush3.bf16.msra.mxu1 %v9451_v47  ;;  %v621_v27 = vpack.c.bf16 %v405_v21, %v333_v20  ;;  %v9489_v21 = vld [vmem:[#allocation4 + $0xcd0] sm:$0xff]  }
 0x1eb   : > { %v10217_v40 = vadd.f32 %v8235_v29, %v5861_v63  ;;  %v8210_v41 = vadd.f32 %v8209_v35, %v8208_v30  ;;  %v8237_v42 = vpop.f32.mrf.mxu1  ;;  %8533 = vmatprep.subr.bf16.mxu0 %v9452_v50  ;;  %8561 = vmatprep.subr.bf16.mxu1 %v9453_v52  ;;  %v407_v29 = vld [vmem:[%s9970_s27 + $0x3b0] sm:$0xff]  ;;  %v9469_v63 = vld [vmem:[#allocation4 + $0xcf8] sm:$0xff]  }
 0x1ec   : > { %v8238_v43 = vadd.f32 %v8237_v42, %v8236_v58  ;;  %v8211_v46 = vpop.f32.mrf.mxu0  ;;  %v623_v30 = vpack.c.bf16 %v407_v29, %v335_v28  ;;  %6495 = vmatprep.mubr.bf16.mxu1 %v624_v61  ;;  %v9470_v58 = vld [vmem:[#allocation4 + $0xc38] sm:$0xff]   ;;  %v9473_v35 = vld [vmem:[#allocation4 + $0xcf0] sm:$0xff]  }
 0x1ed   : > { %v5864_v13 = vadd.f32 %v8210_v41, %v10192_v23  ;;  %v8239_v32 = vpop.f32.mrf.mxu1  ;;  %v478_v41 = vld [vmem:[%s9970_s27 + $0x5e8] sm:$0xff]  ;;  %v9490_v28 = vld [vmem:[#allocation4 + $0xc10] sm:$0xff]  }
 0x1ee   : > { %v8212_v51 = vpop.f32.mrf.mxu0  ;;  %8534 = vmatpush3.bf16.msra.mxu0 %v9454_v54  ;;  %8562 = vmatpush3.bf16.msra.mxu1 %v9455_v55  ;;  %v480_v54 = vld [vmem:[%s9970_s27 + $0x5f8] sm:$0xff] }
 0x1ef   : > { %v10220_v48 = vadd.f32 %v8238_v43, %v5864_v13  ;;  %v8213_v53 = vadd.f32 %v8212_v51, %v8211_v46  ;;  %v8240_v37 = vpop.f32.mrf.mxu1  ;;  %8535 = vmatprep.subr.bf16.mxu0 %v9456_v57  ;;  %8563 = vmatprep.subr.bf16.mxu1 %v9457_v60  ;;  %v549_v43 = vld [vmem:[%s9970_s27 + $0x820] sm:$0xff]  ;;  %v694_v13 = vpack.c.bf16 %v550_v26, %v478_v41  ;;  %v9476_v46 = vld [vmem:[#allocation4 + $0xc68] sm:$0xff]  }
 0x1f0   : > { %v8214_v25 = vpop.f32.mrf.mxu0  ;;  %v8241_v1 = vadd.f32 %v8240_v37, %v8239_v32  ;;  %v693_v45 = vpack.c.bf16 %v549_v43, %v477_v9  ;;  %v9477_v51 = vld [vmem:[#allocation4 + $0xce8] sm:$0xff]   ;;  %v479_v37 = vld [vmem:[%s9970_s27 + $0x5f0] sm:$0xff]  ;;  %v9497_v41 = vld [vmem:[#allocation4 + $0xcc0] sm:$0xff]  }
 0x1f1   : > { %v5869_v23 = vadd.f32 %v8213_v53, %v10196_v44  ;;  %v8242_v22 = vpop.f32.mrf.mxu1  ;;  %v9461_v44 = vld [vmem:[#allocation4 + $0xbc8] sm:$0xff]   ;;  %v9499_v26 = vld [vmem:[#allocation4 + $0xc80] sm:$0xff]  }
 0x1f2   : > { %v8215_v59 = vpop.f32.mrf.mxu0  ;;  %8536 = vmatpush3.bf16.msra.mxu0 %v9458_v0  ;;  %8564 = vmatpush3.bf16.msra.mxu1 %v9459_v2  ;;  %v9478_v57 = vld [vmem:[#allocation4 + $0xc28] sm:$0xff]   ;;  %v551_v2 = vld [vmem:[%s9970_s27 + $0x830] sm:$0xff] }
 0x1f3   : > { %v8216_v62 = vadd.f32 %v8215_v59, %v8214_v25  ;;  %v10224_v5 = vadd.f32 %v8241_v1, %v5869_v23  ;;  %v8243_v6 = vpop.f32.mrf.mxu1  ;;  %8537 = vmatprep.subr.bf16.mxu0 %v9460_v4  ;;  %8565 = vmatprep.subr.bf16.mxu1 %v9461_v44  ;;  %v552_v25 = vld [vmem:[%s9970_s27 + $0x838] sm:$0xff]  ;;  %v9479_v60 = vld [vmem:[#allocation4 + $0xca8] sm:$0xff]   ;;  %v9480_v4 = vld [vmem:[#allocation4 + $0xc60] sm:$0xff]  }
 0x1f4   : > { %v8244_v8 = vadd.f32 %v8243_v6, %v8242_v22  ;;  %v696_v32 = vpack.c.bf16 %v552_v25, %v480_v54  ;;  %v695_v22 = vpack.c.bf16 %v551_v2, %v479_v37  ;;  %v9481_v44 = vld [vmem:[#allocation4 + $0xce0] sm:$0xff]   ;;  %v338_v9 = vld [vmem:[%s9970_s27 + $0x188] sm:$0xff]  ;;  %v9500_v25 = vld [vmem:[#allocation4 + $0xd78] sm:$0xff]  }
 0x1f5   : > { %v5872_v3 = vadd.f32 %v8216_v62, %v10198_v24  ;;  %v9464_v24 = vld [vmem:[#allocation4 + $0xb40] sm:$0xff]   ;;  %v410_v43 = vld [vmem:[%s9970_s27 + $0x3c8] sm:$0xff]  ;;  %v9507_v37 = vld [vmem:[#allocation4 + $0xdb0] sm:$0xff]  }
 0x1f6   : > { %8538 = vmatpush3.bf16.msra.mxu0 %v9462_v7  ;;  %8566 = vmatpush3.bf16.msra.mxu1 %v9463_v10  ;;  %v9482_v6 = vld [vmem:[#allocation4 + $0xc20] sm:$0xff]   ;;  %v554_v2 = vld [vmem:[%s9970_s27 + $0x848] sm:$0xff] }
 0x1f7   : > { %v10226_v11 = vadd.f32 %v8244_v8, %v5872_v3  ;;  %8539 = vmatprep.subr.bf16.mxu0 %v9464_v24  ;;  %8567 = vmatprep.subr.bf16.mxu1 %v9465_v12  ;;  %v9483_v10 = vld [vmem:[#allocation4 + $0xca0] sm:$0xff]   ;;  %v9484_v24 = vld [vmem:[#allocation4 + $0xc58] sm:$0xff]  }
 0x1fa   : > { %8540 = vmatpush3.bf16.msra.mxu0 %v9466_v14  ;;  %8568 = vmatpush3.bf16.msra.mxu1 %v9467_v15  ;;  %v9485_v14 = vld [vmem:[#allocation4 + $0xcd8] sm:$0xff]  }
 0x1fb   : > { %8581 = vmatprep.subr.bf16.mxu0 %v9468_v31  ;;  %8609 = vmatprep.subr.bf16.mxu1 %v9469_v63 }
 0x1fd   : > { %6447 = vmatmul.mubr.bf16.vlgmr.msra.gmra.mxu0 %v621_v27  ;;  %6496 = vmatmul.mubr.bf16.vlgmr.msra.gmra.mxu1 %v623_v30  ;;  %v9491_v30 = vld [vmem:[#allocation4 + $0xc90] sm:$0xff]  }
 0x1fe   : > { %8582 = vmatpush3.bf16.msra.mxu0 %v9470_v58  ;;  %8610 = vmatpush3.bf16.msra.mxu1 %v9471_v33  ;;  %v9492_v58 = vld [vmem:[#allocation4 + $0xc48] sm:$0xff]  }
 0x1ff   : > { %8583 = vmatprep.subr.bf16.mxu0 %v9472_v34  ;;  %8611 = vmatprep.subr.bf16.mxu1 %v9473_v35  ;;  %v9494_v35 = vld [vmem:[#allocation4 + $0xc08] sm:$0xff]  }
 0x200   : > { %6454 = vmatprep.mubr.bf16.mxu0 %v694_v13  ;;  %6503 = vmatprep.mubr.bf16.mxu1 %v696_v32  ;;  %v340_v13 = vld [vmem:[%s9970_s27 + $0x198] sm:$0xff] }
 0x201   : > { %v9503_v32 = vld [vmem:[#allocation4 + $0xdb8] sm:$0xff]  }
 0x202   : > { %8584 = vmatpush3.bf16.msra.mxu0 %v9474_v36  ;;  %8612 = vmatpush3.bf16.msra.mxu1 %v9475_v39 }
 0x203   : > { %8585 = vmatprep.subr.bf16.mxu0 %v9476_v46  ;;  %8613 = vmatprep.subr.bf16.mxu1 %v9477_v51  ;;  %v337_v46 = vld [vmem:[%s9970_s27 + $0x180] sm:$0xff]  ;;  %v339_v51 = vld [vmem:[%s9970_s27 + $0x190] sm:$0xff] }
 0x204   : > { %v8261_v38 = vpop.f32.mrf.mxu0 }
 0x205   : > { %6455 = vmatmul.mubr.bf16.gmra.mxu0 %v693_v45  ;;  %6504 = vmatmul.mubr.bf16.gmra.mxu1 %v695_v22  ;;  %v412_v45 = vld [vmem:[%s9970_s27 + $0x3d8] sm:$0xff] }
 0x206   : > { %v8262_v18 = vpop.f32.mrf.mxu0  ;;  %8586 = vmatpush3.bf16.msra.mxu0 %v9478_v57  ;;  %8614 = vmatpush3.bf16.msra.mxu1 %v9479_v60  ;;  %v9504_v57 = vld [vmem:[#allocation4 + $0xd70] sm:$0xff]  }
 0x207   : > { %v8263_v47 = vadd.f32 %v8262_v18, %v8261_v38  ;;  %8587 = vmatprep.subr.bf16.mxu0 %v9480_v4  ;;  %8615 = vmatprep.subr.bf16.mxu1 %v9481_v44  ;;  %v9495_v38 = vld [vmem:[#allocation4 + $0xc88] sm:$0xff]   ;;  %v626_v18 = vpack.c.bf16 %v410_v43, %v338_v9  ;;  %v9506_v60 = vld [vmem:[#allocation4 + $0xd30] sm:$0xff]   ;;  %v9518_v9 = vld [vmem:[#allocation4 + $0xd18] sm:$0xff]  }
 0x208   : > { %v8264_v53 = vpop.f32.mrf.mxu0 }
 0x209   : > { %v5959_v55 = vadd.f32 %v8263_v47, %v10217_v40  ;;  %v628_v47 = vpack.c.bf16 %v412_v45, %v340_v13  ;;  %6544 = vmatprep.mubr.bf16.mxu0 %v626_v18  ;;  %v9519_v18 = vld [vmem:[#allocation4 + $0xd98] sm:$0xff]   ;;  %v9520_v45 = vld [vmem:[#allocation4 + $0xd50] sm:$0xff]  }
 0x20a   : > { %v8289_v42 = vpop.f32.mrf.mxu1  ;;  %v8265_v59 = vpop.f32.mrf.mxu0  ;;  %8588 = vmatpush3.bf16.msra.mxu0 %v9482_v6  ;;  %8616 = vmatpush3.bf16.msra.mxu1 %v9483_v10 }
 0x20b   : > { %v8266_v0 = vadd.f32 %v8265_v59, %v8264_v53  ;;  %8589 = vmatprep.subr.bf16.mxu0 %v9484_v24  ;;  %8617 = vmatprep.subr.bf16.mxu1 %v9485_v14  ;;  %v9505_v59 = vld [vmem:[#allocation4 + $0xdf0] sm:$0xff]   ;;  %v484_v14 = vld [vmem:[%s9970_s27 + $0x618] sm:$0xff] }
 0x20c   : > { %v8290_v50 = vpop.f32.mrf.mxu1  ;;  %6593 = vmatprep.mubr.bf16.mxu1 %v628_v47  ;;  %v9521_v47 = vld [vmem:[#allocation4 + $0xdd0] sm:$0xff]  }
 0x20d   : > { %v8291_v52 = vadd.f32 %v8290_v50, %v8289_v42  ;;  %v5962_v40 = vadd.f32 %v8266_v0, %v10220_v48  ;;  %v9487_v48 = vld [vmem:[#allocation4 + $0xc98] sm:$0xff]   ;;  %v9498_v42 = vld [vmem:[#allocation4 + $0xc00] sm:$0xff]  }
 0x20e   : > { %v8292_v23 = vpop.f32.mrf.mxu1  ;;  %8590 = vmatpush3.bf16.msra.mxu0 %v9486_v16  ;;  %8618 = vmatpush3.bf16.msra.mxu1 %v9487_v48  ;;  %v409_v50 = vld [vmem:[%s9970_s27 + $0x3c0] sm:$0xff] }
 0x20f   : > { %v10244_v62 = vadd.f32 %v8291_v52, %v5959_v55  ;;  %v8267_v8 = vpop.f32.mrf.mxu0  ;;  %8591 = vmatprep.subr.bf16.mxu0 %v9488_v49  ;;  %8619 = vmatprep.subr.bf16.mxu1 %v9489_v21  ;;  %v411_v52 = vld [vmem:[%s9970_s27 + $0x3d0] sm:$0xff]  ;;  %v625_v53 = vpack.c.bf16 %v409_v50, %v337_v46  ;;  %v9501_v55 = vld [vmem:[#allocation4 + $0xdf8] sm:$0xff]  }
 0x210   : > { %v8293_v1 = vpop.f32.mrf.mxu1  ;;  %v627_v54 = vpack.c.bf16 %v411_v52, %v339_v51  ;;  %v9522_v52 = vld [vmem:[#allocation4 + $0xd10] sm:$0xff]  }
 0x211   : > { %v8294_v3 = vadd.f32 %v8293_v1, %v8292_v23  ;;  %v8268_v12 = vpop.f32.mrf.mxu0  ;;  %v9502_v23 = vld [vmem:[#allocation4 + $0xd38] sm:$0xff]   ;;  %v482_v1 = vld [vmem:[%s9970_s27 + $0x608] sm:$0xff] }
 0x212   : > { %v8269_v15 = vadd.f32 %v8268_v12, %v8267_v8  ;;  %8592 = vmatpush3.bf16.msra.mxu0 %v9490_v28  ;;  %8620 = vmatpush3.bf16.msra.mxu1 %v9491_v30  ;;  %v698_v4 = vpack.c.bf16 %v554_v2, %v482_v1  ;;  %v9508_v8 = vld [vmem:[#allocation4 + $0xd68] sm:$0xff]   ;;  %v9529_v1 = vld [vmem:[#allocation4 + $0xdc0] sm:$0xff]  }
 0x213   : > { %v10248_v7 = vadd.f32 %v8294_v3, %v5962_v40  ;;  %v8270_v17 = vpop.f32.mrf.mxu0  ;;  %8593 = vmatprep.subr.bf16.mxu0 %v9492_v58  ;;  %v481_v3 = vld [vmem:[%s9970_s27 + $0x600] sm:$0xff]  ;;  %v9509_v12 = vld [vmem:[#allocation4 + $0xde8] sm:$0xff]  }
 0x214   : > { %v5967_v56 = vadd.f32 %v8269_v15, %v10224_v5  ;;  %v9493_v5 = vld [vmem:[#allocation4 + $0xcc8] sm:$0xff]   ;;  %v553_v40 = vld [vmem:[%s9970_s27 + $0x840] sm:$0xff]  ;;  %v556_v15 = vld [vmem:[%s9970_s27 + $0x858] sm:$0xff] }
 0x215   : > { %v8271_v20 = vpop.f32.mrf.mxu0  ;;  %8621 = vmatprep.subr.bf16.mxu1 %v9493_v5  ;;  %v697_v6 = vpack.c.bf16 %v553_v40, %v481_v3  ;;  %v700_v48 = vpack.c.bf16 %v556_v15, %v484_v14  ;;  %v9513_v5 = vld [vmem:[#allocation4 + $0xde0] sm:$0xff]   ;;  %v344_v40 = vld [vmem:[%s9970_s27 + $0x1b8] sm:$0xff]  ;;  %v415_v15 = vld [vmem:[%s9970_s27 + $0x3f0] sm:$0xff] }
 0x216   : > { %v8295_v19 = vpop.f32.mrf.mxu1  ;;  %v8272_v27 = vadd.f32 %v8271_v20, %v8270_v17  ;;  %8594 = vmatpush3.bf16.msra.mxu0 %v9494_v35  ;;  %8622 = vmatpush3.bf16.msra.mxu1 %v9495_v38  ;;  %v9511_v20 = vld [vmem:[#allocation4 + $0xda8] sm:$0xff]   ;;  %v9530_v2 = vld [vmem:[#allocation4 + $0xd00] sm:$0xff]  }
 0x217   : > { %8623 = vmatprep.subr.bf16.mxu1 %v9497_v41  ;;  %v9531_v3 = vld [vmem:[#allocation4 + $0xd80] sm:$0xff]  }
 0x218   : > { %v8296_v61 = vpop.f32.mrf.mxu1  ;;  %v5970_v31 = vadd.f32 %v8272_v27, %v10226_v11  ;;  %v9496_v11 = vld [vmem:[#allocation4 + $0xc40] sm:$0xff]   ;;  %v555_v27 = vld [vmem:[%s9970_s27 + $0x850] sm:$0xff] }
 0x219   : > { %v8297_v29 = vadd.f32 %v8296_v61, %v8295_v19  ;;  %8595 = vmatprep.subr.bf16.mxu0 %v9496_v11  ;;  %v483_v61 = vld [vmem:[%s9970_s27 + $0x610] sm:$0xff]  ;;  %v9516_v11 = vld [vmem:[#allocation4 + $0xd58] sm:$0xff]  }
 0x21a   : > { %v8298_v63 = vpop.f32.mrf.mxu1  ;;  %8596 = vmatpush3.bf16.msra.mxu0 %v9498_v42  ;;  %8624 = vmatpush3.bf16.msra.mxu1 %v9499_v26  ;;  %v9517_v42 = vld [vmem:[#allocation4 + $0xdd8] sm:$0xff]  }
 0x21b   : > { %v10252_v33 = vadd.f32 %v8297_v29, %v5967_v56  ;;  %8637 = vmatprep.subr.bf16.mxu0 %v9500_v25  ;;  %8665 = vmatprep.subr.bf16.mxu1 %v9501_v55  ;;  %v9510_v56 = vld [vmem:[#allocation4 + $0xd28] sm:$0xff]  }
 0x21c   : > { %v8299_v34 = vpop.f32.mrf.mxu1 }
 0x21d   : > { %v8300_v36 = vadd.f32 %v8299_v34, %v8298_v63  ;;  %6545 = vmatmul.mubr.bf16.vlgmr.msra.gmra.mxu0 %v625_v53  ;;  %6594 = vmatmul.mubr.bf16.vlgmr.msra.gmra.mxu1 %v627_v54  ;;  %v9512_v63 = vld [vmem:[#allocation4 + $0xd60] sm:$0xff]   ;;  %v9523_v54 = vld [vmem:[#allocation4 + $0xd90] sm:$0xff]  }
 0x21e   : > { %8638 = vmatpush3.bf16.msra.mxu0 %v9502_v23  ;;  %8666 = vmatpush3.bf16.msra.mxu1 %v9503_v32  ;;  %v9524_v23 = vld [vmem:[#allocation4 + $0xd48] sm:$0xff]  }
 0x21f   : > { %v10254_v39 = vadd.f32 %v8300_v36, %v5970_v31  ;;  %8639 = vmatprep.subr.bf16.mxu0 %v9504_v57  ;;  %8667 = vmatprep.subr.bf16.mxu1 %v9505_v59  ;;  %v699_v31 = vpack.c.bf16 %v555_v27, %v483_v61  ;;  %v9515_v36 = vld [vmem:[#allocation4 + $0xda0] sm:$0xff]   ;;  %v9526_v59 = vld [vmem:[#allocation4 + $0xd08] sm:$0xff]   ;;  %v9539_v27 = vld [vmem:[#allocation4 + $0xeb0] sm:$0xff]  }
 0x220   : > { %6552 = vmatprep.mubr.bf16.mxu0 %v698_v4  ;;  %6601 = vmatprep.mubr.bf16.mxu1 %v700_v48  ;;  %v414_v4 = vld [vmem:[%s9970_s27 + $0x3e8] sm:$0xff]  ;;  %v9533_v48 = vld [vmem:[#allocation4 + $0xef8] sm:$0xff]  }
 0x222   : > { %8640 = vmatpush3.bf16.msra.mxu0 %v9506_v60  ;;  %8668 = vmatpush3.bf16.msra.mxu1 %v9507_v37  ;;  %v9527_v37 = vld [vmem:[#allocation4 + $0xd88] sm:$0xff]  }
 0x223   : > { %8641 = vmatprep.subr.bf16.mxu0 %v9508_v8  ;;  %8669 = vmatprep.subr.bf16.mxu1 %v9509_v12  ;;  %v343_v12 = vld [vmem:[%s9970_s27 + $0x1b0] sm:$0xff] }
 0x225   : > { %6553 = vmatmul.mubr.bf16.gmra.mxu0 %v697_v6  ;;  %6602 = vmatmul.mubr.bf16.gmra.mxu1 %v699_v31 }
 0x226   : > { %8642 = vmatpush3.bf16.msra.mxu0 %v9510_v56  ;;  %8670 = vmatpush3.bf16.msra.mxu1 %v9511_v20  ;;  %v9534_v56 = vld [vmem:[#allocation4 + $0xe38] sm:$0xff]   ;;  %v9537_v20 = vld [vmem:[#allocation4 + $0xef0] sm:$0xff]  }
 0x227   : > { %8643 = vmatprep.subr.bf16.mxu0 %v9512_v63  ;;  %8671 = vmatprep.subr.bf16.mxu1 %v9513_v5  ;;  %v557_v5 = vld [vmem:[%s9970_s27 + $0x860] sm:$0xff] }
 0x22a   : > { %8672 = vmatpush3.bf16.msra.mxu1 %v9515_v36 }
 0x22b   : > { %8673 = vmatprep.subr.bf16.mxu1 %v9517_v42  ;;  %v488_v42 = vld [vmem:[%s9970_s27 + $0x638] sm:$0xff] }
 0x22e   : > { %8674 = vmatpush3.bf16.msra.mxu1 %v9519_v18 }
 0x22f   : > { %8675 = vmatprep.subr.bf16.mxu1 %v9521_v47  ;;  %v9543_v47 = vld [vmem:[#allocation4 + $0xea8] sm:$0xff]  }
 0x232   : > { %v8345_v22 = vpop.f32.mrf.mxu1  ;;  %8676 = vmatpush3.bf16.msra.mxu1 %v9523_v54 }
 0x234   : > { %v8346_v24 = vpop.f32.mrf.mxu1 }
 0x235   : > { %v8317_v0 = vpop.f32.mrf.mxu0  ;;  %v8347_v16 = vadd.f32 %v8346_v24, %v8345_v22  ;;  %v342_v22 = vld [vmem:[%s9970_s27 + $0x1a8] sm:$0xff]  ;;  %v413_v24 = vld [vmem:[%s9970_s27 + $0x3e0] sm:$0xff] }
 0x236   : > { %v8348_v49 = vpop.f32.mrf.mxu1  ;;  %v630_v6 = vpack.c.bf16 %v414_v4, %v342_v22  ;;  %v9551_v4 = vld [vmem:[#allocation4 + $0xe98] sm:$0xff]  }
 0x237   : > { %v8318_v44 = vpop.f32.mrf.mxu0 }
 0x238   : > { %v8319_v10 = vadd.f32 %v8318_v44, %v8317_v0  ;;  %v8349_v30 = vpop.f32.mrf.mxu1  ;;  %v9528_v0 = vld [vmem:[#allocation4 + $0xd40] sm:$0xff]   ;;  %v416_v44 = vld [vmem:[%s9970_s27 + $0x3f8] sm:$0xff]  ;;  %6642 = vmatprep.mubr.bf16.mxu0 %v630_v6 }
 0x239   : > { %v8320_v17 = vpop.f32.mrf.mxu0  ;;  %v8350_v58 = vadd.f32 %v8349_v30, %v8348_v49  ;;  %v632_v8 = vpack.c.bf16 %v416_v44, %v344_v40  ;;  %v9536_v49 = vld [vmem:[#allocation4 + $0xe70] sm:$0xff]   ;;  %v558_v30 = vld [vmem:[%s9970_s27 + $0x868] sm:$0xff] }
 0x23a   : > { %v6057_v19 = vadd.f32 %v8319_v10, %v10244_v62  ;;  %v9514_v62 = vld [vmem:[#allocation4 + $0xd20] sm:$0xff]   ;;  %v8351_v13 = vpop.f32.mrf.mxu1 }
 0x23b   : > { %v8321_v21 = vpop.f32.mrf.mxu0  ;;  %8644 = vmatpush3.bf16.msra.mxu0 %v9514_v62  ;;  %v341_v10 = vld [vmem:[%s9970_s27 + $0x1a0] sm:$0xff]  ;;  %6691 = vmatprep.mubr.bf16.mxu1 %v632_v8  ;;  %v9553_v8 = vld [vmem:[#allocation4 + $0xed0] sm:$0xff]  }
 0x23c   : > { %v10273_v28 = vadd.f32 %v8347_v16, %v6057_v19  ;;  %v8322_v29 = vadd.f32 %v8321_v21, %v8320_v17  ;;  %8645 = vmatprep.subr.bf16.mxu0 %v9516_v11  ;;  %v8352_v50 = vpop.f32.mrf.mxu1  ;;  %v629_v14 = vpack.c.bf16 %v413_v24, %v341_v10  ;;  %v631_v16 = vpack.c.bf16 %v415_v15, %v343_v12  ;;  %v9532_v17 = vld [vmem:[#allocation4 + $0xe78] sm:$0xff]   ;;  %v9538_v21 = vld [vmem:[#allocation4 + $0xe30] sm:$0xff]  }
 0x23d   : > { %v8323_v35 = vpop.f32.mrf.mxu0  ;;  %v8353_v53 = vadd.f32 %v8352_v50, %v8351_v13  ;;  %v9535_v19 = vld [vmem:[#allocation4 + $0xeb8] sm:$0xff]   ;;  %v487_v50 = vld [vmem:[%s9970_s27 + $0x630] sm:$0xff] }
 0x23e   : > { %v6060_v34 = vadd.f32 %v8322_v29, %v10248_v7  ;;  %v8354_v55 = vpop.f32.mrf.mxu1  ;;  %v486_v29 = vld [vmem:[%s9970_s27 + $0x628] sm:$0xff]  ;;  %v9554_v24 = vld [vmem:[#allocation4 + $0xe10] sm:$0xff]  }
 0x23f   : > { %v8324_v41 = vpop.f32.mrf.mxu0  ;;  %8646 = vmatpush3.bf16.msra.mxu0 %v9518_v9  ;;  %v702_v63 = vpack.c.bf16 %v558_v30, %v486_v29  ;;  %v9555_v15 = vld [vmem:[#allocation4 + $0xe90] sm:$0xff]   ;;  %v9562_v30 = vld [vmem:[#allocation4 + $0xe00] sm:$0xff]  }
 0x240   : > { %v10276_v38 = vadd.f32 %v8350_v58, %v6060_v34  ;;  %v8325_v26 = vadd.f32 %v8324_v41, %v8323_v35  ;;  %8647 = vmatprep.subr.bf16.mxu0 %v9520_v45  ;;  %v8355_v57 = vpop.f32.mrf.mxu1  ;;  %v485_v58 = vld [vmem:[%s9970_s27 + $0x620] sm:$0xff]  ;;  %v9540_v35 = vld [vmem:[#allocation4 + $0xe68] sm:$0xff]  }
 0x241   : > { %v8326_v43 = vpop.f32.mrf.mxu0  ;;  %v8356_v60 = vadd.f32 %v8355_v57, %v8354_v55  ;;  %v701_v62 = vpack.c.bf16 %v557_v5, %v485_v58  ;;  %v9541_v41 = vld [vmem:[#allocation4 + $0xee8] sm:$0xff]   ;;  %v9544_v55 = vld [vmem:[#allocation4 + $0xe60] sm:$0xff]   ;;  %v348_v5 = vld [vmem:[%s9970_s27 + $0x1d8] sm:$0xff] }
 0x242   : > { %v6065_v7 = vadd.f32 %v8325_v26, %v10252_v33  ;;  %v9525_v33 = vld [vmem:[#allocation4 + $0xdc8] sm:$0xff]   ;;  %v9546_v57 = vld [vmem:[#allocation4 + $0xe20] sm:$0xff]  }
 0x243   : > { %v8327_v46 = vpop.f32.mrf.mxu0  ;;  %8648 = vmatpush3.bf16.msra.mxu0 %v9522_v52  ;;  %8677 = vmatprep.subr.bf16.mxu1 %v9525_v33  ;;  %v9542_v45 = vld [vmem:[#allocation4 + $0xe28] sm:$0xff]   ;;  %v9545_v33 = vld [vmem:[#allocation4 + $0xee0] sm:$0xff]  }
 0x244   : > { %v8328_v51 = vadd.f32 %v8327_v46, %v8326_v43  ;;  %v10280_v32 = vadd.f32 %v8353_v53, %v6065_v7  ;;  %8649 = vmatprep.subr.bf16.mxu0 %v9524_v23  ;;  %8678 = vmatpush3.bf16.msra.mxu1 %v9527_v37  ;;  %v560_v43 = vld [vmem:[%s9970_s27 + $0x878] sm:$0xff]  ;;  %v418_v58 = vld [vmem:[%s9970_s27 + $0x408] sm:$0xff] }
 0x245   : > { %8679 = vmatprep.subr.bf16.mxu1 %v9529_v1  ;;  %v704_v13 = vpack.c.bf16 %v560_v43, %v488_v42  ;;  %v9549_v1 = vld [vmem:[#allocation4 + $0xed8] sm:$0xff]   ;;  %v347_v42 = vld [vmem:[%s9970_s27 + $0x1d0] sm:$0xff] }
 0x246   : > { %v6068_v25 = vadd.f32 %v8328_v51, %v10254_v39  ;;  %v559_v51 = vld [vmem:[%s9970_s27 + $0x870] sm:$0xff]  ;;  %v9564_v43 = vld [vmem:[#allocation4 + $0xf78] sm:$0xff]  }
 0x247   : > { %8650 = vmatpush3.bf16.msra.mxu0 %v9526_v59  ;;  %v9547_v59 = vld [vmem:[#allocation4 + $0xea0] sm:$0xff]  }
 0x248   : > { %v10282_v39 = vadd.f32 %v8356_v60, %v6068_v25  ;;  %8651 = vmatprep.subr.bf16.mxu0 %v9528_v0  ;;  %8680 = vmatpush3.bf16.msra.mxu1 %v9531_v3  ;;  %v703_v25 = vpack.c.bf16 %v559_v51, %v487_v50  ;;  %v9548_v0 = vld [vmem:[#allocation4 + $0xe58] sm:$0xff]   ;;  %v9571_v50 = vld [vmem:[#allocation4 + $0xfb0] sm:$0xff]   ;;  %v490_v51 = vld [vmem:[%s9970_s27 + $0x648] sm:$0xff] }
 0x249   : > { %8721 = vmatprep.subr.bf16.mxu1 %v9533_v48  ;;  %v9550_v3 = vld [vmem:[#allocation4 + $0xe18] sm:$0xff]  }
 0x24b   : > { %8652 = vmatpush3.bf16.msra.mxu0 %v9530_v2  ;;  %6692 = vmatmul.mubr.bf16.vlgmr.msra.gmra.mxu1 %v631_v16 }
 0x24c   : > { %8693 = vmatprep.subr.bf16.mxu0 %v9532_v17  ;;  %8722 = vmatpush3.bf16.msra.mxu1 %v9535_v19  ;;  %v9556_v17 = vld [vmem:[#allocation4 + $0xe48] sm:$0xff]  }
 0x24d   : > { %8723 = vmatprep.subr.bf16.mxu1 %v9537_v20  ;;  %6699 = vmatprep.mubr.bf16.mxu1 %v704_v13  ;;  %v9557_v19 = vld [vmem:[#allocation4 + $0xec8] sm:$0xff]   ;;  %v9567_v13 = vld [vmem:[#allocation4 + $0xfb8] sm:$0xff]  }
 0x24e   : > { %6643 = vmatmul.mubr.bf16.vlgmr.msra.gmra.mxu0 %v629_v14 }
 0x24f   : > { %8694 = vmatpush3.bf16.msra.mxu0 %v9534_v56  ;;  %6650 = vmatprep.mubr.bf16.mxu0 %v702_v63  ;;  %v346_v63 = vld [vmem:[%s9970_s27 + $0x1c8] sm:$0xff] }
 0x250   : > { %8695 = vmatprep.subr.bf16.mxu0 %v9536_v49  ;;  %8724 = vmatpush3.bf16.msra.mxu1 %v9539_v27  ;;  %v9560_v27 = vld [vmem:[#allocation4 + $0xe40] sm:$0xff]  }
 0x251   : > { %8725 = vmatprep.subr.bf16.mxu1 %v9541_v41 }
 0x253   : > { %8696 = vmatpush3.bf16.msra.mxu0 %v9538_v21  ;;  %6700 = vmatmul.mubr.bf16.gmra.mxu1 %v703_v25  ;;  %v9559_v21 = vld [vmem:[#allocation4 + $0xe88] sm:$0xff]  }
 0x254   : > { %8697 = vmatprep.subr.bf16.mxu0 %v9540_v35  ;;  %8726 = vmatpush3.bf16.msra.mxu1 %v9543_v47  ;;  %v345_v35 = vld [vmem:[%s9970_s27 + $0x1c0] sm:$0xff]  ;;  %v9570_v47 = vld [vmem:[#allocation4 + $0xf30] sm:$0xff]   ;;  %v562_v25 = vld [vmem:[%s9970_s27 + $0x888] sm:$0xff] }
 0x255   : > { %8727 = vmatprep.subr.bf16.mxu1 %v9545_v33  ;;  %v706_v33 = vpack.c.bf16 %v562_v25, %v490_v51  ;;  %v9595_v25 = vld [vmem:[#allocation4 + $0xf80] sm:$0xff]  }
 0x256   : > { %6651 = vmatmul.mubr.bf16.gmra.mxu0 %v701_v62  ;;  %v420_v62 = vld [vmem:[%s9970_s27 + $0x418] sm:$0xff] }
 0x257   : > { %8698 = vmatpush3.bf16.msra.mxu0 %v9542_v45  ;;  %v9568_v45 = vld [vmem:[#allocation4 + $0xf70] sm:$0xff]  }
 0x258   : > { %8699 = vmatprep.subr.bf16.mxu0 %v9544_v55  ;;  %8728 = vmatpush3.bf16.msra.mxu1 %v9547_v59  ;;  %v489_v55 = vld [vmem:[%s9970_s27 + $0x640] sm:$0xff] }
 0x259   : > { %8729 = vmatprep.subr.bf16.mxu1 %v9549_v1 }
 0x25a   : > { %v8373_v61 = vpop.f32.mrf.mxu0 }
 0x25b   : > { %8700 = vmatpush3.bf16.msra.mxu0 %v9546_v57  ;;  %v9572_v57 = vld [vmem:[#allocation4 + $0xf68] sm:$0xff]  }
 0x25c   : > { %v8374_v34 = vpop.f32.mrf.mxu0  ;;  %8701 = vmatprep.subr.bf16.mxu0 %v9548_v0  ;;  %8730 = vmatpush3.bf16.msra.mxu1 %v9551_v4  ;;  %v9573_v0 = vld [vmem:[#allocation4 + $0xfe8] sm:$0xff]  }
 0x25d   : > { %v8401_v31 = vpop.f32.mrf.mxu1  ;;  %v8375_v36 = vadd.f32 %v8374_v34, %v8373_v61  ;;  %8731 = vmatprep.subr.bf16.mxu1 %v9553_v8  ;;  %v634_v34 = vpack.c.bf16 %v418_v58, %v346_v63  ;;  %v9575_v8 = vld [vmem:[#allocation4 + $0xfa8] sm:$0xff]   ;;  %v9582_v63 = vld [vmem:[#allocation4 + $0xf18] sm:$0xff]  }
 0x25e   : > { %v8376_v9 = vpop.f32.mrf.mxu0 }
 0x25f   : > { %v8402_v11 = vpop.f32.mrf.mxu1  ;;  %v6155_v18 = vadd.f32 %v8375_v36, %v10273_v28  ;;  %8702 = vmatpush3.bf16.msra.mxu0 %v9550_v3  ;;  %v417_v36 = vld [vmem:[%s9970_s27 + $0x400] sm:$0xff]  ;;  %6740 = vmatprep.mubr.bf16.mxu0 %v634_v34  ;;  %v492_v3 = vld [vmem:[%s9970_s27 + $0x658] sm:$0xff] }
 0x260   : > { %v8403_v26 = vadd.f32 %v8402_v11, %v8401_v31  ;;  %v8377_v46 = vpop.f32.mrf.mxu0  ;;  %8732 = vmatpush3.bf16.msra.mxu1 %v9555_v15  ;;  %v9563_v31 = vld [vmem:[#allocation4 + $0xe80] sm:$0xff]   ;;  %v636_v11 = vpack.c.bf16 %v420_v62, %v348_v5  ;;  %v633_v41 = vpack.c.bf16 %v417_v36, %v345_v35  ;;  %v9583_v5 = vld [vmem:[#allocation4 + $0xf98] sm:$0xff]   ;;  %v9584_v62 = vld [vmem:[#allocation4 + $0xf50] sm:$0xff]  }
 0x261   : > { %v8404_v7 = vpop.f32.mrf.mxu1  ;;  %v8378_v53 = vadd.f32 %v8377_v46, %v8376_v9  ;;  %8733 = vmatprep.subr.bf16.mxu1 %v9557_v19  ;;  %v9569_v46 = vld [vmem:[#allocation4 + $0xff0] sm:$0xff]   ;;  %v9577_v19 = vld [vmem:[#allocation4 + $0xfe0] sm:$0xff]  }
 0x262   : > { %v10301_v52 = vadd.f32 %v8403_v26, %v6155_v18  ;;  %v8379_v37 = vpop.f32.mrf.mxu0  ;;  %v419_v26 = vld [vmem:[%s9970_s27 + $0x410] sm:$0xff]  ;;  %6789 = vmatprep.mubr.bf16.mxu1 %v636_v11  ;;  %v9565_v18 = vld [vmem:[#allocation4 + $0xff8] sm:$0xff]  }
 0x263   : > { %v8405_v54 = vpop.f32.mrf.mxu1  ;;  %v6158_v28 = vadd.f32 %v8378_v53, %v10276_v38  ;;  %v9552_v38 = vld [vmem:[#allocation4 + $0xe50] sm:$0xff]   ;;  %v635_v9 = vpack.c.bf16 %v419_v26, %v347_v42 }
 0x264   : > { %v8406_v23 = vadd.f32 %v8405_v54, %v8404_v7  ;;  %v8380_v2 = vpop.f32.mrf.mxu0  ;;  %8703 = vmatprep.subr.bf16.mxu0 %v9552_v38  ;;  %8734 = vmatpush3.bf16.msra.mxu1 %v9559_v21  ;;  %v9566_v7 = vld [vmem:[#allocation4 + $0xf38] sm:$0xff]   ;;  %v9579_v21 = vld [vmem:[#allocation4 + $0xfa0] sm:$0xff]   ;;  %v9585_v36 = vld [vmem:[#allocation4 + $0xfd0] sm:$0xff]  }
 0x265   : > { %v8381_v22 = vadd.f32 %v8380_v2, %v8379_v37  ;;  %v8407_v6 = vpop.f32.mrf.mxu1  ;;  %8704 = vmatpush3.bf16.msra.mxu0 %v9554_v24  ;;  %v9586_v42 = vld [vmem:[#allocation4 + $0xf10] sm:$0xff]  }
 0x266   : > { %v10304_v60 = vadd.f32 %v8406_v23, %v6158_v28  ;;  %v8382_v40 = vpop.f32.mrf.mxu0  ;;  %8705 = vmatprep.subr.bf16.mxu0 %v9556_v17  ;;  %v561_v23 = vld [vmem:[%s9970_s27 + $0x880] sm:$0xff] }
 0x267   : > { %v6163_v44 = vadd.f32 %v8381_v22, %v10280_v32  ;;  %v8408_v12 = vpop.f32.mrf.mxu1  ;;  %v9558_v32 = vld [vmem:[#allocation4 + $0xe08] sm:$0xff]   ;;  %v705_v28 = vpack.c.bf16 %v561_v23, %v489_v55  ;;  %v564_v22 = vld [vmem:[%s9970_s27 + $0x898] sm:$0xff] }
 0x268   : > { %v8383_v10 = vpop.f32.mrf.mxu0  ;;  %v8409_v16 = vadd.f32 %v8408_v12, %v8407_v6  ;;  %v708_v38 = vpack.c.bf16 %v564_v22, %v492_v3  ;;  %v350_v55 = vld [vmem:[%s9970_s27 + $0x1e8] sm:$0xff] }
 0x269   : > { %v8384_v14 = vadd.f32 %v8383_v10, %v8382_v40  ;;  %v8410_v56 = vpop.f32.mrf.mxu1  ;;  %8706 = vmatpush3.bf16.msra.mxu0 %v9558_v32  ;;  %v491_v10 = vld [vmem:[%s9970_s27 + $0x650] sm:$0xff]  ;;  %v422_v23 = vld [vmem:[%s9970_s27 + $0x428] sm:$0xff] }
 0x26a   : > { %v10308_v49 = vadd.f32 %v8409_v16, %v6163_v44  ;;  %8707 = vmatprep.subr.bf16.mxu0 %v9560_v27  ;;  %v9574_v44 = vld [vmem:[#allocation4 + $0xf28] sm:$0xff]   ;;  %v9580_v27 = vld [vmem:[#allocation4 + $0xf58] sm:$0xff]  }
 0x26b   : > { %v6166_v48 = vadd.f32 %v8384_v14, %v10282_v39  ;;  %v8411_v20 = vpop.f32.mrf.mxu1  ;;  %v9561_v39 = vld [vmem:[#allocation4 + $0xec0] sm:$0xff]   ;;  %v563_v14 = vld [vmem:[%s9970_s27 + $0x890] sm:$0xff] }
 0x26c   : > { %v8412_v61 = vadd.f32 %v8411_v20, %v8410_v56  ;;  %8735 = vmatprep.subr.bf16.mxu1 %v9561_v39  ;;  %v9576_v56 = vld [vmem:[#allocation4 + $0xf60] sm:$0xff]  }
 0x26d   : > { %8708 = vmatpush3.bf16.msra.mxu0 %v9562_v30  ;;  %8736 = vmatpush3.bf16.msra.mxu1 %v9563_v31  ;;  %v9581_v30 = vld [vmem:[#allocation4 + $0xfd8] sm:$0xff]  }
 0x26e   : > { %v10310_v29 = vadd.f32 %v8412_v61, %v6166_v48  ;;  %8749 = vmatprep.subr.bf16.mxu0 %v9564_v43  ;;  %8777 = vmatprep.subr.bf16.mxu1 %v9565_v18  ;;  %v707_v48 = vpack.c.bf16 %v563_v14, %v491_v10  ;;  %v9602_v10 = vld [vmem:[#allocation4 + $0x1030] sm:$0xff]   ;;  %v494_v14 = vld [vmem:[%s9970_s27 + $0x668] sm:$0xff] }
 0x270   : > { %6741 = vmatmul.mubr.bf16.vlgmr.msra.gmra.mxu0 %v633_v41  ;;  %6790 = vmatmul.mubr.bf16.vlgmr.msra.gmra.mxu1 %v635_v9  ;;  %v9587_v9 = vld [vmem:[#allocation4 + $0xf90] sm:$0xff]  }
 0x271   : > { %8750 = vmatpush3.bf16.msra.mxu0 %v9566_v7  ;;  %8778 = vmatpush3.bf16.msra.mxu1 %v9567_v13  ;;  %v9588_v7 = vld [vmem:[#allocation4 + $0xf48] sm:$0xff]  }
 0x272   : > { %8751 = vmatprep.subr.bf16.mxu0 %v9568_v45  ;;  %8779 = vmatprep.subr.bf16.mxu1 %v9569_v46  ;;  %v9590_v46 = vld [vmem:[#allocation4 + $0xf08] sm:$0xff]  }
 0x273   : > { %6748 = vmatprep.mubr.bf16.mxu0 %v706_v33  ;;  %6797 = vmatprep.mubr.bf16.mxu1 %v708_v38  ;;  %v638_v33 = vpack.c.bf16 %v422_v23, %v350_v55  ;;  %v9598_v38 = vld [vmem:[#allocation4 + $0x1038] sm:$0xff]  }
 0x274   : > { %v9614_v55 = vld [vmem:[#allocation4 + $0x1018] sm:$0xff]  }
 0x275   : > { %8752 = vmatpush3.bf16.msra.mxu0 %v9570_v47  ;;  %8780 = vmatpush3.bf16.msra.mxu1 %v9571_v50  ;;  %v9591_v50 = vld [vmem:[#allocation4 + $0xf88] sm:$0xff]  }
 0x276   : > { %8753 = vmatprep.subr.bf16.mxu0 %v9572_v57  ;;  %8781 = vmatprep.subr.bf16.mxu1 %v9573_v0  ;;  %v424_v57 = vld [vmem:[%s9970_s27 + $0x438] sm:$0xff]  ;;  %v421_v0 = vld [vmem:[%s9970_s27 + $0x420] sm:$0xff] }
 0x278   : > { %6749 = vmatmul.mubr.bf16.gmra.mxu0 %v705_v28  ;;  %6798 = vmatmul.mubr.bf16.gmra.mxu1 %v707_v48  ;;  %v352_v28 = vld [vmem:[%s9970_s27 + $0x1f8] sm:$0xff] }
 0x279   : > { %8754 = vmatpush3.bf16.msra.mxu0 %v9574_v44  ;;  %8782 = vmatpush3.bf16.msra.mxu1 %v9575_v8  ;;  %v9599_v44 = vld [vmem:[#allocation4 + $0x10b8] sm:$0xff]   ;;  %v9601_v8 = vld [vmem:[#allocation4 + $0x10f0] sm:$0xff]  }
 0x27a   : > { %v8429_v53 = vpop.f32.mrf.mxu0  ;;  %8755 = vmatprep.subr.bf16.mxu0 %v9576_v56  ;;  %8783 = vmatprep.subr.bf16.mxu1 %v9577_v19  ;;  %v565_v19 = vld [vmem:[%s9970_s27 + $0x8a0] sm:$0xff] }
 0x27b   : > { %6838 = vmatprep.mubr.bf16.mxu0 %v638_v33  ;;  %v9615_v33 = vld [vmem:[#allocation4 + $0x1098] sm:$0xff]  }
 0x27c   : > { %v8430_v59 = vpop.f32.mrf.mxu0 }
 0x27d   : > { %v8457_v54 = vpop.f32.mrf.mxu1  ;;  %v8431_v1 = vadd.f32 %v8430_v59, %v8429_v53  ;;  %8784 = vmatpush3.bf16.msra.mxu1 %v9579_v21  ;;  %v9593_v53 = vld [vmem:[#allocation4 + $0xfc0] sm:$0xff]  }
 0x27e   : > { %v8432_v4 = vpop.f32.mrf.mxu0  ;;  %8785 = vmatprep.subr.bf16.mxu1 %v9581_v30  ;;  %v349_v59 = vld [vmem:[%s9970_s27 + $0x1e0] sm:$0xff]  ;;  %v496_v30 = vld [vmem:[%s9970_s27 + $0x678] sm:$0xff] }
 0x27f   : > { %v8458_v37 = vpop.f32.mrf.mxu1  ;;  %v6253_v6 = vadd.f32 %v8431_v1, %v10301_v52  ;;  %v9578_v52 = vld [vmem:[#allocation4 + $0xf20] sm:$0xff]   ;;  %v351_v1 = vld [vmem:[%s9970_s27 + $0x1f0] sm:$0xff]  ;;  %v637_v3 = vpack.c.bf16 %v421_v0, %v349_v59 }
 0x280   : > { %v8459_v2 = vadd.f32 %v8458_v37, %v8457_v54  ;;  %v8433_v24 = vpop.f32.mrf.mxu0  ;;  %8756 = vmatpush3.bf16.msra.mxu0 %v9578_v52  ;;  %v9594_v54 = vld [vmem:[#allocation4 + $0xf00] sm:$0xff]   ;;  %v640_v37 = vpack.c.bf16 %v424_v57, %v352_v28  ;;  %v9616_v57 = vld [vmem:[#allocation4 + $0x1050] sm:$0xff]  }
 0x281   : > { %v8460_v40 = vpop.f32.mrf.mxu1  ;;  %v8434_v16 = vadd.f32 %v8433_v24, %v8432_v4  ;;  %8757 = vmatprep.subr.bf16.mxu0 %v9580_v27  ;;  %8786 = vmatpush3.bf16.msra.mxu1 %v9583_v5  ;;  %v9596_v4 = vld [vmem:[#allocation4 + $0x1078] sm:$0xff]   ;;  %v9603_v24 = vld [vmem:[#allocation4 + $0x10b0] sm:$0xff]  }
 0x282   : > { %v10329_v15 = vadd.f32 %v8459_v2, %v6253_v6  ;;  %v8435_v20 = vpop.f32.mrf.mxu0  ;;  %8787 = vmatprep.subr.bf16.mxu1 %v9585_v36  ;;  %v423_v2 = vld [vmem:[%s9970_s27 + $0x430] sm:$0xff]  ;;  %6887 = vmatprep.mubr.bf16.mxu1 %v640_v37 }
 0x283   : > { %v8461_v12 = vpop.f32.mrf.mxu1  ;;  %v6256_v32 = vadd.f32 %v8434_v16, %v10304_v60  ;;  %v639_v22 = vpack.c.bf16 %v423_v2, %v351_v1  ;;  %v9600_v6 = vld [vmem:[#allocation4 + $0x1070] sm:$0xff]   ;;  %v566_v16 = vld [vmem:[%s9970_s27 + $0x8a8] sm:$0xff] }
 0x284   : > { %v8462_v17 = vadd.f32 %v8461_v12, %v8460_v40  ;;  %v8436_v39 = vpop.f32.mrf.mxu0  ;;  %8758 = vmatpush3.bf16.msra.mxu0 %v9582_v63  ;;  %v9597_v40 = vld [vmem:[#allocation4 + $0x10f8] sm:$0xff]   ;;  %v710_v56 = vpack.c.bf16 %v566_v16, %v494_v14  ;;  %v9617_v37 = vld [vmem:[#allocation4 + $0x10d0] sm:$0xff]   ;;  %v9625_v14 = vld [vmem:[#allocation4 + $0x10c0] sm:$0xff]  }
 0x285   : > { %v8437_v31 = vadd.f32 %v8436_v39, %v8435_v20  ;;  %v8463_v34 = vpop.f32.mrf.mxu1  ;;  %8759 = vmatprep.subr.bf16.mxu0 %v9584_v62  ;;  %8788 = vmatpush3.bf16.msra.mxu1 %v9587_v9  ;;  %v9604_v20 = vld [vmem:[#allocation4 + $0x1068] sm:$0xff]   ;;  %v9618_v2 = vld [vmem:[#allocation4 + $0x1010] sm:$0xff]   ;;  %v9626_v16 = vld [vmem:[#allocation4 + $0x1000] sm:$0xff]  }
 0x286   : > { %v10332_v61 = vadd.f32 %v8462_v17, %v6256_v32  ;;  %v8438_v58 = vpop.f32.mrf.mxu0  ;;  %v493_v17 = vld [vmem:[%s9970_s27 + $0x660] sm:$0xff]  ;;  %v9605_v39 = vld [vmem:[#allocation4 + $0x10e8] sm:$0xff]  }
 0x287   : > { %v6261_v60 = vadd.f32 %v8437_v31, %v10308_v49  ;;  %v8464_v11 = vpop.f32.mrf.mxu1  ;;  %v9589_v49 = vld [vmem:[#allocation4 + $0xfc8] sm:$0xff]   ;;  %v709_v52 = vpack.c.bf16 %v565_v19, %v493_v17  ;;  %v568_v31 = vld [vmem:[%s9970_s27 + $0x8b8] sm:$0xff]  ;;  %v9627_v17 = vld [vmem:[#allocation4 + $0x1080] sm:$0xff]  }
 0x288   : > { %v8439_v35 = vpop.f32.mrf.mxu0  ;;  %v8465_v26 = vadd.f32 %v8464_v11, %v8463_v34  ;;  %8760 = vmatpush3.bf16.msra.mxu0 %v9586_v42  ;;  %8789 = vmatprep.subr.bf16.mxu1 %v9589_v49  ;;  %v712_v5 = vpack.c.bf16 %v568_v31, %v496_v30  ;;  %v495_v11 = vld [vmem:[%s9970_s27 + $0x670] sm:$0xff]  ;;  %v9609_v49 = vld [vmem:[#allocation4 + $0x10e0] sm:$0xff]   ;;  %v356_v19 = vld [vmem:[%s9970_s27 + $0x218] sm:$0xff] }
 0x289   : > { %v8440_v41 = vadd.f32 %v8439_v35, %v8438_v58  ;;  %v8466_v18 = vpop.f32.mrf.mxu1  ;;  %8761 = vmatprep.subr.bf16.mxu0 %v9588_v7  ;;  %8790 = vmatpush3.bf16.msra.mxu1 %v9591_v50  ;;  %v9607_v35 = vld [vmem:[#allocation4 + $0x10a8] sm:$0xff]   ;;  %v427_v31 = vld [vmem:[%s9970_s27 + $0x450] sm:$0xff] }
 0x28a   : > { %v10336_v13 = vadd.f32 %v8465_v26, %v6261_v60  ;;  %8791 = vmatprep.subr.bf16.mxu1 %v9593_v53  ;;  %v9606_v60 = vld [vmem:[#allocation4 + $0x1028] sm:$0xff]  }
 0x28b   : > { %v6264_v43 = vadd.f32 %v8440_v41, %v10310_v29  ;;  %v8467_v45 = vpop.f32.mrf.mxu1  ;;  %v9592_v29 = vld [vmem:[#allocation4 + $0xf40] sm:$0xff]   ;;  %v567_v41 = vld [vmem:[%s9970_s27 + $0x8b0] sm:$0xff] }
 0x28c   : > { %v8468_v47 = vadd.f32 %v8467_v45, %v8466_v18  ;;  %8762 = vmatpush3.bf16.msra.mxu0 %v9590_v46  ;;  %v9608_v18 = vld [vmem:[#allocation4 + $0x1060] sm:$0xff]  }
 0x28d   : > { %8763 = vmatprep.subr.bf16.mxu0 %v9592_v29  ;;  %8792 = vmatpush3.bf16.msra.mxu1 %v9595_v25  ;;  %v9612_v29 = vld [vmem:[#allocation4 + $0x1058] sm:$0xff]  }
 0x28e   : > { %v10338_v51 = vadd.f32 %v8468_v47, %v6264_v43  ;;  %8833 = vmatprep.subr.bf16.mxu1 %v9597_v40  ;;  %v711_v43 = vpack.c.bf16 %v567_v41, %v495_v11  ;;  %v9611_v47 = vld [vmem:[#allocation4 + $0x10a0] sm:$0xff]   ;;  %v9635_v41 = vld [vmem:[#allocation4 + $0x11b0] sm:$0xff]  }
 0x290   : > { %8764 = vmatpush3.bf16.msra.mxu0 %v9594_v54  ;;  %6888 = vmatmul.mubr.bf16.vlgmr.msra.gmra.mxu1 %v639_v22  ;;  %v9613_v54 = vld [vmem:[#allocation4 + $0x10d8] sm:$0xff]   ;;  %v9619_v22 = vld [vmem:[#allocation4 + $0x1090] sm:$0xff]  }
 0x291   : > { %8805 = vmatprep.subr.bf16.mxu0 %v9596_v4  ;;  %8834 = vmatpush3.bf16.msra.mxu1 %v9599_v44 }
 0x292   : > { %8835 = vmatprep.subr.bf16.mxu1 %v9601_v8  ;;  %6895 = vmatprep.mubr.bf16.mxu1 %v712_v5  ;;  %v9622_v8 = vld [vmem:[#allocation4 + $0x1008] sm:$0xff]   ;;  %v9629_v5 = vld [vmem:[#allocation4 + $0x11f8] sm:$0xff]  }
 0x293   : > { %6839 = vmatmul.mubr.bf16.vlgmr.msra.gmra.mxu0 %v637_v3 }
 0x294   : > { %8806 = vmatpush3.bf16.msra.mxu0 %v9598_v38  ;;  %6846 = vmatprep.mubr.bf16.mxu0 %v710_v56  ;;  %v9620_v38 = vld [vmem:[#allocation4 + $0x1048] sm:$0xff]  }
 0x295   : > { %8807 = vmatprep.subr.bf16.mxu0 %v9600_v6  ;;  %8836 = vmatpush3.bf16.msra.mxu1 %v9603_v24  ;;  %v9623_v24 = vld [vmem:[#allocation4 + $0x1088] sm:$0xff]  }
 0x296   : > { %8837 = vmatprep.subr.bf16.mxu1 %v9605_v39  ;;  %v426_v56 = vld [vmem:[%s9970_s27 + $0x448] sm:$0xff]  ;;  %v355_v39 = vld [vmem:[%s9970_s27 + $0x210] sm:$0xff] }
 0x298   : > { %8808 = vmatpush3.bf16.msra.mxu0 %v9602_v10  ;;  %6896 = vmatmul.mubr.bf16.gmra.mxu1 %v711_v43 }
 0x299   : > { %8809 = vmatprep.subr.bf16.mxu0 %v9604_v20  ;;  %8838 = vmatpush3.bf16.msra.mxu1 %v9607_v35  ;;  %v9633_v35 = vld [vmem:[#allocation4 + $0x11f0] sm:$0xff]  }
 0x29a   : > { %8839 = vmatprep.subr.bf16.mxu1 %v9609_v49  ;;  %v569_v49 = vld [vmem:[%s9970_s27 + $0x8c0] sm:$0xff] }
 0x29b   : > { %6847 = vmatmul.mubr.bf16.gmra.mxu0 %v709_v52 }
 0x29c   : > { %8810 = vmatpush3.bf16.msra.mxu0 %v9606_v60  ;;  %v9630_v60 = vld [vmem:[#allocation4 + $0x1138] sm:$0xff]  }
 0x29d   : > { %v8485_v12 = vpop.f32.mrf.mxu0  ;;  %v8513_v48 = vpop.f32.mrf.mxu1  ;;  %8811 = vmatprep.subr.bf16.mxu0 %v9608_v18  ;;  %8840 = vmatpush3.bf16.msra.mxu1 %v9611_v47 }
 0x29e   : > { %8841 = vmatprep.subr.bf16.mxu1 %v9613_v54  ;;  %v500_v54 = vld [vmem:[%s9970_s27 + $0x698] sm:$0xff] }
 0x29f   : > { %v8486_v32 = vpop.f32.mrf.mxu0  ;;  %v8514_v27 = vpop.f32.mrf.mxu1 }
 0x2a0   : > { %v8487_v21 = vadd.f32 %v8486_v32, %v8485_v12  ;;  %v8515_v63 = vadd.f32 %v8514_v27, %v8513_v48  ;;  %v9624_v12 = vld [vmem:[#allocation4 + $0x1040] sm:$0xff]   ;;  %v354_v48 = vld [vmem:[%s9970_s27 + $0x208] sm:$0xff]  ;;  %v428_v32 = vld [vmem:[%s9970_s27 + $0x458] sm:$0xff] }
 0x2a1   : > { %v8488_v58 = vpop.f32.mrf.mxu0  ;;  %v8516_v62 = vpop.f32.mrf.mxu1  ;;  %8842 = vmatpush3.bf16.msra.mxu1 %v9615_v33  ;;  %v642_v52 = vpack.c.bf16 %v426_v56, %v354_v48  ;;  %v644_v20 = vpack.c.bf16 %v428_v32, %v356_v19  ;;  %v425_v27 = vld [vmem:[%s9970_s27 + $0x440] sm:$0xff]  ;;  %v9647_v56 = vld [vmem:[#allocation4 + $0x1198] sm:$0xff]  }
 0x2a2   : > { %v6351_v34 = vadd.f32 %v8487_v21, %v10329_v15  ;;  %v9610_v15 = vld [vmem:[#allocation4 + $0x1020] sm:$0xff]   ;;  %8843 = vmatprep.subr.bf16.mxu1 %v9617_v37  ;;  %v9639_v37 = vld [vmem:[#allocation4 + $0x11a8] sm:$0xff]  }
 0x2a3   : > { %v8489_v36 = vpop.f32.mrf.mxu0  ;;  %v8517_v9 = vpop.f32.mrf.mxu1  ;;  %8812 = vmatpush3.bf16.msra.mxu0 %v9610_v15  ;;  %v353_v21 = vld [vmem:[%s9970_s27 + $0x200] sm:$0xff]  ;;  %6936 = vmatprep.mubr.bf16.mxu0 %v642_v52 }
 0x2a4   : > { %v10357_v42 = vadd.f32 %v8515_v63, %v6351_v34  ;;  %v8490_v26 = vadd.f32 %v8489_v36, %v8488_v58  ;;  %v8518_v7 = vadd.f32 %v8517_v9, %v8516_v62  ;;  %8813 = vmatprep.subr.bf16.mxu0 %v9612_v29  ;;  %v641_v30 = vpack.c.bf16 %v425_v27, %v353_v21  ;;  %v9628_v58 = vld [vmem:[#allocation4 + $0x1178] sm:$0xff]   ;;  %v9632_v62 = vld [vmem:[#allocation4 + $0x1170] sm:$0xff]   ;;  %v570_v9 = vld [vmem:[%s9970_s27 + $0x8c8] sm:$0xff] }
 0x2a5   : > { %v8491_v46 = vpop.f32.mrf.mxu0  ;;  %v8519_v28 = vpop.f32.mrf.mxu1  ;;  %8844 = vmatpush3.bf16.msra.mxu1 %v9619_v22  ;;  %6985 = vmatprep.mubr.bf16.mxu1 %v644_v20  ;;  %v643_v63 = vpack.c.bf16 %v427_v31, %v355_v39  ;;  %v9631_v34 = vld [vmem:[#allocation4 + $0x11b8] sm:$0xff]   ;;  %v9634_v36 = vld [vmem:[#allocation4 + $0x1130] sm:$0xff]  }
 0x2a6   : > { %v6354_v45 = vadd.f32 %v8490_v26, %v10332_v61  ;;  %v498_v26 = vld [vmem:[%s9970_s27 + $0x688] sm:$0xff]  ;;  %v9649_v20 = vld [vmem:[#allocation4 + $0x11d0] sm:$0xff]  }
 0x2a7   : > { %v8492_v53 = vpop.f32.mrf.mxu0  ;;  %8814 = vmatpush3.bf16.msra.mxu0 %v9614_v55  ;;  %v8520_v0 = vpop.f32.mrf.mxu1  ;;  %v714_v18 = vpack.c.bf16 %v570_v9, %v498_v26  ;;  %v9650_v27 = vld [vmem:[#allocation4 + $0x1110] sm:$0xff]   ;;  %v9658_v9 = vld [vmem:[#allocation4 + $0x1100] sm:$0xff]  }
 0x2a8   : > { %v10360_v50 = vadd.f32 %v8518_v7, %v6354_v45  ;;  %v8493_v25 = vadd.f32 %v8492_v53, %v8491_v46  ;;  %8815 = vmatprep.subr.bf16.mxu0 %v9616_v57  ;;  %v8521_v3 = vadd.f32 %v8520_v0, %v8519_v28  ;;  %v497_v7 = vld [vmem:[%s9970_s27 + $0x680] sm:$0xff]  ;;  %v9636_v46 = vld [vmem:[#allocation4 + $0x1168] sm:$0xff]   ;;  %v499_v0 = vld [vmem:[%s9970_s27 + $0x690] sm:$0xff] }
 0x2a9   : > { %v8494_v23 = vpop.f32.mrf.mxu0  ;;  %v8522_v40 = vpop.f32.mrf.mxu1  ;;  %v713_v15 = vpack.c.bf16 %v569_v49, %v497_v7  ;;  %v9637_v53 = vld [vmem:[#allocation4 + $0x11e8] sm:$0xff]   ;;  %v9651_v31 = vld [vmem:[#allocation4 + $0x1190] sm:$0xff]   ;;  %v360_v49 = vld [vmem:[%s9970_s27 + $0x238] sm:$0xff] }
 0x2aa   : > { %v6359_v61 = vadd.f32 %v8493_v25, %v10336_v13  ;;  %v9621_v13 = vld [vmem:[#allocation4 + $0x10c8] sm:$0xff]  }
 0x2ab   : > { %v8495_v59 = vpop.f32.mrf.mxu0  ;;  %8816 = vmatpush3.bf16.msra.mxu0 %v9618_v2  ;;  %v8523_v6 = vpop.f32.mrf.mxu1  ;;  %8845 = vmatprep.subr.bf16.mxu1 %v9621_v13  ;;  %v9638_v57 = vld [vmem:[#allocation4 + $0x1128] sm:$0xff]   ;;  %v9641_v13 = vld [vmem:[#allocation4 + $0x11e0] sm:$0xff]  }
 0x2ac   : > { %v8496_v1 = vadd.f32 %v8495_v59, %v8494_v23  ;;  %v10364_v44 = vadd.f32 %v8521_v3, %v6359_v61  ;;  %8817 = vmatprep.subr.bf16.mxu0 %v9620_v38  ;;  %v8524_v10 = vadd.f32 %v8523_v6, %v8522_v40  ;;  %8846 = vmatpush3.bf16.msra.mxu1 %v9623_v24  ;;  %v572_v23 = vld [vmem:[%s9970_s27 + $0x8d8] sm:$0xff]  ;;  %v9640_v40 = vld [vmem:[#allocation4 + $0x1160] sm:$0xff]   ;;  %v430_v7 = vld [vmem:[%s9970_s27 + $0x468] sm:$0xff] }
 0x2ad   : > { %8847 = vmatprep.subr.bf16.mxu1 %v9625_v14  ;;  %v716_v28 = vpack.c.bf16 %v572_v23, %v500_v54  ;;  %v9642_v6 = vld [vmem:[#allocation4 + $0x1120] sm:$0xff]   ;;  %v9645_v14 = vld [vmem:[#allocation4 + $0x11d8] sm:$0xff]   ;;  %v359_v54 = vld [vmem:[%s9970_s27 + $0x230] sm:$0xff] }
 0x2ae   : > { %v6362_v4 = vadd.f32 %v8496_v1, %v10338_v51  ;;  %v571_v1 = vld [vmem:[%s9970_s27 + $0x8d0] sm:$0xff] }
 0x2af   : > { %8818 = vmatpush3.bf16.msra.mxu0 %v9622_v8  ;;  %v9643_v8 = vld [vmem:[#allocation4 + $0x11a0] sm:$0xff]  }
 0x2b0   : > { %v10366_v51 = vadd.f32 %v8524_v10, %v6362_v4  ;;  %8819 = vmatprep.subr.bf16.mxu0 %v9624_v12  ;;  %8848 = vmatpush3.bf16.msra.mxu1 %v9627_v17  ;;  %v715_v4 = vpack.c.bf16 %v571_v1, %v499_v0  ;;  %v9644_v12 = vld [vmem:[#allocation4 + $0x1158] sm:$0xff]   ;;  %v573_v0 = vld [vmem:[%s9970_s27 + $0x8e0] sm:$0xff]  ;;  %v503_v1 = vld [vmem:[%s9970_s27 + $0x6b0] sm:$0xff] }
 0x2b1   : > { %8889 = vmatprep.subr.bf16.mxu1 %v9629_v5  ;;  %v9646_v17 = vld [vmem:[#allocation4 + $0x1118] sm:$0xff]  }
 0x2b3   : > { %8820 = vmatpush3.bf16.msra.mxu0 %v9626_v16  ;;  %6986 = vmatmul.mubr.bf16.vlgmr.msra.gmra.mxu1 %v643_v63 }
 0x2b4   : > { %8861 = vmatprep.subr.bf16.mxu0 %v9628_v58  ;;  %8890 = vmatpush3.bf16.msra.mxu1 %v9631_v34  ;;  %v9652_v58 = vld [vmem:[#allocation4 + $0x1148] sm:$0xff]  }
 0x2b5   : > { %8891 = vmatprep.subr.bf16.mxu1 %v9633_v35  ;;  %6993 = vmatprep.mubr.bf16.mxu1 %v716_v28  ;;  %v9653_v34 = vld [vmem:[#allocation4 + $0x11c8] sm:$0xff]   ;;  %v576_v28 = vld [vmem:[%s9970_s27 + $0x8f8] sm:$0xff] }
 0x2b6   : > { %6937 = vmatmul.mubr.bf16.vlgmr.msra.gmra.mxu0 %v641_v30 }
 0x2b7   : > { %8862 = vmatpush3.bf16.msra.mxu0 %v9630_v60  ;;  %6944 = vmatprep.mubr.bf16.mxu0 %v714_v18  ;;  %v358_v18 = vld [vmem:[%s9970_s27 + $0x228] sm:$0xff] }
 0x2b8   : > { %8863 = vmatprep.subr.bf16.mxu0 %v9632_v62  ;;  %8892 = vmatpush3.bf16.msra.mxu1 %v9635_v41  ;;  %v9656_v41 = vld [vmem:[#allocation4 + $0x1140] sm:$0xff]  }
 0x2b9   : > { %8893 = vmatprep.subr.bf16.mxu1 %v9637_v53 }
 0x2bb   : > { %8864 = vmatpush3.bf16.msra.mxu0 %v9634_v36  ;;  %6994 = vmatmul.mubr.bf16.gmra.mxu1 %v715_v4  ;;  %v9655_v36 = vld [vmem:[#allocation4 + $0x1188] sm:$0xff]  }
 0x2bc   : > { %8865 = vmatprep.subr.bf16.mxu0 %v9636_v46  ;;  %8894 = vmatpush3.bf16.msra.mxu1 %v9639_v37  ;;  %v357_v46 = vld [vmem:[%s9970_s27 + $0x220] sm:$0xff] }
 0x2bd   : > { %v8541_v11 = vpop.f32.mrf.mxu0  ;;  %v8569_v43 = vpop.f32.mrf.mxu1  ;;  %8895 = vmatprep.subr.bf16.mxu1 %v9641_v13  ;;  %v501_v37 = vld [vmem:[%s9970_s27 + $0x6a0] sm:$0xff]  ;;  %v7119_v13 = vld [vmem:[%s10659_s3 + $0x78] sm:$0xff] }
 0x2be   : > { %6945 = vmatmul.mubr.bf16.gmra.mxu0 %v713_v15  ;;  %v432_v15 = vld [vmem:[%s9970_s27 + $0x478] sm:$0xff] }
 0x2bf   : > { %v8542_v45 = vpop.f32.mrf.mxu0  ;;  %v8570_v29 = vpop.f32.mrf.mxu1  ;;  %8866 = vmatpush3.bf16.msra.mxu0 %v9638_v57 }
 0x2c0   : > { %v8543_v47 = vadd.f32 %v8542_v45, %v8541_v11  ;;  %v8571_v25 = vadd.f32 %v8570_v29, %v8569_v43  ;;  %8867 = vmatprep.subr.bf16.mxu0 %v9640_v40  ;;  %8896 = vmatpush3.bf16.msra.mxu1 %v9643_v8  ;;  %v9659_v43 = vld [vmem:[#allocation4 + $0x1180] sm:$0xff]   ;;  %v646_v45 = vpack.c.bf16 %v430_v7, %v358_v18  ;;  %v7117_v8 = vld [vmem:[%s10659_s3 + $0x68] sm:$0xff] }
 0x2c1   : > { %v8544_v55 = vpop.f32.mrf.mxu0  ;;  %v8572_v61 = vpop.f32.mrf.mxu1  ;;  %8897 = vmatprep.subr.bf16.mxu1 %v9645_v14  ;;  %v648_v29 = vpack.c.bf16 %v432_v15, %v360_v49  ;;  %v7115_v14 = vld [vmem:[%s10659_s3 + $0x58] sm:$0xff] }
 0x2c2   : > { %v6449_v33 = vadd.f32 %v8543_v47, %v10357_v42  ;;  %v429_v47 = vld [vmem:[%s9970_s27 + $0x460] sm:$0xff]  ;;  %7034 = vmatprep.mubr.bf16.mxu0 %v646_v45 }
 0x2c3   : > { %v8545_v59 = vpop.f32.mrf.mxu0  ;;  %v8573_v22 = vpop.f32.mrf.mxu1  ;;  %8868 = vmatpush3.bf16.msra.mxu0 %v9642_v6  ;;  %v645_v53 = vpack.c.bf16 %v429_v47, %v357_v46  ;;  %7083 = vmatprep.mubr.bf16.mxu1 %v648_v29 }
 0x2c4   : > { %v10385_v2 = vadd.f32 %v8571_v25, %v6449_v33  ;;  %v8546_v3 = vadd.f32 %v8545_v59, %v8544_v55  ;;  %v8574_v38 = vadd.f32 %v8573_v22, %v8572_v61  ;;  %8869 = vmatprep.subr.bf16.mxu0 %v9644_v12  ;;  %8898 = vmatpush3.bf16.msra.mxu1 %v9647_v56  ;;  %v431_v25 = vld [vmem:[%s9970_s27 + $0x470] sm:$0xff]  ;;  %v502_v55 = vld [vmem:[%s9970_s27 + $0x6a8] sm:$0xff]  ;;  %v504_v61 = vld [vmem:[%s9970_s27 + $0x6b8] sm:$0xff] }
 0x2c5   : > { %v8547_v24 = vpop.f32.mrf.mxu0  ;;  %v8575_v52 = vpop.f32.mrf.mxu1  ;;  %8899 = vmatprep.subr.bf16.mxu1 %v9649_v20  ;;  %v647_v23 = vpack.c.bf16 %v431_v25, %v359_v54  ;;  %v574_v33 = vld [vmem:[%s9970_s27 + $0x8e8] sm:$0xff]  ;;  %v720_v59 = vpack.c.bf16 %v576_v28, %v504_v61  ;;  %v717_v22 = vpack.c.bf16 %v573_v0, %v501_v37 }
 0x2c6   : > { %v6452_v42 = vadd.f32 %v8546_v3, %v10360_v50  ;;  %v9648_v50 = vld [vmem:[#allocation4 + $0x1150] sm:$0xff]   ;;  %v718_v57 = vpack.c.bf16 %v574_v33, %v502_v55  ;;  %v7113_v56 = vld [vmem:[%s10659_s3 + $0x48] sm:$0xff] }
 0x2c7   : > { %v8548_v16 = vpop.f32.mrf.mxu0  ;;  %8870 = vmatpush3.bf16.msra.mxu0 %v9646_v17  ;;  %v8576_v39 = vpop.f32.mrf.mxu1  ;;  %v575_v3 = vld [vmem:[%s9970_s27 + $0x8f0] sm:$0xff] }
 0x2c8   : > { %v10388_v10 = vadd.f32 %v8574_v38, %v6452_v42  ;;  %v8549_v48 = vadd.f32 %v8548_v16, %v8547_v24  ;;  %8871 = vmatprep.subr.bf16.mxu0 %v9648_v50  ;;  %v8577_v63 = vadd.f32 %v8576_v39, %v8575_v52  ;;  %8900 = vmatpush3.bf16.msra.mxu1 %v9651_v31  ;;  %v7118_v42 = vld [vmem:[%s10659_s3 + $0x70] sm:$0xff]  ;;  %v7116_v24 = vld [vmem:[%s10659_s3 + $0x60] sm:$0xff]  ;;  %v7111_v52 = vld [vmem:[%s10659_s3 + $0x38] sm:$0xff] }
 0x2c9   : > { %v8550_v19 = vpop.f32.mrf.mxu0  ;;  %v8578_v60 = vpop.f32.mrf.mxu1  ;;  %8901 = vmatprep.subr.bf16.mxu1 %v9653_v34  ;;  %v719_v4 = vpack.c.bf16 %v575_v3, %v503_v1  ;;  %v7114_v17 = vld [vmem:[%s10659_s3 + $0x50] sm:$0xff]  ;;  %v7112_v50 = vld [vmem:[%s10659_s3 + $0x40] sm:$0xff]  ;;  %v7109_v31 = vld [vmem:[%s10659_s3 + $0x28] sm:$0xff] }
 0x2ca   : > { %v6457_v32 = vadd.f32 %v8549_v48, %v10364_v44  ;;  %v9654_v44 = vld [vmem:[#allocation4 + $0x1108] sm:$0xff]  }
 0x2cb   : > { %v8551_v21 = vpop.f32.mrf.mxu0  ;;  %8872 = vmatpush3.bf16.msra.mxu0 %v9650_v27  ;;  %v8579_v35 = vpop.f32.mrf.mxu1  ;;  %v7110_v27 = vld [vmem:[%s10659_s3 + $0x30] sm:$0xff] }
 0x2cc   : > { %v8552_v30 = vadd.f32 %v8551_v21, %v8550_v19  ;;  %v10392_v62 = vadd.f32 %v8577_v63, %v6457_v32  ;;  %8873 = vmatprep.subr.bf16.mxu0 %v9652_v58  ;;  %v8580_v11 = vadd.f32 %v8579_v35, %v8578_v60  ;;  %8902 = vmatpush3.bf16.msra.mxu1 %v9655_v36  ;;  %v7108_v63 = vld [vmem:[%s10659_s3 + $0x20] sm:$0xff]  ;;  %v7107_v60 = vld [vmem:[%s10659_s3 + $0x18] sm:$0xff]  ;;  %v7105_v36 = vld [vmem:[%s10659_s3 + $0x8] sm:$0xff] }
 0x2ce   : > { %v6460_v5 = vadd.f32 %v8552_v30, %v10366_v51  ;;  %v9657_v51 = vld [vmem:[#allocation4 + $0x11c0] sm:$0xff]  }
 0x2cf   : > { %8874 = vmatpush3.bf16.msra.mxu0 %v9654_v44  ;;  %8903 = vmatprep.subr.bf16.mxu1 %v9657_v51  ;;  %v7106_v44 = vld [vmem:[%s10659_s3 + $0x10] sm:$0xff] }
 0x2d0   : > { %v10394_v26 = vadd.f32 %v8580_v11, %v6460_v5  ;;  %8875 = vmatprep.subr.bf16.mxu0 %v9656_v41  ;;  %8904 = vmatpush3.bf16.msra.mxu1 %v9659_v43  ;;  %v7104_v41 = vld [vmem:[%s10659_s3] sm:$0xff] }
 0x2d1   : > { %8975 = vmatprep.subr.mxu1 %v7119_v13 }
 0x2d3   : > { %8876 = vmatpush3.bf16.msra.mxu0 %v9658_v9  ;;  %7084 = vmatmul.mubr.bf16.vlgmr.msra.gmra.mxu1 %v647_v23 }
 0x2d4   : > { %7091 = vmatprep.mubr.bf16.mxu1 %v720_v59  ;;  %8937 = vmatprep.subr.mxu0 %v7119_v13 }
 0x2d5   : > { %8991 = vmatpush3.msra.mxu1 %v7119_v13 }
 0x2d6   : > { %7035 = vmatmul.mubr.bf16.vlgmr.msra.gmra.mxu0 %v645_v53  ;;  %8976 = vmatprep.subr.mxu1 %v7118_v42 }
 0x2d7   : > { %7042 = vmatprep.mubr.bf16.mxu0 %v718_v57  ;;  %8938 = vmatpush3.msra.mxu0 %v7119_v13 }
 0x2d8   : > { %8939 = vmatprep.subr.mxu0 %v7118_v42  ;;  %8992 = vmatpush3.msra.mxu1 %v7118_v42 }
 0x2d9   : > { %8940 = vmatpush3.msra.mxu0 %v7118_v42  ;;  %8977 = vmatprep.subr.mxu1 %v7117_v8 }
 0x2da   : > { %8941 = vmatprep.subr.mxu0 %v7117_v8  ;;  %8993 = vmatpush3.msra.mxu1 %v7117_v8 }
 0x2db   : > { %7092 = vmatmul.mubr.bf16.gmra.mxu1 %v719_v4  ;;  %8942 = vmatpush3.msra.mxu0 %v7117_v8 }
 0x2dc   : > { %8943 = vmatprep.subr.mxu0 %v7116_v24  ;;  %8978 = vmatprep.subr.mxu1 %v7116_v24 }
 0x2dd   : > { %v10412_v40 = vpop.f32.mrf.mxu0  ;;  %v10430_v12 = vpop.f32.mrf.mxu1  ;;  %8944 = vmatpush3.msra.mxu0 %v7116_v24  ;;  %8994 = vmatpush3.msra.mxu1 %v7116_v24 }
 0x2de   : > { %7043 = vmatmul.mubr.bf16.gmra.mxu0 %v717_v22  ;;  %8945 = vmatprep.subr.mxu0 %v7115_v14 }
 0x2df   : > { %v10414_v38 = vpop.f32.mrf.mxu0  ;;  %8979 = vmatprep.subr.mxu1 %v7115_v14  ;;  %v10440_v48 = vpop.f32.mrf.mxu1  ;;  %8946 = vmatpush3.msra.mxu0 %v7115_v14 }
 0x2e0   : > { %8995 = vmatpush3.msra.mxu1 %v7115_v14  ;;  %8947 = vmatprep.subr.mxu0 %v7114_v17 }
 0x2e1   : > { %v10422_v6 = vpop.f32.mrf.mxu0  ;;  %8980 = vmatprep.subr.mxu1 %v7114_v17  ;;  %8948 = vmatpush3.msra.mxu0 %v7114_v17  ;;  %v10450_v32 = vpop.f32.mrf.mxu1 }
 0x2e2   : > { %8996 = vmatpush3.msra.mxu1 %v7114_v17  ;;  %8949 = vmatprep.subr.mxu0 %v7113_v56 }
 0x2e3   : > { %v10435_v16 = vpop.f32.mrf.mxu0  ;;  %8981 = vmatprep.subr.mxu1 %v7113_v56  ;;  %8950 = vmatpush3.msra.mxu0 %v7113_v56  ;;  %v10457_v21 = vpop.f32.mrf.mxu1 }
 0x2e4   : > { %8997 = vmatpush3.msra.mxu1 %v7113_v56  ;;  %8951 = vmatprep.subr.mxu0 %v7112_v50 }
 0x2e5   : > { %v10445_v19 = vpop.f32.mrf.mxu0  ;;  %8982 = vmatprep.subr.mxu1 %v7112_v50  ;;  %8952 = vmatpush3.msra.mxu0 %v7112_v50  ;;  %v10464_v30 = vpop.f32.mrf.mxu1 }
 0x2e6   : > { %8998 = vmatpush3.msra.mxu1 %v7112_v50  ;;  %8953 = vmatprep.subr.mxu0 %v7111_v52 }
 0x2e7   : > { %v10455_v20 = vpop.f32.mrf.mxu0  ;;  %8983 = vmatprep.subr.mxu1 %v7111_v52  ;;  %8954 = vmatpush3.msra.mxu0 %v7111_v52  ;;  %v10474_v5 = vpop.f32.mrf.mxu1 }
 0x2e8   : > { %8999 = vmatpush3.msra.mxu1 %v7111_v52  ;;  %8955 = vmatprep.subr.mxu0 %v7110_v27 }
 0x2e9   : > { %v10462_v39 = vpop.f32.mrf.mxu0  ;;  %8984 = vmatprep.subr.mxu1 %v7110_v27  ;;  %8956 = vmatpush3.msra.mxu0 %v7110_v27  ;;  %v10484_v35 = vpop.f32.mrf.mxu1 }
 0x2ea   : > { %9000 = vmatpush3.msra.mxu1 %v7110_v27  ;;  %8957 = vmatprep.subr.mxu0 %v7109_v31 }
 0x2eb   : > { %8985 = vmatprep.subr.mxu1 %v7109_v31  ;;  %8958 = vmatpush3.msra.mxu0 %v7109_v31  ;;  %v10472_v58 = vpop.f32.mrf.mxu0  ;;  %v10494_v51 = vpop.f32.mrf.mxu1 }
 0x2ec   : > { %9001 = vmatpush3.msra.mxu1 %v7109_v31  ;;  %8959 = vmatprep.subr.mxu0 %v7108_v63 }
 0x2ed   : > { %8986 = vmatprep.subr.mxu1 %v7108_v63  ;;  %8960 = vmatpush3.msra.mxu0 %v7108_v63 }
 0x2ee   : > { %9002 = vmatpush3.msra.mxu1 %v7108_v63  ;;  %8961 = vmatprep.subr.mxu0 %v7107_v60 }
 0x2ef   : > { %8987 = vmatprep.subr.mxu1 %v7107_v60  ;;  %8962 = vmatpush3.msra.mxu0 %v7107_v60 }
 0x2f0   : > { %9003 = vmatpush3.msra.mxu1 %v7107_v60  ;;  %8963 = vmatprep.subr.mxu0 %v7106_v44 }
 0x2f1   : > { %8988 = vmatprep.subr.mxu1 %v7106_v44  ;;  %8964 = vmatpush3.msra.mxu0 %v7106_v44 }
 0x2f2   : > { %9004 = vmatpush3.msra.mxu1 %v7106_v44  ;;  %8965 = vmatprep.subr.mxu0 %v7105_v36 }
 0x2f3   : > { %8989 = vmatprep.subr.mxu1 %v7105_v36  ;;  %8966 = vmatpush3.msra.mxu0 %v7105_v36 }
 0x2f4   : > { %9005 = vmatpush3.msra.mxu1 %v7105_v36  ;;  %8967 = vmatprep.subr.mxu0 %v7104_v41 }
 0x2f5   : > { %8990 = vmatprep.subr.mxu1 %v7104_v41  ;;  %8968 = vmatpush3.msra.mxu0 %v7104_v41 }
 0x2f6   : > { %9006 = vmatpush3.msra.mxu1 %v7104_v41 }
 0x30b   : > { %v8681_v43 = vpop.f32.mrf.mxu1 }
 0x30d   : > { %v8682_v7 = vpop.f32.mrf.mxu1 }
 0x30e   : > { %v10479_v34 = vpop.f32.mrf.mxu0 }
 0x30f   : > { %v10498_v45 = vpop.f32.mrf.mxu1 }
 0x310   : > { %v10489_v11 = vpop.f32.mrf.mxu0 }
 0x311   : > { %v10502_v46 = vpop.f32.mrf.mxu1 }
 0x312   : > { %v8656_v9 = vpop.f32.mrf.mxu0 }
 0x313   : > { %v10504_v47 = vpop.f32.mrf.mxu1 }
 0x314   : > { %v8657_v18 = vpop.f32.mrf.mxu0 }
 0x315   : > { %v10508_v53 = vpop.f32.mrf.mxu1 }
 0x316   : > { %v10496_v49 = vpop.f32.mrf.mxu0 }
 0x317   : > { %v10512_v55 = vpop.f32.mrf.mxu1 }
 0x318   : > { %v10500_v15 = vpop.f32.mrf.mxu0 }
 0x319   : > { %v10514_v33 = vpop.f32.mrf.mxu1 }
 0x31a   : > { %v10506_v29 = vpop.f32.mrf.mxu0 }
 0x31c   : > { %v10510_v54 = vpop.f32.mrf.mxu0 }
 0x330   : > { %v8709_v25 = vpop.f32.mrf.mxu0  ;;  %v10516_v61 = vpop.f32.mrf.mxu1 }
 0x332   : > { %v8710_v23 = vpop.f32.mrf.mxu0  ;;  %v10518_v57 = vpop.f32.mrf.mxu1 }
 0x334   : > { %v8712_v28 = vpop.f32.mrf.mxu0  ;;  %v10520_v37 = vpop.f32.mrf.mxu1 }
 0x336   : > { %v8713_v59 = vpop.f32.mrf.mxu0  ;;  %v10524_v1 = vpop.f32.mrf.mxu1 }
 0x338   : > { %v10522_v0 = vpop.f32.mrf.mxu0  ;;  %v10528_v22 = vpop.f32.mrf.mxu1 }
 0x339   : > { %10674 = vst [vmem:[#allocation12_spill] sm:$0xff] %v10528_v22 }
 0x33a   : > { %v10526_v3 = vpop.f32.mrf.mxu0  ;;  %v10532_v13 = vpop.f32.mrf.mxu1 }
 0x33b   : > { %10675 = vst [vmem:[#allocation13_spill] sm:$0xff] %v10532_v13 }
 0x33c   : > { %v10530_v4 = vpop.f32.mrf.mxu0  ;;  %v10536_v8 = vpop.f32.mrf.mxu1 }
 0x33d   : > { %10677 = vst [vmem:[#allocation15_spill] sm:$0xff] %v10536_v8 }
 0x33e   : > { %v10534_v42 = vpop.f32.mrf.mxu0  ;;  %v10538_v14 = vpop.f32.mrf.mxu1 }
 0x33f   : > { %10676 = vst [vmem:[#allocation14_spill] sm:$0xff] %v10534_v42  ;;  %10678 = vst [vmem:[#allocation16_spill] sm:$0xff] %v10538_v14 }
 0x350   : > { %v10540_v56 = vpop.f32.mrf.mxu1 }
 0x352   : > { %v10544_v52 = vpop.f32.mrf.mxu1 }
 0x353   : > { %v8765_v24 = vpop.f32.mrf.mxu0 }
 0x354   : > { %v10546_v31 = vpop.f32.mrf.mxu1 }
 0x355   : > { %v8766_v17 = vpop.f32.mrf.mxu0  ;;  %10679 = vst [vmem:[#allocation17_spill] sm:$0xff] %v10546_v31  ;;  %v8599_v31 = vadd.f32 %v10414_v38, %v10412_v40 }
 0x356   : > { %v10550_v60 = vpop.f32.mrf.mxu1 }
 0x357   : > { %v10542_v50 = vpop.f32.mrf.mxu0  ;;  %10681 = vst [vmem:[#allocation19_spill] sm:$0xff] %v10550_v60 }
 0x358   : > { %v10552_v44 = vpop.f32.mrf.mxu1 }
 0x359   : > { %v8769_v27 = vpop.f32.mrf.mxu0  ;;  %10682 = vst [vmem:[#allocation20_spill] sm:$0xff] %v10552_v44  ;;  %v8602_v44 = vadd.f32 %v10435_v16, %v10422_v6  ;;  %v8630_v6 = vadd.f32 %v10457_v21, %v10450_v32  ;;  %v8658_v16 = vadd.f32 %v8657_v18, %v8656_v9  ;;  %v8661_v32 = vadd.f32 %v10500_v15, %v10496_v49 }
 0x35a   : > { %v10556_v41 = vpop.f32.mrf.mxu1  ;;  %v8664_v15 = vadd.f32 %v10510_v54, %v10506_v29  ;;  %v8742_v29 = vadd.f32 %v10524_v1, %v10520_v37  ;;  %v8770_v54 = vadd.f32 %v8769_v27, %v10542_v50 }
 0x35b   : > { %v10548_v63 = vpop.f32.mrf.mxu0  ;;  %10684 = vst [vmem:[#allocation22_spill] sm:$0xff] %v10556_v41  ;;  %v6547_v41 = vadd.f32 %v8599_v31, %v10385_v2  ;;  %v6550_v40 = vadd.f32 %v8602_v44, %v10388_v10  ;;  %v8683_v31 = vadd.f32 %v8682_v7, %v8681_v43  ;;  %v8636_v43 = vadd.f32 %v10494_v51, %v10484_v35  ;;  %v10692_v44 = vld [vmem:[#allocation13_spill] sm:$0xff] }
 0x35c   : > { %10680 = vst [vmem:[#allocation18_spill] sm:$0xff] %v10548_v63  ;;  %v10560_v8 = vpop.f32.mrf.mxu1  ;;  %v8689_v35 = vadd.f32 %v10508_v53, %v10504_v47  ;;  %v8767_v51 = vadd.f32 %v8766_v17, %v8765_v24  ;;  %v8795_v53 = vadd.f32 %v10544_v52, %v10540_v56  ;;  %v10690_v24 = vld [vmem:[#allocation14_spill] sm:$0xff]  ;;  %v10696_v56 = vld [vmem:[#allocation16_spill] sm:$0xff] }
 0x35d   : > { %v10554_v36 = vpop.f32.mrf.mxu0  ;;  %10686 = vst [vmem:[#allocation24_spill] sm:$0xff] %v10560_v8  ;;  %v8655_v8 = vadd.f32 %v10489_v11, %v10479_v34  ;;  %v8633_v11 = vadd.f32 %v10474_v5, %v10464_v30  ;;  %v8739_v5 = vadd.f32 %v10518_v57, %v10516_v61  ;;  %v8692_v57 = vadd.f32 %v10514_v33, %v10512_v55 }
 0x35e   : > { %10683 = vst [vmem:[#allocation21_spill] sm:$0xff] %v10554_v36  ;;  %v10566_v42 = vpop.f32.mrf.mxu1  ;;  %v8720_v17 = vadd.f32 %v10690_v24, %v10530_v4 }
 0x35f   : > { %v10558_v14 = vpop.f32.mrf.mxu0  ;;  %10688 = vst [vmem:[#allocation26_spill] sm:$0xff] %v10566_v42 }
 0x360   : > { %10685 = vst [vmem:[#allocation23_spill] sm:$0xff] %v10558_v14  ;;  %v8627_v14 = vadd.f32 %v10440_v48, %v10430_v12  ;;  %v6599_v12 = vadd.f32 %v8630_v6, %v6550_v40  ;;  %v8608_v48 = vadd.f32 %v10472_v58, %v10462_v39  ;;  %v8686_v39 = vadd.f32 %v10502_v46, %v10498_v45 }
 0x361   : > { %v10562_v13 = vpop.f32.mrf.mxu0 }
 0x362   : > { %10687 = vst [vmem:[#allocation25_spill] sm:$0xff] %v10562_v13  ;;  %v6596_v42 = vadd.f32 %v8627_v14, %v6547_v41  ;;  %v8711_v14 = vadd.f32 %v8710_v23, %v8709_v25  ;;  %v6558_v9 = vadd.f32 %v8608_v48, %v10394_v26 }
 0x363   : > { %v10693_v50 = vld [vmem:[#allocation18_spill] sm:$0xff] }
 0x364   : > { %v6645_v2 = vadd.f32 %v8655_v8, %v6596_v42  ;;  %v6607_v25 = vadd.f32 %v8636_v43, %v6558_v9 }
 0x365   : > { %v10694_v27 = vld [vmem:[#allocation21_spill] sm:$0xff] }
 0x366   : > { %v6656_v61 = vadd.f32 %v8664_v15, %v6607_v25  ;;  %v8773_v6 = vadd.f32 %v10694_v27, %v10693_v50 }
 0x368   : > { %v6705_v40 = vadd.f32 %v8692_v57, %v6656_v61 }
 0x369   : > { %v10701_v9 = vld [vmem:[#allocation25_spill] sm:$0xff] }
 0x373   : > { %v10568_v63 = vpop.f32.mrf.mxu1 }
 0x374   : > { %10689 = vst [vmem:[#allocation27_spill] sm:$0xff] %v10568_v63  ;;  %v8605_v63 = vadd.f32 %v10455_v20, %v10445_v19  ;;  %v6648_v19 = vadd.f32 %v8658_v16, %v6599_v12  ;;  %v6694_v20 = vadd.f32 %v8683_v31, %v6645_v2  ;;  %v6754_v16 = vadd.f32 %v8720_v17, %v6705_v40  ;;  %v10695_v2 = vld [vmem:[#allocation15_spill] sm:$0xff]  ;;  %v10697_v31 = vld [vmem:[#allocation17_spill] sm:$0xff] }
 0x375   : > { %v10577_v13 = vpop.f32.mrf.mxu1  ;;  %v8748_v52 = vadd.f32 %v10696_v56, %v10695_v2  ;;  %v10698_v12 = vld [vmem:[#allocation19_spill] sm:$0xff] }
 0x376   : > { %v8821_v22 = vpop.f32.mrf.mxu0  ;;  %v6555_v10 = vadd.f32 %v8605_v63, %v10392_v62  ;;  %v8714_v62 = vadd.f32 %v8713_v59, %v8712_v28  ;;  %v6743_v30 = vadd.f32 %v8711_v14, %v6694_v20  ;;  %v6697_v49 = vadd.f32 %v8686_v39, %v6648_v19  ;;  %v10691_v63 = vld [vmem:[#allocation12_spill] sm:$0xff] }
 0x377   : > { %v10584_v36 = vpop.f32.mrf.mxu1  ;;  %v8717_v28 = vadd.f32 %v10526_v3, %v10522_v0  ;;  %v8745_v41 = vadd.f32 %v10692_v44, %v10691_v63  ;;  %v8798_v4 = vadd.f32 %v10698_v12, %v10697_v31  ;;  %v6803_v15 = vadd.f32 %v8748_v52, %v6754_v16 }
 0x378   : > { %v8822_v60 = vpop.f32.mrf.mxu0  ;;  %v6604_v18 = vadd.f32 %v8633_v11, %v6555_v10  ;;  %v6746_v45 = vadd.f32 %v8714_v62, %v6697_v49  ;;  %v6792_v23 = vadd.f32 %v8739_v5, %v6743_v30  ;;  %v10703_v30 = vld [vmem:[#allocation22_spill] sm:$0xff] }
 0x379   : > { %v10593_v21 = vpop.f32.mrf.mxu1  ;;  %v8823_v55 = vadd.f32 %v8822_v60, %v8821_v22 }
 0x37a   : > { %v8824_v38 = vpop.f32.mrf.mxu0  ;;  %v6653_v26 = vadd.f32 %v8661_v32, %v6604_v18  ;;  %v6841_v47 = vadd.f32 %v8767_v51, %v6792_v23  ;;  %v6795_v8 = vadd.f32 %v8742_v29, %v6746_v45  ;;  %v10700_v32 = vld [vmem:[#allocation23_spill] sm:$0xff]  ;;  %v10702_v18 = vld [vmem:[#allocation20_spill] sm:$0xff]  ;;  %v10705_v23 = vld [vmem:[#allocation26_spill] sm:$0xff]  ;;  %v8854_v61 = vadd.f32 %v10593_v21, %v10584_v36 }
 0x37b   : > { %v10602_v7 = vpop.f32.mrf.mxu1  ;;  %v10699_v19 = vld [vmem:[#allocation27_spill] sm:$0xff]  ;;  %v8776_v43 = vadd.f32 %v10701_v9, %v10700_v32  ;;  %v8801_v5 = vadd.f32 %v10703_v30, %v10702_v18 }
 0x37c   : > { %v8825_v34 = vpop.f32.mrf.mxu0  ;;  %v6702_v42 = vadd.f32 %v8689_v35, %v6653_v26  ;;  %v6844_v37 = vadd.f32 %v8770_v54, %v6795_v8  ;;  %v6890_v1 = vadd.f32 %v8795_v53, %v6841_v47  ;;  %v8851_v22 = vadd.f32 %v10577_v13, %v10699_v19  ;;  %v10704_v13 = vld [vmem:[#allocation24_spill] sm:$0xff] }
 0x37d   : > { %v8856_v59 = vpop.f32.mrf.mxu1  ;;  %v8826_v48 = vadd.f32 %v8825_v34, %v8824_v38  ;;  %v6852_v45 = vadd.f32 %v8776_v43, %v6803_v15 }
 0x37e   : > { %v8827_v58 = vpop.f32.mrf.mxu0  ;;  %v6751_v3 = vadd.f32 %v8717_v28, %v6702_v42  ;;  %v6939_v14 = vadd.f32 %v8823_v55, %v6890_v1  ;;  %v6893_v20 = vadd.f32 %v8798_v4, %v6844_v37  ;;  %v8804_v28 = vadd.f32 %v10705_v23, %v10704_v13 }
 0x37f   : > { %v8858_v33 = vpop.f32.mrf.mxu1 }
 0x380   : > { %v8828_v46 = vpop.f32.mrf.mxu0  ;;  %v6800_v11 = vadd.f32 %v8745_v41, %v6751_v3  ;;  %v6942_v26 = vadd.f32 %v8826_v48, %v6893_v20  ;;  %v6988_v34 = vadd.f32 %v8851_v22, %v6939_v14  ;;  %v6901_v44 = vadd.f32 %v8804_v28, %v6852_v45  ;;  %v7906_v20 = vld [vmem:[#allocation7] ss:$0 sm:$0xff] }
 0x381   : > { %v8859_v60 = vpop.f32.mrf.mxu1  ;;  %v8829_v35 = vadd.f32 %v8828_v46, %v8827_v58  ;;  %v8857_v58 = vadd.f32 %v8856_v59, %v10602_v7 }
 0x382   : > { %v8830_v0 = vpop.f32.mrf.mxu0  ;;  %v6849_v62 = vadd.f32 %v8773_v6, %v6800_v11  ;;  %v6991_v53 = vadd.f32 %v8854_v61, %v6942_v26  ;;  %v8860_v27 = vadd.f32 %v8859_v60, %v8858_v33 }
 0x384   : > { %v8831_v10 = vpop.f32.mrf.mxu0  ;;  %v6898_v29 = vadd.f32 %v8801_v5, %v6849_v62 }
 0x385   : > { %v8832_v8 = vadd.f32 %v8831_v10, %v8830_v0 }
 0x386   : > { %v6947_v17 = vadd.f32 %v8829_v35, %v6898_v29 }
 0x387   : > { %v6950_v21 = vadd.f32 %v8832_v8, %v6901_v44 }
 0x388   : > { %v6996_v50 = vadd.f32 %v8857_v58, %v6947_v17 }
 0x389   : > { %v6999_v12 = vadd.f32 %v8860_v27, %v6950_v21 }
 0x393   : > { %v8905_v49 = vpop.f32.mrf.mxu1 }
 0x395   : > { %v8906_v25 = vpop.f32.mrf.mxu1 }
 0x396   : > { %v8877_v39 = vpop.f32.mrf.mxu0  ;;  %v8907_v42 = vadd.f32 %v8906_v25, %v8905_v49 }
 0x397   : > { %v8908_v47 = vpop.f32.mrf.mxu1 }
 0x398   : > { %v8878_v38 = vpop.f32.mrf.mxu0 }
 0x399   : > { %v8879_v51 = vadd.f32 %v8878_v38, %v8877_v39  ;;  %v8909_v63 = vpop.f32.mrf.mxu1 }
 0x39a   : > { %v8880_v57 = vpop.f32.mrf.mxu0  ;;  %v8910_v37 = vadd.f32 %v8909_v63, %v8908_v47 }
 0x39b   : > { %v7037_v54 = vadd.f32 %v8879_v51, %v6988_v34  ;;  %v8911_v36 = vpop.f32.mrf.mxu1 }
 0x39c   : > { %v8881_v24 = vpop.f32.mrf.mxu0 }
 0x39d   : > { %v7086_v46 = vadd.f32 %v8907_v42, %v7037_v54  ;;  %v8882_v3 = vadd.f32 %v8881_v24, %v8880_v57  ;;  %v8912_v0 = vpop.f32.mrf.mxu1 }
 0x39e   : > { %v8883_v41 = vpop.f32.mrf.mxu0  ;;  %v8913_v59 = vadd.f32 %v8912_v0, %v8911_v36 }
 0x39f   : > { %v7100_v55 = vmax.f32 %v7086_v46, 0.0  ;;  %v7040_v40 = vadd.f32 %v8882_v3, %v6991_v53  ;;  %v8914_v52 = vpop.f32.mrf.mxu1 }
 0x3a0   : > { %v8884_v1 = vpop.f32.mrf.mxu0 }
 0x3a1   : > { %v7089_v6 = vadd.f32 %v8910_v37, %v7040_v40  ;;  %v8885_v16 = vadd.f32 %v8884_v1, %v8883_v41  ;;  %8969 = vmatprep.mubr.f32.mxu0 %v7100_v55  ;;  %v8915_v10 = vpop.f32.mrf.mxu1 }
 0x3a2   : > { %v8886_v2 = vpop.f32.mrf.mxu0  ;;  %v8916_v19 = vadd.f32 %v8915_v10, %v8914_v52 }
 0x3a3   : > { %v7101_v56 = vmax.f32 %v7089_v6, 0.0  ;;  %v7045_v7 = vadd.f32 %v8885_v16, %v6996_v50 }
 0x3a4   : > { %v8887_v31 = vpop.f32.mrf.mxu0 }
 0x3a5   : > { %v7094_v4 = vadd.f32 %v8913_v59, %v7045_v7  ;;  %v8888_v48 = vadd.f32 %v8887_v31, %v8886_v2  ;;  %8970 = vmatmul.mubr.f32.vlgmr.msra.gmra.mxu0 %v7101_v56 }
 0x3a7   : > { %v7102_v11 = vmax.f32 %v7094_v4, 0.0  ;;  %v7048_v14 = vadd.f32 %v8888_v48, %v6999_v12 }
 0x3a9   : > { %v7097_v33 = vadd.f32 %v8916_v19, %v7048_v14  ;;  %8972 = vmatprep.mubr.f32.mxu1 %v7102_v11 }
 0x3ab   : > { %v7103_v22 = vmax.f32 %v7097_v33, 0.0 }
 0x3ad   : > { %8973 = vmatmul.mubr.f32.vlgmr.msra.gmra.mxu1 %v7103_v22 }
 0x465   : > { %v8971_v60 = vpop.f32.mrf.mxu0 }
 0x466   : > { %v7199_v43 = vadd.f32 %v8971_v60, %v7906_v20 }
 0x467   : > { %v7193_v32 = vpop.f32.mrf.mxu0 }
 0x468   : > { %v7194_v9 = vadd.f32 %v7906_v20, %v7193_v32  ;;  %7214 = vst.msk [vmem:[%s286_s26 + $0x8] sm:$0xff] %vm7212_vm0, %v7199_v43 }
 0x46a   : > { %7213 = vst.msk [vmem:[%s286_s26] sm:$0xff] %vm7212_vm0, %v7194_v9 }
 0x46d   : > { %v8974_v39 = vpop.f32.mrf.mxu1 }
 0x46e   : > { %v7209_v30 = vadd.f32 %v8974_v39, %v7906_v20 }
 0x46f   : > { %v7203_v62 = vpop.f32.mrf.mxu1 }
 0x470   : > { %v7204_v18 = vadd.f32 %v7906_v20, %v7203_v62  ;;  %7216 = vst.msk [vmem:[%s286_s26 + $0x18] sm:$0xff] %vm7212_vm0, %v7209_v30 }
 0x472   : > { %7215 = vst.msk [vmem:[%s286_s26 + $0x10] sm:$0xff] %vm7212_vm0, %v7204_v18 }
 0x473 PF: > { %p17_p6 = scmp.ge.s32.totalorder %s9921_s29, 4   ;;  %s10706_s18 = smov %s9800_s19 }
 0x474   : > { %s10707_s19 = smov %s9804_s20  ;;  %s10708_s20 = smov %s9931_s28 }
 0x475   : > { %s10709_s21 = smov %s9921_s29  ;;  %19 = sbr.rel (!%p17_p6) target bundleno = 5 (0x5), region = 92 }
 0x47a   :  { %7239 = vsyncpa [#allocation3], 1 }
 0x47b   :  { %7241 = vsyncpa [#allocation3 + $0x1], 1 }
 0x47c   :  { %7242 = vsyncpa [#allocation5], 1 }
 0x47d   :  { %7243 = vsyncpa [#allocation8], 1 }

</bundles_post_ra>
